<compile_context>
chip_gen: v6e
topology: v6e:2x2x1
jax: 0.10.0
libtpu: 0.0.40
codegen_flags: <defaults>
</compile_context>

<pallas_src>
import functools

import numpy as np
import jax
import jax.numpy as jnp
from jax import lax
from jax.experimental import pallas as pl
from jax.experimental.pallas import tpu as pltpu

_BN_EPS = 1e-5
_POOL = 3        # MaxPool2d((1, 3))
_K = 5           # ConvBlock kernel size


# --------------------------------------------------------------------------- pallas glue

def _full_spec(shape):
    nd = len(shape)
    return pl.BlockSpec(tuple(shape), lambda i, nd=nd: (0,) * nd)


# --------------------------------------------------------------------------- fused kernel

def fused_kernel(*refs, nb, block_meta, hw, n_ch, n_batch, with_tanh):
    """Whole MainNet forward in one kernel.

    refs order:
      x2d,
      per conv block b (nb of them): op, bias_all, sel, bro, gamma, beta,
      sa_op, rep_op, ca_w1, ca_b1, ca_w2, ca_b2,
      fc1_w (HBM / ANY), fc1_b, fc2_w, fc2_b, fc3_w, fc3_b,
      o_ref (output), fc1_vmem (scratch), dma_sem (scratch).

    block_meta[b] = (G, count): G = per-pool-group column count, count = N*H*W_prepool
    (the BatchNorm element count per channel).  All static Python ints.
    """
    f32 = jnp.float32
    it = iter(refs)
    x_ref = next(it)
    blk_refs = [tuple(next(it) for _ in range(6)) for _ in range(nb)]
    (sa_ref, rep_ref, caw1_ref, cab1_ref, caw2_ref, cab2_ref,
     fc1w_hbm, fc1b_ref, fc2w_ref, fc2b_ref, fc3w_ref, fc3b_ref,
     o_ref, fc1_vmem, dma_sem) = list(it)

    # Kick off the fc1 weight DMA (dominant bytes moved) so it overlaps the conv /
    # attention compute; we wait() right before the fc1 dot.
    fc1_copy = pltpu.make_async_copy(fc1w_hbm, fc1_vmem, dma_sem)
    fc1_copy.start()

    act = x_ref[...].astype(f32)                                   # (N, Cin*H*W)

    # ---- ConvBlock (circular 5x5 conv + BN(train stats) + ReLU) + MaxPool(1,3), per block
    for b in range(nb):
        op_ref, b_ref, sel_ref, bro_ref, g_ref, bt_ref = blk_refs[b]
        G, count = block_meta[b]
        sel = sel_ref[...]                                         # (3G, C): position -> channel
        bro = bro_ref[...]                                         # (C, 3G): channel broadcast
        # conv for all 3 pool offsets at once (operator prefolded on the host).
        z = jnp.dot(act, op_ref[...], preferred_element_type=f32) + b_ref[...]   # (N, 3G)
        inv_cnt = 1.0 / count
        # BatchNorm training statistics over the pre-pool output (biased, two-pass).
        mu = jnp.dot(jnp.sum(z, axis=0, keepdims=True), sel,
                     preferred_element_type=f32) * inv_cnt                       # (1, C)
        mu_b = jnp.dot(mu, bro, preferred_element_type=f32)                      # (1, 3G)
        var = jnp.dot(jnp.sum((z - mu_b) ** 2, axis=0, keepdims=True), sel,
                      preferred_element_type=f32) * inv_cnt                      # (1, C)
        scale = g_ref[...] * lax.rsqrt(var + _BN_EPS)                            # (1, C)
        shift = bt_ref[...] - mu * scale
        y = jnp.maximum(z * jnp.dot(scale, bro, preferred_element_type=f32)
                        + jnp.dot(shift, bro, preferred_element_type=f32), 0.0)  # (N, 3G)
        # MaxPool(1, 3) = elementwise max over the 3 pool-offset groups.
        act = y[:, :G]
        for k in range(1, _POOL):
            act = jnp.maximum(act, y[:, k * G:(k + 1) * G])                      # (N, G)

    # act: (N, hw*C) pooled feature map, position-major / channel-minor.
    C = n_ch

    # ---- SpatialAttention: sigmoid(conv3x3(cat(avg_c, max_c))) * act -------------------
    pos = [act[:, p * C:(p + 1) * C] for p in range(hw)]           # hw x (N, C)
    avg_p = jnp.concatenate([s.mean(axis=-1, keepdims=True) for s in pos], axis=1)  # (N, hw)
    max_p = jnp.concatenate([s.max(axis=-1, keepdims=True) for s in pos], axis=1)   # (N, hw)
    logit = jnp.dot(jnp.concatenate([avg_p, max_p], axis=1), sa_ref[...],
                    preferred_element_type=f32)                    # (N, hw)
    sa_b = jnp.dot(jax.nn.sigmoid(logit), rep_ref[...],
                   preferred_element_type=f32)                     # (N, hw*C)
    y_sa = sa_b * act

    # ---- ChannelAttention: sigmoid(mlp(maxpool) + mlp(avgpool)) * y_sa -----------------
    spos = [y_sa[:, p * C:(p + 1) * C] for p in range(hw)]
    c_max = spos[0]
    c_sum = spos[0]
    for p in range(1, hw):
        c_max = jnp.maximum(c_max, spos[p])
        c_sum = c_sum + spos[p]
    stat = jnp.concatenate([c_max, c_sum * (1.0 / hw)], axis=0)    # (2N, C): [max; avg]
    h = jnp.maximum(jnp.dot(stat, caw1_ref[...], preferred_element_type=f32)
                    + cab1_ref[...], 0.0)                          # (2N, C//8)
    o = jnp.dot(h, caw2_ref[...], preferred_element_type=f32) + cab2_ref[...]    # (2N, C)
    att = jax.nn.sigmoid(o[:n_batch] + o[n_batch:])                # (N, C)
    y_ca = jnp.concatenate([att] * hw, axis=1) * y_sa              # (N, hw*C)

    # ---- Flatten (permutation folded into fc1_w) + FC head ------------------------------
    fc1_copy.wait()                                                # fc1 weight now in VMEM
    h1 = jnp.maximum(jnp.dot(y_ca, fc1_vmem[...], preferred_element_type=f32)
                     + fc1b_ref[...], 0.0)                         # (N, 1024)
    h2 = jnp.maximum(jnp.dot(h1, fc2w_ref[...], preferred_element_type=f32)
                     + fc2b_ref[...], 0.0)                         # (N, C)
    out = jnp.dot(h2, fc3w_ref[...], preferred_element_type=f32) + fc3b_ref[...] # (N, out)
    if with_tanh:
        out = jnp.tanh(out)
    o_ref[...] = out.astype(o_ref.dtype)


# --------------------------------------------------------------------------- forward

def mainnet_forward(x_nchw, prep, with_tanh=False):
    N = x_nchw.shape[0]
    x2d = x_nchw.reshape(N, -1).astype(jnp.float32)                # NCHW flatten

    blocks = prep["blocks"]
    nb = len(blocks)
    hw = prep["rep_op"].shape[0]
    C = prep["rep_op"].shape[1] // hw
    out_len = prep["fc3_w"].shape[1]

    args = [x2d]
    for blk in blocks:
        args += [blk["op"], blk["bias"], blk["sel"], blk["bro"], blk["gamma"], blk["beta"]]
    args += [prep["sa_op"], prep["rep_op"],
             prep["ca_w1"], prep["ca_b1"], prep["ca_w2"], prep["ca_b2"],
             prep["fc1_w"], prep["fc1_b"], prep["fc2_w"], prep["fc2_b"],
             prep["fc3_w"], prep["fc3_b"]]

    # Static per-block metadata derived from (static) shapes.
    block_meta = tuple((blk["op"].shape[1] // _POOL,
                        N * (blk["op"].shape[1] // blk["sel"].shape[1]))
                       for blk in blocks)

    kern = functools.partial(fused_kernel, nb=nb, block_meta=block_meta, hw=hw,
                             n_ch=C, n_batch=N, with_tanh=with_tanh)

    in_specs = [_full_spec(a.shape) for a in args]
    fc1_idx = 1 + 6 * nb + 6
    in_specs[fc1_idx] = pl.BlockSpec(memory_space=pl.ANY)          # fc1_w stays in HBM

    return pl.pallas_call(
        kern,
        out_shape=jax.ShapeDtypeStruct((N, out_len), jnp.float32),
        grid=(1,),
        in_specs=in_specs,
        out_specs=_full_spec((N, out_len)),
        scratch_shapes=[pltpu.VMEM(tuple(prep["fc1_w"].shape), jnp.float32),
                        pltpu.SemaphoreType.DMA],
        compiler_params=pltpu.CompilerParams(dimension_semantics=("arbitrary",)),
    )(*args)


# --------------------------------------------------------------------------- param prep

def _conv_operator(wt, b, H, W, in_index, pool=_POOL):
    """Fold Conv2d(5x5, padding='same', circular) into a dense operator, with output
    columns grouped by MaxPool(1, pool) offset.

    Returns (op, bias_all, sel):
      op      : (Din, pool*G)  Din = Cin*H*W in the caller's input layout (via in_index)
      bias_all: (1, pool*G)
      sel     : (pool*G, Cout) one-hot position -> channel (for BN stats / broadcast)
    Output layout: column = k*G + (h*Wp + w')*Cout + c  (conv output at (c, h, w=pool*w'+k)).
    """
    wt = np.asarray(wt, np.float32)
    b = np.asarray(b, np.float32)
    Cout, Cin, KH, KW = wt.shape
    ph, pw = KH // 2, KW // 2
    assert ph <= H and pw <= W, "circular padding requires pad <= size"
    assert W % pool == 0, "MaxPool(1,3) fusion assumes W divisible by 3"
    Wp = W // pool
    G = H * Wp * Cout
    Din = Cin * H * W
    op = np.zeros((Din, pool * G), np.float32)
    bias = np.zeros((1, pool * G), np.float32)
    sel = np.zeros((pool * G, Cout), np.float32)
    for k in range(pool):
        for h in range(H):
            for wp in range(Wp):
                wc = pool * wp + k
                for co in range(Cout):
                    col = k * G + (h * Wp + wp) * Cout + co
                    bias[0, col] = b[co]
                    sel[col, co] = 1.0
                    for ci in range(Cin):
                        for dh in range(KH):
                            for dw in range(KW):
                                hh = (h + dh - ph) % H
                                ww = (wc + dw - pw) % W
                                op[in_index(ci, hh, ww), col] += wt[co, ci, dh, dw]
    return op, bias, sel


def _sa_operator(k3x3, H, W):
    """Fold the zero-padded 3x3 SpatialAttention conv (single input channel) into an
    (H*W, H*W) operator acting on the flattened per-position statistic."""
    hw = H * W
    A = np.zeros((hw, hw), np.float32)
    k = np.asarray(k3x3, np.float32)
    for h in range(H):
        for w in range(W):
            for dh in (-1, 0, 1):
                for dw in (-1, 0, 1):
                    hh, ww = h + dh, w + dw
                    if 0 <= hh < H and 0 <= ww < W:
                        A[h * W + w, hh * W + ww] += k[dh + 1, dw + 1]
    return A


def prepare_params(params, H, in_len):
    """One-time weight preprocessing (all hoisted out of the forward pass)."""
    prep = {"blocks": []}
    W = in_len
    for bi, (w, b, g, bt) in enumerate(params["conv_blocks"]):
        Cout, Cin = w.shape[0], w.shape[1]
        if bi == 0:
            # raw input is NCHW-flattened: idx = (c*H + h)*W + x
            in_index = (lambda c, h, x, H=H, W=W: (c * H + h) * W + x)
        else:
            # previous block's pooled output: idx = (h*W + x)*Cin + c
            in_index = (lambda c, h, x, W=W, Cin=Cin: (h * W + x) * Cin + c)
        op, bias_all, sel = _conv_operator(w, b, H, W, in_index)
        prep["blocks"].append({
            "op": jnp.asarray(op),
            "bias": jnp.asarray(bias_all),
            "sel": jnp.asarray(sel),
            "bro": jnp.asarray(np.ascontiguousarray(sel.T)),
            "gamma": jnp.asarray(g).reshape(1, -1),
            "beta": jnp.asarray(bt).reshape(1, -1),
        })
        W //= _POOL

    C = params["conv_blocks"][-1][0].shape[0]
    hw = H * W

    # SpatialAttention: torch.cat((avg_out, max_out), dim=1) -> ch0 = avg, ch1 = max.
    sa_w = np.asarray(params["sa_w"], np.float32)                  # (1, 2, 3, 3)
    A_avg = _sa_operator(sa_w[0, 0], H, W)
    A_max = _sa_operator(sa_w[0, 1], H, W)
    prep["sa_op"] = jnp.asarray(np.concatenate([A_avg.T, A_max.T], axis=0))   # (2hw, hw)
    rep = np.zeros((hw, hw * C), np.float32)
    for p in range(hw):
        rep[p, p * C:(p + 1) * C] = 1.0
    prep["rep_op"] = jnp.asarray(rep)                              # (hw, hw*C)

    ch = params["ca_w1"].shape[0]
    prep["ca_w1"] = jnp.asarray(np.asarray(params["ca_w1"], np.float32).reshape(ch, C).T)
    prep["ca_b1"] = jnp.asarray(params["ca_b1"]).reshape(1, -1)
    prep["ca_w2"] = jnp.asarray(np.asarray(params["ca_w2"], np.float32).reshape(C, ch).T)
    prep["ca_b2"] = jnp.asarray(params["ca_b2"]).reshape(1, -1)

    # torch.Flatten is (c, h, w)-ordered; our activation is position-major / channel-minor,
    # so fold the permutation into fc1's weight.
    fc1_w = np.asarray(params["fc1_w"], np.float32)                # (1024, C*hw)
    d_hidden = fc1_w.shape[0]
    assert fc1_w.shape[1] == C * hw, "fc1 in_features must equal C * H * (in_len // 3**nb)"
    prep["fc1_w"] = jnp.asarray(np.ascontiguousarray(
        fc1_w.reshape(d_hidden, C, hw).transpose(2, 1, 0).reshape(hw * C, d_hidden)))
    prep["fc1_b"] = jnp.asarray(params["fc1_b"]).reshape(1, -1)
    prep["fc2_w"] = jnp.asarray(params["fc2_w"]).T
    prep["fc2_b"] = jnp.asarray(params["fc2_b"]).reshape(1, -1)
    prep["fc3_w"] = jnp.asarray(params["fc3_w"]).T
    prep["fc3_b"] = jnp.asarray(params["fc3_b"]).reshape(1, -1)
    return prep


# --------------------------------------------------------------------------- params / main

def make_params(key, in_channel, out_channels, in_len, out_len):
    keys = jax.random.split(key, 16)
    ki = iter(range(16))

    def nrm(shape, k):
        return 0.05 * jax.random.normal(keys[k], shape, dtype=jnp.float32)

    params = {"conv_blocks": []}
    in_ = in_channel
    cur_len = in_len
    for out_ in out_channels:
        w = nrm((out_, in_, _K, _K), next(ki))
        b = nrm((out_,), next(ki))
        gamma = jnp.ones((out_,), jnp.float32)       # PyTorch BN default affine init
        beta = jnp.zeros((out_,), jnp.float32)
        params["conv_blocks"].append((w, b, gamma, beta))
        in_ = out_
        cur_len //= 3

    params["sa_w"] = nrm((1, 2, 3, 3), next(ki))
    hid = in_ // 8
    params["ca_w1"] = nrm((hid, in_, 1, 1), next(ki))
    params["ca_b1"] = nrm((hid,), next(ki))
    params["ca_w2"] = nrm((in_, hid, 1, 1), next(ki))
    params["ca_b2"] = nrm((in_,), next(ki))

    d0 = in_ * cur_len * 5
    params["fc1_w"] = nrm((1024, d0), next(ki))
    params["fc1_b"] = nrm((1024,), next(ki))
    params["fc2_w"] = nrm((in_, 1024), next(ki))
    params["fc2_b"] = nrm((in_,), next(ki))
    params["fc3_w"] = nrm((out_len, in_), next(ki))
    params["fc3_b"] = nrm((out_len,), next(ki))
    return params


if __name__ == "__main__":
    # MainNet(in_channel=4, out_channels=(8, 16), in_len=9, out_len=4, with_tanh=False)
    # Input is NCHW with H=5 (the fc layer expects in_ * in_len_final * 5 features).
    key = jax.random.PRNGKey(0)
    kp, kx = jax.random.split(key)
    params = make_params(kp, in_channel=4, out_channels=(8, 16), in_len=9, out_len=4)
    prep = prepare_params(params, H=5, in_len=9)
    x = jax.random.normal(kx, (2, 4, 5, 9), dtype=jnp.float32)     # (N, C, H, W)

    fwd = jax.jit(functools.partial(mainnet_forward, with_tanh=False))
    y = jax.block_until_ready(fwd(x, prep))
    assert y.shape == (2, 4) and y.dtype == jnp.float32
    print("KERNEL_OK")
</pallas_src>

<mosaic_0001>
module attributes {stable_mosaic.version = 11 : i64} {
  func.func @fused_kernel(%arg0: i32, %arg1: memref<2x180xf32, #tpu.memory_space<vmem>>, %arg2: memref<180x360xf32, #tpu.memory_space<vmem>>, %arg3: memref<1x360xf32, #tpu.memory_space<vmem>>, %arg4: memref<360x8xf32, #tpu.memory_space<vmem>>, %arg5: memref<8x360xf32, #tpu.memory_space<vmem>>, %arg6: memref<1x8xf32, #tpu.memory_space<vmem>>, %arg7: memref<1x8xf32, #tpu.memory_space<vmem>>, %arg8: memref<120x240xf32, #tpu.memory_space<vmem>>, %arg9: memref<1x240xf32, #tpu.memory_space<vmem>>, %arg10: memref<240x16xf32, #tpu.memory_space<vmem>>, %arg11: memref<16x240xf32, #tpu.memory_space<vmem>>, %arg12: memref<1x16xf32, #tpu.memory_space<vmem>>, %arg13: memref<1x16xf32, #tpu.memory_space<vmem>>, %arg14: memref<10x5xf32, #tpu.memory_space<vmem>>, %arg15: memref<5x80xf32, #tpu.memory_space<vmem>>, %arg16: memref<16x2xf32, #tpu.memory_space<vmem>>, %arg17: memref<1x2xf32, #tpu.memory_space<vmem>>, %arg18: memref<2x16xf32, #tpu.memory_space<vmem>>, %arg19: memref<1x16xf32, #tpu.memory_space<vmem>>, %arg20: memref<80x1024xf32, #tpu.memory_space<any>>, %arg21: memref<1x1024xf32, #tpu.memory_space<vmem>>, %arg22: memref<1024x16xf32, #tpu.memory_space<vmem>>, %arg23: memref<1x16xf32, #tpu.memory_space<vmem>>, %arg24: memref<16x4xf32, #tpu.memory_space<vmem>>, %arg25: memref<1x4xf32, #tpu.memory_space<vmem>>, %arg26: memref<2x4xf32, #tpu.memory_space<vmem>>, %arg27: memref<80x1024xf32, #tpu.memory_space<vmem>>, %arg28: memref<!tpu.dma_semaphore, #tpu.memory_space<semaphore_mem>>) attributes {dimension_semantics = [#tpu.dimension_semantics<arbitrary>], iteration_bounds = array<i64: 1>, scalar_prefetch = 0 : i64, scratch_operands = 2 : i64, tpu.core_type = #tpu.core_type<tc>, window_params = [{pipeline_mode = #tpu.pipeline_mode<synchronous>, transform_indices = @transform_0, window_bounds = array<i64: 2, 180>}, {pipeline_mode = #tpu.pipeline_mode<synchronous>, transform_indices = @transform_1, window_bounds = array<i64: 180, 360>}, {pipeline_mode = #tpu.pipeline_mode<synchronous>, transform_indices = @transform_2, window_bounds = array<i64: 1, 360>}, {pipeline_mode = #tpu.pipeline_mode<synchronous>, transform_indices = @transform_3, window_bounds = array<i64: 360, 8>}, {pipeline_mode = #tpu.pipeline_mode<synchronous>, transform_indices = @transform_4, window_bounds = array<i64: 8, 360>}, {pipeline_mode = #tpu.pipeline_mode<synchronous>, transform_indices = @transform_5, window_bounds = array<i64: 1, 8>}, {pipeline_mode = #tpu.pipeline_mode<synchronous>, transform_indices = @transform_6, window_bounds = array<i64: 1, 8>}, {pipeline_mode = #tpu.pipeline_mode<synchronous>, transform_indices = @transform_7, window_bounds = array<i64: 120, 240>}, {pipeline_mode = #tpu.pipeline_mode<synchronous>, transform_indices = @transform_8, window_bounds = array<i64: 1, 240>}, {pipeline_mode = #tpu.pipeline_mode<synchronous>, transform_indices = @transform_9, window_bounds = array<i64: 240, 16>}, {pipeline_mode = #tpu.pipeline_mode<synchronous>, transform_indices = @transform_10, window_bounds = array<i64: 16, 240>}, {pipeline_mode = #tpu.pipeline_mode<synchronous>, transform_indices = @transform_11, window_bounds = array<i64: 1, 16>}, {pipeline_mode = #tpu.pipeline_mode<synchronous>, transform_indices = @transform_12, window_bounds = array<i64: 1, 16>}, {pipeline_mode = #tpu.pipeline_mode<synchronous>, transform_indices = @transform_13, window_bounds = array<i64: 10, 5>}, {pipeline_mode = #tpu.pipeline_mode<synchronous>, transform_indices = @transform_14, window_bounds = array<i64: 5, 80>}, {pipeline_mode = #tpu.pipeline_mode<synchronous>, transform_indices = @transform_15, window_bounds = array<i64: 16, 2>}, {pipeline_mode = #tpu.pipeline_mode<synchronous>, transform_indices = @transform_16, window_bounds = array<i64: 1, 2>}, {pipeline_mode = #tpu.pipeline_mode<synchronous>, transform_indices = @transform_17, window_bounds = array<i64: 2, 16>}, {pipeline_mode = #tpu.pipeline_mode<synchronous>, transform_indices = @transform_18, window_bounds = array<i64: 1, 16>}, {}, {pipeline_mode = #tpu.pipeline_mode<synchronous>, transform_indices = @transform_20, window_bounds = array<i64: 1, 1024>}, {pipeline_mode = #tpu.pipeline_mode<synchronous>, transform_indices = @transform_21, window_bounds = array<i64: 1024, 16>}, {pipeline_mode = #tpu.pipeline_mode<synchronous>, transform_indices = @transform_22, window_bounds = array<i64: 1, 16>}, {pipeline_mode = #tpu.pipeline_mode<synchronous>, transform_indices = @transform_23, window_bounds = array<i64: 16, 4>}, {pipeline_mode = #tpu.pipeline_mode<synchronous>, transform_indices = @transform_24, window_bounds = array<i64: 1, 4>}, {pipeline_mode = #tpu.pipeline_mode<synchronous>, transform_indices = @transform_25, window_bounds = array<i64: 2, 4>}]} {
    tpu.enqueue_dma source(%arg20 : memref<80x1024xf32, #tpu.memory_space<any>>) target(%arg27 : memref<80x1024xf32, #tpu.memory_space<vmem>>) target_semaphore(%arg28 : memref<!tpu.dma_semaphore, #tpu.memory_space<semaphore_mem>>)
    %c0 = arith.constant 0 : index
    %c0_0 = arith.constant 0 : index
    %0 = vector.load %arg1[%c0, %c0_0] : memref<2x180xf32, #tpu.memory_space<vmem>>, vector<2x180xf32>
    %c0_1 = arith.constant 0 : index
    %c0_2 = arith.constant 0 : index
    %1 = vector.load %arg4[%c0_1, %c0_2] : memref<360x8xf32, #tpu.memory_space<vmem>>, vector<360x8xf32>
    %c0_3 = arith.constant 0 : index
    %c0_4 = arith.constant 0 : index
    %2 = vector.load %arg5[%c0_3, %c0_4] : memref<8x360xf32, #tpu.memory_space<vmem>>, vector<8x360xf32>
    %c0_5 = arith.constant 0 : index
    %c0_6 = arith.constant 0 : index
    %3 = vector.load %arg2[%c0_5, %c0_6] : memref<180x360xf32, #tpu.memory_space<vmem>>, vector<180x360xf32>
    %cst = arith.constant dense<0.000000e+00> : vector<2x360xf32>
    %4 = tpu.matmul %0, %3, %cst {dimension_numbers = #tpu.dot_dimension_numbers<[1], [0], [0], [1], [0, 0, 1, 1], [], []>} : vector<2x180xf32>, vector<180x360xf32>, vector<2x360xf32> -> vector<2x360xf32>
    %c0_7 = arith.constant 0 : index
    %c0_8 = arith.constant 0 : index
    %5 = vector.load %arg3[%c0_7, %c0_8] : memref<1x360xf32, #tpu.memory_space<vmem>>, vector<1x360xf32>
    %6 = vector.broadcast %5 : vector<1x360xf32> to vector<2x360xf32>
    %7 = arith.addf %4, %6 : vector<2x360xf32>
    %cst_9 = arith.constant dense<0.000000e+00> : vector<360xf32>
    %8 = vector.multi_reduction <add>, %7, %cst_9 [0] : vector<2x360xf32> to vector<360xf32>
    %9 = vector.shape_cast %8 : vector<360xf32> to vector<1x360xf32>
    %cst_10 = arith.constant dense<0.000000e+00> : vector<1x8xf32>
    %10 = tpu.matmul %9, %1, %cst_10 {dimension_numbers = #tpu.dot_dimension_numbers<[1], [0], [0], [1], [0, 0, 1, 1], [], []>} : vector<1x360xf32>, vector<360x8xf32>, vector<1x8xf32> -> vector<1x8xf32>
    %cst_11 = arith.constant 0.0111111114 : f32
    %11 = vector.broadcast %cst_11 : f32 to vector<1x8xf32>
    %12 = arith.mulf %10, %11 : vector<1x8xf32>
    %cst_12 = arith.constant dense<0.000000e+00> : vector<1x360xf32>
    %13 = tpu.matmul %12, %2, %cst_12 {dimension_numbers = #tpu.dot_dimension_numbers<[1], [0], [0], [1], [0, 0, 1, 1], [], []>} : vector<1x8xf32>, vector<8x360xf32>, vector<1x360xf32> -> vector<1x360xf32>
    %14 = vector.broadcast %13 : vector<1x360xf32> to vector<2x360xf32>
    %15 = arith.subf %7, %14 : vector<2x360xf32>
    %16 = arith.mulf %15, %15 : vector<2x360xf32>
    %cst_13 = arith.constant dense<0.000000e+00> : vector<360xf32>
    %17 = vector.multi_reduction <add>, %16, %cst_13 [0] : vector<2x360xf32> to vector<360xf32>
    %18 = vector.shape_cast %17 : vector<360xf32> to vector<1x360xf32>
    %cst_14 = arith.constant dense<0.000000e+00> : vector<1x8xf32>
    %19 = tpu.matmul %18, %1, %cst_14 {dimension_numbers = #tpu.dot_dimension_numbers<[1], [0], [0], [1], [0, 0, 1, 1], [], []>} : vector<1x360xf32>, vector<360x8xf32>, vector<1x8xf32> -> vector<1x8xf32>
    %cst_15 = arith.constant 0.0111111114 : f32
    %20 = vector.broadcast %cst_15 : f32 to vector<1x8xf32>
    %21 = arith.mulf %19, %20 : vector<1x8xf32>
    %c0_16 = arith.constant 0 : index
    %c0_17 = arith.constant 0 : index
    %22 = vector.load %arg6[%c0_16, %c0_17] : memref<1x8xf32, #tpu.memory_space<vmem>>, vector<1x8xf32>
    %cst_18 = arith.constant 9.99999974E-6 : f32
    %23 = vector.broadcast %cst_18 : f32 to vector<1x8xf32>
    %24 = arith.addf %21, %23 : vector<1x8xf32>
    %25 = math.rsqrt %24 : vector<1x8xf32>
    %26 = arith.mulf %22, %25 : vector<1x8xf32>
    %c0_19 = arith.constant 0 : index
    %c0_20 = arith.constant 0 : index
    %27 = vector.load %arg7[%c0_19, %c0_20] : memref<1x8xf32, #tpu.memory_space<vmem>>, vector<1x8xf32>
    %28 = arith.mulf %12, %26 : vector<1x8xf32>
    %29 = arith.subf %27, %28 : vector<1x8xf32>
    %cst_21 = arith.constant dense<0.000000e+00> : vector<1x360xf32>
    %30 = tpu.matmul %26, %2, %cst_21 {dimension_numbers = #tpu.dot_dimension_numbers<[1], [0], [0], [1], [0, 0, 1, 1], [], []>} : vector<1x8xf32>, vector<8x360xf32>, vector<1x360xf32> -> vector<1x360xf32>
    %31 = vector.broadcast %30 : vector<1x360xf32> to vector<2x360xf32>
    %32 = arith.mulf %7, %31 : vector<2x360xf32>
    %cst_22 = arith.constant dense<0.000000e+00> : vector<1x360xf32>
    %33 = tpu.matmul %29, %2, %cst_22 {dimension_numbers = #tpu.dot_dimension_numbers<[1], [0], [0], [1], [0, 0, 1, 1], [], []>} : vector<1x8xf32>, vector<8x360xf32>, vector<1x360xf32> -> vector<1x360xf32>
    %34 = vector.broadcast %33 : vector<1x360xf32> to vector<2x360xf32>
    %35 = arith.addf %32, %34 : vector<2x360xf32>
    %cst_23 = arith.constant 0.000000e+00 : f32
    %36 = vector.broadcast %cst_23 : f32 to vector<2x360xf32>
    %37 = arith.maximumf %35, %36 : vector<2x360xf32>
    %38 = vector.extract_strided_slice %37 {offsets = [0, 0], sizes = [2, 120], strides = [1, 1]} : vector<2x360xf32> to vector<2x120xf32>
    %39 = vector.extract_strided_slice %37 {offsets = [0, 120], sizes = [2, 120], strides = [1, 1]} : vector<2x360xf32> to vector<2x120xf32>
    %40 = arith.maximumf %38, %39 : vector<2x120xf32>
    %41 = vector.extract_strided_slice %37 {offsets = [0, 240], sizes = [2, 120], strides = [1, 1]} : vector<2x360xf32> to vector<2x120xf32>
    %42 = arith.maximumf %40, %41 : vector<2x120xf32>
    %c0_24 = arith.constant 0 : index
    %c0_25 = arith.constant 0 : index
    %43 = vector.load %arg10[%c0_24, %c0_25] : memref<240x16xf32, #tpu.memory_space<vmem>>, vector<240x16xf32>
    %c0_26 = arith.constant 0 : index
    %c0_27 = arith.constant 0 : index
    %44 = vector.load %arg11[%c0_26, %c0_27] : memref<16x240xf32, #tpu.memory_space<vmem>>, vector<16x240xf32>
    %c0_28 = arith.constant 0 : index
    %c0_29 = arith.constant 0 : index
    %45 = vector.load %arg8[%c0_28, %c0_29] : memref<120x240xf32, #tpu.memory_space<vmem>>, vector<120x240xf32>
    %cst_30 = arith.constant dense<0.000000e+00> : vector<2x240xf32>
    %46 = tpu.matmul %42, %45, %cst_30 {dimension_numbers = #tpu.dot_dimension_numbers<[1], [0], [0], [1], [0, 0, 1, 1], [], []>} : vector<2x120xf32>, vector<120x240xf32>, vector<2x240xf32> -> vector<2x240xf32>
    %c0_31 = arith.constant 0 : index
    %c0_32 = arith.constant 0 : index
    %47 = vector.load %arg9[%c0_31, %c0_32] : memref<1x240xf32, #tpu.memory_space<vmem>>, vector<1x240xf32>
    %48 = vector.broadcast %47 : vector<1x240xf32> to vector<2x240xf32>
    %49 = arith.addf %46, %48 : vector<2x240xf32>
    %cst_33 = arith.constant dense<0.000000e+00> : vector<240xf32>
    %50 = vector.multi_reduction <add>, %49, %cst_33 [0] : vector<2x240xf32> to vector<240xf32>
    %51 = vector.shape_cast %50 : vector<240xf32> to vector<1x240xf32>
    %cst_34 = arith.constant dense<0.000000e+00> : vector<1x16xf32>
    %52 = tpu.matmul %51, %43, %cst_34 {dimension_numbers = #tpu.dot_dimension_numbers<[1], [0], [0], [1], [0, 0, 1, 1], [], []>} : vector<1x240xf32>, vector<240x16xf32>, vector<1x16xf32> -> vector<1x16xf32>
    %cst_35 = arith.constant 0.0333333351 : f32
    %53 = vector.broadcast %cst_35 : f32 to vector<1x16xf32>
    %54 = arith.mulf %52, %53 : vector<1x16xf32>
    %cst_36 = arith.constant dense<0.000000e+00> : vector<1x240xf32>
    %55 = tpu.matmul %54, %44, %cst_36 {dimension_numbers = #tpu.dot_dimension_numbers<[1], [0], [0], [1], [0, 0, 1, 1], [], []>} : vector<1x16xf32>, vector<16x240xf32>, vector<1x240xf32> -> vector<1x240xf32>
    %56 = vector.broadcast %55 : vector<1x240xf32> to vector<2x240xf32>
    %57 = arith.subf %49, %56 : vector<2x240xf32>
    %58 = arith.mulf %57, %57 : vector<2x240xf32>
    %cst_37 = arith.constant dense<0.000000e+00> : vector<240xf32>
    %59 = vector.multi_reduction <add>, %58, %cst_37 [0] : vector<2x240xf32> to vector<240xf32>
    %60 = vector.shape_cast %59 : vector<240xf32> to vector<1x240xf32>
    %cst_38 = arith.constant dense<0.000000e+00> : vector<1x16xf32>
    %61 = tpu.matmul %60, %43, %cst_38 {dimension_numbers = #tpu.dot_dimension_numbers<[1], [0], [0], [1], [0, 0, 1, 1], [], []>} : vector<1x240xf32>, vector<240x16xf32>, vector<1x16xf32> -> vector<1x16xf32>
    %cst_39 = arith.constant 0.0333333351 : f32
    %62 = vector.broadcast %cst_39 : f32 to vector<1x16xf32>
    %63 = arith.mulf %61, %62 : vector<1x16xf32>
    %c0_40 = arith.constant 0 : index
    %c0_41 = arith.constant 0 : index
    %64 = vector.load %arg12[%c0_40, %c0_41] : memref<1x16xf32, #tpu.memory_space<vmem>>, vector<1x16xf32>
    %cst_42 = arith.constant 9.99999974E-6 : f32
    %65 = vector.broadcast %cst_42 : f32 to vector<1x16xf32>
    %66 = arith.addf %63, %65 : vector<1x16xf32>
    %67 = math.rsqrt %66 : vector<1x16xf32>
    %68 = arith.mulf %64, %67 : vector<1x16xf32>
    %c0_43 = arith.constant 0 : index
    %c0_44 = arith.constant 0 : index
    %69 = vector.load %arg13[%c0_43, %c0_44] : memref<1x16xf32, #tpu.memory_space<vmem>>, vector<1x16xf32>
    %70 = arith.mulf %54, %68 : vector<1x16xf32>
    %71 = arith.subf %69, %70 : vector<1x16xf32>
    %cst_45 = arith.constant dense<0.000000e+00> : vector<1x240xf32>
    %72 = tpu.matmul %68, %44, %cst_45 {dimension_numbers = #tpu.dot_dimension_numbers<[1], [0], [0], [1], [0, 0, 1, 1], [], []>} : vector<1x16xf32>, vector<16x240xf32>, vector<1x240xf32> -> vector<1x240xf32>
    %73 = vector.broadcast %72 : vector<1x240xf32> to vector<2x240xf32>
    %74 = arith.mulf %49, %73 : vector<2x240xf32>
    %cst_46 = arith.constant dense<0.000000e+00> : vector<1x240xf32>
    %75 = tpu.matmul %71, %44, %cst_46 {dimension_numbers = #tpu.dot_dimension_numbers<[1], [0], [0], [1], [0, 0, 1, 1], [], []>} : vector<1x16xf32>, vector<16x240xf32>, vector<1x240xf32> -> vector<1x240xf32>
    %76 = vector.broadcast %75 : vector<1x240xf32> to vector<2x240xf32>
    %77 = arith.addf %74, %76 : vector<2x240xf32>
    %cst_47 = arith.constant 0.000000e+00 : f32
    %78 = vector.broadcast %cst_47 : f32 to vector<2x240xf32>
    %79 = arith.maximumf %77, %78 : vector<2x240xf32>
    %80 = vector.extract_strided_slice %79 {offsets = [0, 0], sizes = [2, 80], strides = [1, 1]} : vector<2x240xf32> to vector<2x80xf32>
    %81 = vector.extract_strided_slice %79 {offsets = [0, 80], sizes = [2, 80], strides = [1, 1]} : vector<2x240xf32> to vector<2x80xf32>
    %82 = arith.maximumf %80, %81 : vector<2x80xf32>
    %83 = vector.extract_strided_slice %79 {offsets = [0, 160], sizes = [2, 80], strides = [1, 1]} : vector<2x240xf32> to vector<2x80xf32>
    %84 = arith.maximumf %82, %83 : vector<2x80xf32>
    %85 = vector.extract_strided_slice %84 {offsets = [0, 0], sizes = [2, 16], strides = [1, 1]} : vector<2x80xf32> to vector<2x16xf32>
    %86 = vector.extract_strided_slice %84 {offsets = [0, 16], sizes = [2, 16], strides = [1, 1]} : vector<2x80xf32> to vector<2x16xf32>
    %87 = vector.extract_strided_slice %84 {offsets = [0, 32], sizes = [2, 16], strides = [1, 1]} : vector<2x80xf32> to vector<2x16xf32>
    %88 = vector.extract_strided_slice %84 {offsets = [0, 48], sizes = [2, 16], strides = [1, 1]} : vector<2x80xf32> to vector<2x16xf32>
    %89 = vector.extract_strided_slice %84 {offsets = [0, 64], sizes = [2, 16], strides = [1, 1]} : vector<2x80xf32> to vector<2x16xf32>
    %cst_48 = arith.constant dense<0.000000e+00> : vector<2xf32>
    %90 = vector.multi_reduction <add>, %85, %cst_48 [1] : vector<2x16xf32> to vector<2xf32>
    %91 = vector.shape_cast %90 : vector<2xf32> to vector<2x1xf32>
    %cst_49 = arith.constant 1.600000e+01 : f32
    %92 = vector.broadcast %cst_49 : f32 to vector<2x1xf32>
    %93 = arith.divf %91, %92 : vector<2x1xf32>
    %cst_50 = arith.constant dense<0.000000e+00> : vector<2xf32>
    %94 = vector.multi_reduction <add>, %86, %cst_50 [1] : vector<2x16xf32> to vector<2xf32>
    %95 = vector.shape_cast %94 : vector<2xf32> to vector<2x1xf32>
    %cst_51 = arith.constant 1.600000e+01 : f32
    %96 = vector.broadcast %cst_51 : f32 to vector<2x1xf32>
    %97 = arith.divf %95, %96 : vector<2x1xf32>
    %cst_52 = arith.constant dense<0.000000e+00> : vector<2xf32>
    %98 = vector.multi_reduction <add>, %87, %cst_52 [1] : vector<2x16xf32> to vector<2xf32>
    %99 = vector.shape_cast %98 : vector<2xf32> to vector<2x1xf32>
    %cst_53 = arith.constant 1.600000e+01 : f32
    %100 = vector.broadcast %cst_53 : f32 to vector<2x1xf32>
    %101 = arith.divf %99, %100 : vector<2x1xf32>
    %cst_54 = arith.constant dense<0.000000e+00> : vector<2xf32>
    %102 = vector.multi_reduction <add>, %88, %cst_54 [1] : vector<2x16xf32> to vector<2xf32>
    %103 = vector.shape_cast %102 : vector<2xf32> to vector<2x1xf32>
    %cst_55 = arith.constant 1.600000e+01 : f32
    %104 = vector.broadcast %cst_55 : f32 to vector<2x1xf32>
    %105 = arith.divf %103, %104 : vector<2x1xf32>
    %cst_56 = arith.constant dense<0.000000e+00> : vector<2xf32>
    %106 = vector.multi_reduction <add>, %89, %cst_56 [1] : vector<2x16xf32> to vector<2xf32>
    %107 = vector.shape_cast %106 : vector<2xf32> to vector<2x1xf32>
    %cst_57 = arith.constant 1.600000e+01 : f32
    %108 = vector.broadcast %cst_57 : f32 to vector<2x1xf32>
    %109 = arith.divf %107, %108 : vector<2x1xf32>
    %110 = tpu.concatenate %93, %97, %101, %105, %109 in 1 : vector<2x1xf32>, vector<2x1xf32>, vector<2x1xf32>, vector<2x1xf32>, vector<2x1xf32> -> vector<2x5xf32>
    %cst_58 = arith.constant dense<0xFF800000> : vector<2xf32>
    %111 = vector.multi_reduction <maximumf>, %85, %cst_58 [1] : vector<2x16xf32> to vector<2xf32>
    %112 = vector.shape_cast %111 : vector<2xf32> to vector<2x1xf32>
    %cst_59 = arith.constant dense<0xFF800000> : vector<2xf32>
    %113 = vector.multi_reduction <maximumf>, %86, %cst_59 [1] : vector<2x16xf32> to vector<2xf32>
    %114 = vector.shape_cast %113 : vector<2xf32> to vector<2x1xf32>
    %cst_60 = arith.constant dense<0xFF800000> : vector<2xf32>
    %115 = vector.multi_reduction <maximumf>, %87, %cst_60 [1] : vector<2x16xf32> to vector<2xf32>
    %116 = vector.shape_cast %115 : vector<2xf32> to vector<2x1xf32>
    %cst_61 = arith.constant dense<0xFF800000> : vector<2xf32>
    %117 = vector.multi_reduction <maximumf>, %88, %cst_61 [1] : vector<2x16xf32> to vector<2xf32>
    %118 = vector.shape_cast %117 : vector<2xf32> to vector<2x1xf32>
    %cst_62 = arith.constant dense<0xFF800000> : vector<2xf32>
    %119 = vector.multi_reduction <maximumf>, %89, %cst_62 [1] : vector<2x16xf32> to vector<2xf32>
    %120 = vector.shape_cast %119 : vector<2xf32> to vector<2x1xf32>
    %121 = tpu.concatenate %112, %114, %116, %118, %120 in 1 : vector<2x1xf32>, vector<2x1xf32>, vector<2x1xf32>, vector<2x1xf32>, vector<2x1xf32> -> vector<2x5xf32>
    %122 = tpu.concatenate %110, %121 in 1 : vector<2x5xf32>, vector<2x5xf32> -> vector<2x10xf32>
    %c0_63 = arith.constant 0 : index
    %c0_64 = arith.constant 0 : index
    %123 = vector.load %arg14[%c0_63, %c0_64] : memref<10x5xf32, #tpu.memory_space<vmem>>, vector<10x5xf32>
    %cst_65 = arith.constant dense<0.000000e+00> : vector<2x5xf32>
    %124 = tpu.matmul %122, %123, %cst_65 {dimension_numbers = #tpu.dot_dimension_numbers<[1], [0], [0], [1], [0, 0, 1, 1], [], []>} : vector<2x10xf32>, vector<10x5xf32>, vector<2x5xf32> -> vector<2x5xf32>
    %125 = arith.negf %124 : vector<2x5xf32>
    %126 = math.exp %125 : vector<2x5xf32>
    %cst_66 = arith.constant 1.000000e+00 : f32
    %127 = vector.broadcast %cst_66 : f32 to vector<2x5xf32>
    %128 = arith.addf %127, %126 : vector<2x5xf32>
    %129 = arith.divf %127, %128 : vector<2x5xf32>
    %c0_67 = arith.constant 0 : index
    %c0_68 = arith.constant 0 : index
    %130 = vector.load %arg15[%c0_67, %c0_68] : memref<5x80xf32, #tpu.memory_space<vmem>>, vector<5x80xf32>
    %cst_69 = arith.constant dense<0.000000e+00> : vector<2x80xf32>
    %131 = tpu.matmul %129, %130, %cst_69 {dimension_numbers = #tpu.dot_dimension_numbers<[1], [0], [0], [1], [0, 0, 1, 1], [], []>} : vector<2x5xf32>, vector<5x80xf32>, vector<2x80xf32> -> vector<2x80xf32>
    %132 = arith.mulf %131, %84 : vector<2x80xf32>
    %133 = vector.extract_strided_slice %132 {offsets = [0, 0], sizes = [2, 16], strides = [1, 1]} : vector<2x80xf32> to vector<2x16xf32>
    %134 = vector.extract_strided_slice %132 {offsets = [0, 16], sizes = [2, 16], strides = [1, 1]} : vector<2x80xf32> to vector<2x16xf32>
    %135 = vector.extract_strided_slice %132 {offsets = [0, 32], sizes = [2, 16], strides = [1, 1]} : vector<2x80xf32> to vector<2x16xf32>
    %136 = vector.extract_strided_slice %132 {offsets = [0, 48], sizes = [2, 16], strides = [1, 1]} : vector<2x80xf32> to vector<2x16xf32>
    %137 = vector.extract_strided_slice %132 {offsets = [0, 64], sizes = [2, 16], strides = [1, 1]} : vector<2x80xf32> to vector<2x16xf32>
    %138 = arith.maximumf %133, %134 : vector<2x16xf32>
    %139 = arith.addf %133, %134 : vector<2x16xf32>
    %140 = arith.maximumf %138, %135 : vector<2x16xf32>
    %141 = arith.addf %139, %135 : vector<2x16xf32>
    %142 = arith.maximumf %140, %136 : vector<2x16xf32>
    %143 = arith.addf %141, %136 : vector<2x16xf32>
    %144 = arith.maximumf %142, %137 : vector<2x16xf32>
    %145 = arith.addf %143, %137 : vector<2x16xf32>
    %cst_70 = arith.constant 2.000000e-01 : f32
    %146 = vector.broadcast %cst_70 : f32 to vector<2x16xf32>
    %147 = arith.mulf %145, %146 : vector<2x16xf32>
    %148 = tpu.concatenate %144, %147 in 0 : vector<2x16xf32>, vector<2x16xf32> -> vector<4x16xf32>
    %c0_71 = arith.constant 0 : index
    %c0_72 = arith.constant 0 : index
    %149 = vector.load %arg16[%c0_71, %c0_72] : memref<16x2xf32, #tpu.memory_space<vmem>>, vector<16x2xf32>
    %cst_73 = arith.constant dense<0.000000e+00> : vector<4x2xf32>
    %150 = tpu.matmul %148, %149, %cst_73 {dimension_numbers = #tpu.dot_dimension_numbers<[1], [0], [0], [1], [0, 0, 1, 1], [], []>} : vector<4x16xf32>, vector<16x2xf32>, vector<4x2xf32> -> vector<4x2xf32>
    %c0_74 = arith.constant 0 : index
    %c0_75 = arith.constant 0 : index
    %151 = vector.load %arg17[%c0_74, %c0_75] : memref<1x2xf32, #tpu.memory_space<vmem>>, vector<1x2xf32>
    %152 = vector.broadcast %151 : vector<1x2xf32> to vector<4x2xf32>
    %153 = arith.addf %150, %152 : vector<4x2xf32>
    %cst_76 = arith.constant 0.000000e+00 : f32
    %154 = vector.broadcast %cst_76 : f32 to vector<4x2xf32>
    %155 = arith.maximumf %153, %154 : vector<4x2xf32>
    %c0_77 = arith.constant 0 : index
    %c0_78 = arith.constant 0 : index
    %156 = vector.load %arg18[%c0_77, %c0_78] : memref<2x16xf32, #tpu.memory_space<vmem>>, vector<2x16xf32>
    %cst_79 = arith.constant dense<0.000000e+00> : vector<4x16xf32>
    %157 = tpu.matmul %155, %156, %cst_79 {dimension_numbers = #tpu.dot_dimension_numbers<[1], [0], [0], [1], [0, 0, 1, 1], [], []>} : vector<4x2xf32>, vector<2x16xf32>, vector<4x16xf32> -> vector<4x16xf32>
    %c0_80 = arith.constant 0 : index
    %c0_81 = arith.constant 0 : index
    %158 = vector.load %arg19[%c0_80, %c0_81] : memref<1x16xf32, #tpu.memory_space<vmem>>, vector<1x16xf32>
    %159 = vector.broadcast %158 : vector<1x16xf32> to vector<4x16xf32>
    %160 = arith.addf %157, %159 : vector<4x16xf32>
    %161 = vector.extract_strided_slice %160 {offsets = [0, 0], sizes = [2, 16], strides = [1, 1]} : vector<4x16xf32> to vector<2x16xf32>
    %162 = vector.extract_strided_slice %160 {offsets = [2, 0], sizes = [2, 16], strides = [1, 1]} : vector<4x16xf32> to vector<2x16xf32>
    %163 = arith.addf %161, %162 : vector<2x16xf32>
    %164 = arith.negf %163 : vector<2x16xf32>
    %165 = math.exp %164 : vector<2x16xf32>
    %cst_82 = arith.constant 1.000000e+00 : f32
    %166 = vector.broadcast %cst_82 : f32 to vector<2x16xf32>
    %167 = arith.addf %166, %165 : vector<2x16xf32>
    %168 = arith.divf %166, %167 : vector<2x16xf32>
    %169 = tpu.concatenate %168, %168, %168, %168, %168 in 1 : vector<2x16xf32>, vector<2x16xf32>, vector<2x16xf32>, vector<2x16xf32>, vector<2x16xf32> -> vector<2x80xf32>
    %170 = arith.mulf %169, %132 : vector<2x80xf32>
    tpu.wait_dma2 semaphore(%arg28 : memref<!tpu.dma_semaphore, #tpu.memory_space<semaphore_mem>>) src(%arg20 : memref<80x1024xf32, #tpu.memory_space<any>>) dst(%arg27 : memref<80x1024xf32, #tpu.memory_space<vmem>>)
    %c0_83 = arith.constant 0 : index
    %c0_84 = arith.constant 0 : index
    %171 = vector.load %arg27[%c0_83, %c0_84] : memref<80x1024xf32, #tpu.memory_space<vmem>>, vector<80x1024xf32>
    %cst_85 = arith.constant dense<0.000000e+00> : vector<2x1024xf32>
    %172 = tpu.matmul %170, %171, %cst_85 {dimension_numbers = #tpu.dot_dimension_numbers<[1], [0], [0], [1], [0, 0, 1, 1], [], []>} : vector<2x80xf32>, vector<80x1024xf32>, vector<2x1024xf32> -> vector<2x1024xf32>
    %c0_86 = arith.constant 0 : index
    %c0_87 = arith.constant 0 : index
    %173 = vector.load %arg21[%c0_86, %c0_87] : memref<1x1024xf32, #tpu.memory_space<vmem>>, vector<1x1024xf32>
    %174 = vector.broadcast %173 : vector<1x1024xf32> to vector<2x1024xf32>
    %175 = arith.addf %172, %174 : vector<2x1024xf32>
    %cst_88 = arith.constant 0.000000e+00 : f32
    %176 = vector.broadcast %cst_88 : f32 to vector<2x1024xf32>
    %177 = arith.maximumf %175, %176 : vector<2x1024xf32>
    %c0_89 = arith.constant 0 : index
    %c0_90 = arith.constant 0 : index
    %178 = vector.load %arg22[%c0_89, %c0_90] : memref<1024x16xf32, #tpu.memory_space<vmem>>, vector<1024x16xf32>
    %cst_91 = arith.constant dense<0.000000e+00> : vector<2x16xf32>
    %179 = tpu.matmul %177, %178, %cst_91 {dimension_numbers = #tpu.dot_dimension_numbers<[1], [0], [0], [1], [0, 0, 1, 1], [], []>} : vector<2x1024xf32>, vector<1024x16xf32>, vector<2x16xf32> -> vector<2x16xf32>
    %c0_92 = arith.constant 0 : index
    %c0_93 = arith.constant 0 : index
    %180 = vector.load %arg23[%c0_92, %c0_93] : memref<1x16xf32, #tpu.memory_space<vmem>>, vector<1x16xf32>
    %181 = vector.broadcast %180 : vector<1x16xf32> to vector<2x16xf32>
    %182 = arith.addf %179, %181 : vector<2x16xf32>
    %cst_94 = arith.constant 0.000000e+00 : f32
    %183 = vector.broadcast %cst_94 : f32 to vector<2x16xf32>
    %184 = arith.maximumf %182, %183 : vector<2x16xf32>
    %c0_95 = arith.constant 0 : index
    %c0_96 = arith.constant 0 : index
    %185 = vector.load %arg24[%c0_95, %c0_96] : memref<16x4xf32, #tpu.memory_space<vmem>>, vector<16x4xf32>
    %cst_97 = arith.constant dense<0.000000e+00> : vector<2x4xf32>
    %186 = tpu.matmul %184, %185, %cst_97 {dimension_numbers = #tpu.dot_dimension_numbers<[1], [0], [0], [1], [0, 0, 1, 1], [], []>} : vector<2x16xf32>, vector<16x4xf32>, vector<2x4xf32> -> vector<2x4xf32>
    %c0_98 = arith.constant 0 : index
    %c0_99 = arith.constant 0 : index
    %187 = vector.load %arg25[%c0_98, %c0_99] : memref<1x4xf32, #tpu.memory_space<vmem>>, vector<1x4xf32>
    %188 = vector.broadcast %187 : vector<1x4xf32> to vector<2x4xf32>
    %189 = arith.addf %186, %188 : vector<2x4xf32>
    %c0_100 = arith.constant 0 : index
    %c0_101 = arith.constant 0 : index
    %190 = vector.load %arg26[%c0_100, %c0_101] : memref<2x4xf32, #tpu.memory_space<vmem>>, vector<2x4xf32>
    tpu.vector_store %arg26[%c0_100, %c0_101], %189 {strides = array<i32>} : memref<2x4xf32, #tpu.memory_space<vmem>>, vector<2x4xf32>,
    return
  }
  func.func @transform_0(%arg0: i32) -> (i32, i32) {
    %c0_i32 = arith.constant 0 : i32
    %c0_i32_0 = arith.constant 0 : i32
    %c0_i32_1 = arith.constant 0 : i32
    return %c0_i32, %c0_i32_0 : i32, i32
  }
  func.func @transform_1(%arg0: i32) -> (i32, i32) {
    %c0_i32 = arith.constant 0 : i32
    %c0_i32_0 = arith.constant 0 : i32
    %c0_i32_1 = arith.constant 0 : i32
    return %c0_i32, %c0_i32_0 : i32, i32
  }
  func.func @transform_2(%arg0: i32) -> (i32, i32) {
    %c0_i32 = arith.constant 0 : i32
    %c0_i32_0 = arith.constant 0 : i32
    %c0_i32_1 = arith.constant 0 : i32
    return %c0_i32, %c0_i32_0 : i32, i32
  }
  func.func @transform_3(%arg0: i32) -> (i32, i32) {
    %c0_i32 = arith.constant 0 : i32
    %c0_i32_0 = arith.constant 0 : i32
    %c0_i32_1 = arith.constant 0 : i32
    return %c0_i32, %c0_i32_0 : i32, i32
  }
  func.func @transform_4(%arg0: i32) -> (i32, i32) {
    %c0_i32 = arith.constant 0 : i32
    %c0_i32_0 = arith.constant 0 : i32
    %c0_i32_1 = arith.constant 0 : i32
    return %c0_i32, %c0_i32_0 : i32, i32
  }
  func.func @transform_5(%arg0: i32) -> (i32, i32) {
    %c0_i32 = arith.constant 0 : i32
    %c0_i32_0 = arith.constant 0 : i32
    %c0_i32_1 = arith.constant 0 : i32
    return %c0_i32, %c0_i32_0 : i32, i32
  }
  func.func @transform_6(%arg0: i32) -> (i32, i32) {
    %c0_i32 = arith.constant 0 : i32
    %c0_i32_0 = arith.constant 0 : i32
    %c0_i32_1 = arith.constant 0 : i32
    return %c0_i32, %c0_i32_0 : i32, i32
  }
  func.func @transform_7(%arg0: i32) -> (i32, i32) {
    %c0_i32 = arith.constant 0 : i32
    %c0_i32_0 = arith.constant 0 : i32
    %c0_i32_1 = arith.constant 0 : i32
    return %c0_i32, %c0_i32_0 : i32, i32
  }
  func.func @transform_8(%arg0: i32) -> (i32, i32) {
    %c0_i32 = arith.constant 0 : i32
    %c0_i32_0 = arith.constant 0 : i32
    %c0_i32_1 = arith.constant 0 : i32
    return %c0_i32, %c0_i32_0 : i32, i32
  }
  func.func @transform_9(%arg0: i32) -> (i32, i32) {
    %c0_i32 = arith.constant 0 : i32
    %c0_i32_0 = arith.constant 0 : i32
    %c0_i32_1 = arith.constant 0 : i32
    return %c0_i32, %c0_i32_0 : i32, i32
  }
  func.func @transform_10(%arg0: i32) -> (i32, i32) {
    %c0_i32 = arith.constant 0 : i32
    %c0_i32_0 = arith.constant 0 : i32
    %c0_i32_1 = arith.constant 0 : i32
    return %c0_i32, %c0_i32_0 : i32, i32
  }
  func.func @transform_11(%arg0: i32) -> (i32, i32) {
    %c0_i32 = arith.constant 0 : i32
    %c0_i32_0 = arith.constant 0 : i32
    %c0_i32_1 = arith.constant 0 : i32
    return %c0_i32, %c0_i32_0 : i32, i32
  }
  func.func @transform_12(%arg0: i32) -> (i32, i32) {
    %c0_i32 = arith.constant 0 : i32
    %c0_i32_0 = arith.constant 0 : i32
    %c0_i32_1 = arith.constant 0 : i32
    return %c0_i32, %c0_i32_0 : i32, i32
  }
  func.func @transform_13(%arg0: i32) -> (i32, i32) {
    %c0_i32 = arith.constant 0 : i32
    %c0_i32_0 = arith.constant 0 : i32
    %c0_i32_1 = arith.constant 0 : i32
    return %c0_i32, %c0_i32_0 : i32, i32
  }
  func.func @transform_14(%arg0: i32) -> (i32, i32) {
    %c0_i32 = arith.constant 0 : i32
    %c0_i32_0 = arith.constant 0 : i32
    %c0_i32_1 = arith.constant 0 : i32
    return %c0_i32, %c0_i32_0 : i32, i32
  }
  func.func @transform_15(%arg0: i32) -> (i32, i32) {
    %c0_i32 = arith.constant 0 : i32
    %c0_i32_0 = arith.constant 0 : i32
    %c0_i32_1 = arith.constant 0 : i32
    return %c0_i32, %c0_i32_0 : i32, i32
  }
  func.func @transform_16(%arg0: i32) -> (i32, i32) {
    %c0_i32 = arith.constant 0 : i32
    %c0_i32_0 = arith.constant 0 : i32
    %c0_i32_1 = arith.constant 0 : i32
    return %c0_i32, %c0_i32_0 : i32, i32
  }
  func.func @transform_17(%arg0: i32) -> (i32, i32) {
    %c0_i32 = arith.constant 0 : i32
    %c0_i32_0 = arith.constant 0 : i32
    %c0_i32_1 = arith.constant 0 : i32
    return %c0_i32, %c0_i32_0 : i32, i32
  }
  func.func @transform_18(%arg0: i32) -> (i32, i32) {
    %c0_i32 = arith.constant 0 : i32
    %c0_i32_0 = arith.constant 0 : i32
    %c0_i32_1 = arith.constant 0 : i32
    return %c0_i32, %c0_i32_0 : i32, i32
  }
  func.func @transform_20(%arg0: i32) -> (i32, i32) {
    %c0_i32 = arith.constant 0 : i32
    %c0_i32_0 = arith.constant 0 : i32
    %c0_i32_1 = arith.constant 0 : i32
    return %c0_i32, %c0_i32_0 : i32, i32
  }
  func.func @transform_21(%arg0: i32) -> (i32, i32) {
    %c0_i32 = arith.constant 0 : i32
    %c0_i32_0 = arith.constant 0 : i32
    %c0_i32_1 = arith.constant 0 : i32
    return %c0_i32, %c0_i32_0 : i32, i32
  }
  func.func @transform_22(%arg0: i32) -> (i32, i32) {
    %c0_i32 = arith.constant 0 : i32
    %c0_i32_0 = arith.constant 0 : i32
    %c0_i32_1 = arith.constant 0 : i32
    return %c0_i32, %c0_i32_0 : i32, i32
  }
  func.func @transform_23(%arg0: i32) -> (i32, i32) {
    %c0_i32 = arith.constant 0 : i32
    %c0_i32_0 = arith.constant 0 : i32
    %c0_i32_1 = arith.constant 0 : i32
    return %c0_i32, %c0_i32_0 : i32, i32
  }
  func.func @transform_24(%arg0: i32) -> (i32, i32) {
    %c0_i32 = arith.constant 0 : i32
    %c0_i32_0 = arith.constant 0 : i32
    %c0_i32_1 = arith.constant 0 : i32
    return %c0_i32, %c0_i32_0 : i32, i32
  }
  func.func @transform_25(%arg0: i32) -> (i32, i32) {
    %c0_i32 = arith.constant 0 : i32
    %c0_i32_0 = arith.constant 0 : i32
    %c0_i32_1 = arith.constant 0 : i32
    return %c0_i32, %c0_i32_0 : i32, i32
  }
}

</mosaic_0001>

<bundles_post_ra>
// kernel: mainnet_forward.1
= control target key start
LH: loop header
LB: loop body
LE: loop exit
PB: predicated region body
PF: predicated region fallthrough
CT: control target
= control target key end

     0   :  { %s6165_s0 = inlined_call_operand.vmem [shape: f32[2,180], index: 0, kind: input, shape index: {}]   ;;  %s6166_s1 = inlined_call_operand.vmem [shape: f32[180,360], index: 1, kind: input, shape index: {}]   ;;  %s6167_s2 = inlined_call_operand.vmem [shape: f32[1,360], index: 2, kind: input, shape index: {}]   ;;  %s6168_s3 = inlined_call_operand.vmem [shape: f32[360,8], index: 3, kind: input, shape index: {}]   ;;  %s6169_s4 = inlined_call_operand.vmem [shape: f32[8,360], index: 4, kind: input, shape index: {}]   ;;  %s6170_s5 = inlined_call_operand.vmem [shape: f32[1,8], index: 5, kind: input, shape index: {}]   ;;  %s6171_s6 = inlined_call_operand.vmem [shape: f32[1,8], index: 6, kind: input, shape index: {}]   ;;  %s6172_s7 = inlined_call_operand.vmem [shape: f32[120,240], index: 7, kind: input, shape index: {}]   ;;  %s6173_s8 = inlined_call_operand.vmem [shape: f32[1,240], index: 8, kind: input, shape index: {}]   ;;  %s6174_s9 = inlined_call_operand.vmem [shape: f32[240,16], index: 9, kind: input, shape index: {}]   ;;  %s6175_s10 = inlined_call_operand.vmem [shape: f32[16,240], index: 10, kind: input, shape index: {}]   ;;  %s6176_s11 = inlined_call_operand.vmem [shape: f32[1,16], index: 11, kind: input, shape index: {}]   ;;  %s6177_s12 = inlined_call_operand.vmem [shape: f32[1,16], index: 12, kind: input, shape index: {}]   ;;  %s6178_s13 = inlined_call_operand.vmem [shape: f32[10,5], index: 13, kind: input, shape index: {}]   ;;  %s6179_s14 = inlined_call_operand.vmem [shape: f32[5,80], index: 14, kind: input, shape index: {}]   ;;  %s6180_s15 = inlined_call_operand.vmem [shape: f32[16,2], index: 15, kind: input, shape index: {}]   ;;  %s6181_s16 = inlined_call_operand.vmem [shape: f32[1,2], index: 16, kind: input, shape index: {}]   ;;  %s6182_s17 = inlined_call_operand.vmem [shape: f32[2,16], index: 17, kind: input, shape index: {}]   ;;  %s6183_s18 = inlined_call_operand.vmem [shape: f32[1,16], index: 18, kind: input, shape index: {}]   ;;  %s6184_s19 = inlined_call_operand.vmem [shape: f32[80,1024], index: 19, kind: input, shape index: {}]   ;;  %s6185_s20 = inlined_call_operand.vmem [shape: f32[1,1024], index: 20, kind: input, shape index: {}]   ;;  %s6186_s21 = inlined_call_operand.vmem [shape: f32[1024,16], index: 21, kind: input, shape index: {}]   ;;  %s6187_s22 = inlined_call_operand.vmem [shape: f32[1,16], index: 22, kind: input, shape index: {}]   ;;  %s6188_s23 = inlined_call_operand.vmem [shape: f32[16,4], index: 23, kind: input, shape index: {}]   ;;  %s6189_s24 = inlined_call_operand.vmem [shape: f32[1,4], index: 24, kind: input, shape index: {}]   ;;  %s6190_s25 = inlined_call_operand.hbm [shape: f32[2,4], index: 25, kind: output, shape index: {}]  }
   0x1   :  { %6212 = sst [smem:[#allocation97_spill]] %s6165_s0 }
   0x2   :  { %6213 = sst [smem:[#allocation98_spill]] %s6166_s1 }
   0x3   :  { %6214 = sst [smem:[#allocation99_spill]] %s6167_s2 }
   0x4   :  { %6215 = sst [smem:[#allocation100_spill]] %s6168_s3 }
   0x5   :  { %6216 = sst [smem:[#allocation101_spill]] %s6169_s4 }
   0x6   :  { %6217 = sst [smem:[#allocation102_spill]] %s6170_s5 }
   0x7   :  { %6218 = sst [smem:[#allocation103_spill]] %s6171_s6 }
   0x8   :  { %6219 = sst [smem:[#allocation104_spill]] %s6172_s7 }
   0x9   :  { %6220 = sst [smem:[#allocation105_spill]] %s6173_s8 }
   0xa   :  { %6221 = sst [smem:[#allocation106_spill]] %s6174_s9 }
   0xb   :  { %30 = vsyncpa [#allocation5], 0  ;;  %v4029_v0 = vld [vmem:[%s6184_s19] sm:$0xff]  ;;  %v4034_v1 = vld [vmem:[%s6184_s19 + $0x8] sm:$0xff] }
   0xc   :  { %6222 = vst [vmem:[#allocation9_spill] sm:$0xff] %v4029_v0  ;;  %6223 = vst [vmem:[#allocation10_spill] sm:$0xff] %v4034_v1  ;;  %v4039_v2 = vld [vmem:[%s6184_s19 + $0x10] sm:$0xff]  ;;  %v4044_v3 = vld [vmem:[%s6184_s19 + $0x18] sm:$0xff] }
   0xd   :  { %6224 = vst [vmem:[#allocation11_spill] sm:$0xff] %v4039_v2  ;;  %6225 = vst [vmem:[#allocation12_spill] sm:$0xff] %v4044_v3  ;;  %v4049_v4 = vld [vmem:[%s6184_s19 + $0x20] sm:$0xff]  ;;  %v4054_v5 = vld [vmem:[%s6184_s19 + $0x28] sm:$0xff] }
   0xe   :  { %6226 = vst [vmem:[#allocation13_spill] sm:$0xff] %v4049_v4  ;;  %6227 = vst [vmem:[#allocation14_spill] sm:$0xff] %v4054_v5  ;;  %v4059_v6 = vld [vmem:[%s6184_s19 + $0x30] sm:$0xff]  ;;  %v4064_v7 = vld [vmem:[%s6184_s19 + $0x38] sm:$0xff] }
   0xf   :  { %6228 = vst [vmem:[#allocation15_spill] sm:$0xff] %v4059_v6  ;;  %6229 = vst [vmem:[#allocation16_spill] sm:$0xff] %v4064_v7  ;;  %v4069_v8 = vld [vmem:[%s6184_s19 + $0x40] sm:$0xff]  ;;  %v4074_v9 = vld [vmem:[%s6184_s19 + $0x48] sm:$0xff] }
  0x10   :  { %6230 = vst [vmem:[#allocation17_spill] sm:$0xff] %v4069_v8  ;;  %6231 = vst [vmem:[#allocation18_spill] sm:$0xff] %v4074_v9  ;;  %v4079_v10 = vld [vmem:[%s6184_s19 + $0x50] sm:$0xff]  ;;  %v4084_v11 = vld [vmem:[%s6184_s19 + $0x58] sm:$0xff] }
  0x11   :  { %6232 = vst [vmem:[#allocation19_spill] sm:$0xff] %v4079_v10  ;;  %6233 = vst [vmem:[#allocation20_spill] sm:$0xff] %v4084_v11  ;;  %v4089_v12 = vld [vmem:[%s6184_s19 + $0x60] sm:$0xff]  ;;  %v4094_v13 = vld [vmem:[%s6184_s19 + $0x68] sm:$0xff] }
  0x12   :  { %6234 = vst [vmem:[#allocation21_spill] sm:$0xff] %v4089_v12  ;;  %6235 = vst [vmem:[#allocation22_spill] sm:$0xff] %v4094_v13  ;;  %v4099_v14 = vld [vmem:[%s6184_s19 + $0x70] sm:$0xff]  ;;  %v4104_v15 = vld [vmem:[%s6184_s19 + $0x78] sm:$0xff] }
  0x13   :  { %6236 = vst [vmem:[#allocation23_spill] sm:$0xff] %v4099_v14  ;;  %6237 = vst [vmem:[#allocation24_spill] sm:$0xff] %v4104_v15  ;;  %v4109_v16 = vld [vmem:[%s6184_s19 + $0x80] sm:$0xff]  ;;  %v4114_v17 = vld [vmem:[%s6184_s19 + $0x88] sm:$0xff] }
  0x14   :  { %6238 = vst [vmem:[#allocation25_spill] sm:$0xff] %v4109_v16  ;;  %6239 = vst [vmem:[#allocation26_spill] sm:$0xff] %v4114_v17  ;;  %v4119_v18 = vld [vmem:[%s6184_s19 + $0x90] sm:$0xff]  ;;  %v4124_v19 = vld [vmem:[%s6184_s19 + $0x98] sm:$0xff] }
  0x15   :  { %6240 = vst [vmem:[#allocation27_spill] sm:$0xff] %v4119_v18  ;;  %6241 = vst [vmem:[#allocation28_spill] sm:$0xff] %v4124_v19  ;;  %v4129_v20 = vld [vmem:[%s6184_s19 + $0xa0] sm:$0xff]  ;;  %v4134_v21 = vld [vmem:[%s6184_s19 + $0xa8] sm:$0xff] }
  0x16   :  { %6242 = vst [vmem:[#allocation29_spill] sm:$0xff] %v4129_v20  ;;  %6243 = vst [vmem:[#allocation30_spill] sm:$0xff] %v4134_v21  ;;  %v4139_v22 = vld [vmem:[%s6184_s19 + $0xb0] sm:$0xff]  ;;  %v4144_v23 = vld [vmem:[%s6184_s19 + $0xb8] sm:$0xff] }
  0x17   :  { %6244 = vst [vmem:[#allocation31_spill] sm:$0xff] %v4139_v22  ;;  %6245 = vst [vmem:[#allocation32_spill] sm:$0xff] %v4144_v23  ;;  %v4149_v24 = vld [vmem:[%s6184_s19 + $0xc0] sm:$0xff]  ;;  %v4154_v25 = vld [vmem:[%s6184_s19 + $0xc8] sm:$0xff] }
  0x18   :  { %6246 = vst [vmem:[#allocation33_spill] sm:$0xff] %v4149_v24  ;;  %6247 = vst [vmem:[#allocation34_spill] sm:$0xff] %v4154_v25  ;;  %v4159_v26 = vld [vmem:[%s6184_s19 + $0xd0] sm:$0xff]  ;;  %v4164_v27 = vld [vmem:[%s6184_s19 + $0xd8] sm:$0xff] }
  0x19   :  { %6248 = vst [vmem:[#allocation35_spill] sm:$0xff] %v4159_v26  ;;  %6249 = vst [vmem:[#allocation36_spill] sm:$0xff] %v4164_v27  ;;  %v4169_v28 = vld [vmem:[%s6184_s19 + $0xe0] sm:$0xff]  ;;  %v4174_v29 = vld [vmem:[%s6184_s19 + $0xe8] sm:$0xff] }
  0x1a   :  { %6250 = vst [vmem:[#allocation37_spill] sm:$0xff] %v4169_v28  ;;  %6251 = vst [vmem:[#allocation38_spill] sm:$0xff] %v4174_v29  ;;  %v4179_v30 = vld [vmem:[%s6184_s19 + $0xf0] sm:$0xff]  ;;  %v4184_v31 = vld [vmem:[%s6184_s19 + $0xf8] sm:$0xff] }
  0x1b   :  { %6252 = vst [vmem:[#allocation39_spill] sm:$0xff] %v4179_v30  ;;  %6253 = vst [vmem:[#allocation40_spill] sm:$0xff] %v4184_v31  ;;  %v4189_v32 = vld [vmem:[%s6184_s19 + $0x100] sm:$0xff]  ;;  %v4194_v33 = vld [vmem:[%s6184_s19 + $0x108] sm:$0xff] }
  0x1c   :  { %6254 = vst [vmem:[#allocation41_spill] sm:$0xff] %v4189_v32  ;;  %6255 = vst [vmem:[#allocation42_spill] sm:$0xff] %v4194_v33  ;;  %v4199_v34 = vld [vmem:[%s6184_s19 + $0x110] sm:$0xff]  ;;  %v4204_v35 = vld [vmem:[%s6184_s19 + $0x118] sm:$0xff] }
  0x1d   :  { %6256 = vst [vmem:[#allocation43_spill] sm:$0xff] %v4199_v34  ;;  %6257 = vst [vmem:[#allocation44_spill] sm:$0xff] %v4204_v35  ;;  %v4209_v36 = vld [vmem:[%s6184_s19 + $0x120] sm:$0xff]  ;;  %v4214_v37 = vld [vmem:[%s6184_s19 + $0x128] sm:$0xff] }
  0x1e   :  { %6258 = vst [vmem:[#allocation45_spill] sm:$0xff] %v4209_v36  ;;  %6259 = vst [vmem:[#allocation46_spill] sm:$0xff] %v4214_v37  ;;  %v4219_v38 = vld [vmem:[%s6184_s19 + $0x130] sm:$0xff]  ;;  %v4224_v39 = vld [vmem:[%s6184_s19 + $0x138] sm:$0xff] }
  0x1f   :  { %6260 = vst [vmem:[#allocation47_spill] sm:$0xff] %v4219_v38  ;;  %6261 = vst [vmem:[#allocation48_spill] sm:$0xff] %v4224_v39  ;;  %v4229_v40 = vld [vmem:[%s6184_s19 + $0x140] sm:$0xff]  ;;  %v4234_v41 = vld [vmem:[%s6184_s19 + $0x148] sm:$0xff] }
  0x20   :  { %6262 = vst [vmem:[#allocation49_spill] sm:$0xff] %v4229_v40  ;;  %6263 = vst [vmem:[#allocation50_spill] sm:$0xff] %v4234_v41  ;;  %v4239_v42 = vld [vmem:[%s6184_s19 + $0x150] sm:$0xff]  ;;  %v4244_v43 = vld [vmem:[%s6184_s19 + $0x158] sm:$0xff] }
  0x21   :  { %6264 = vst [vmem:[#allocation51_spill] sm:$0xff] %v4239_v42  ;;  %6265 = vst [vmem:[#allocation52_spill] sm:$0xff] %v4244_v43  ;;  %v4249_v44 = vld [vmem:[%s6184_s19 + $0x160] sm:$0xff]  ;;  %v4254_v45 = vld [vmem:[%s6184_s19 + $0x168] sm:$0xff] }
  0x22   :  { %6266 = vst [vmem:[#allocation53_spill] sm:$0xff] %v4249_v44  ;;  %6267 = vst [vmem:[#allocation54_spill] sm:$0xff] %v4254_v45  ;;  %v4259_v46 = vld [vmem:[%s6184_s19 + $0x170] sm:$0xff]  ;;  %v4264_v47 = vld [vmem:[%s6184_s19 + $0x178] sm:$0xff] }
  0x23   :  { %6268 = vst [vmem:[#allocation55_spill] sm:$0xff] %v4259_v46  ;;  %6269 = vst [vmem:[#allocation56_spill] sm:$0xff] %v4264_v47  ;;  %v4269_v48 = vld [vmem:[%s6184_s19 + $0x180] sm:$0xff]  ;;  %v4274_v49 = vld [vmem:[%s6184_s19 + $0x188] sm:$0xff] }
  0x24   :  { %6270 = vst [vmem:[#allocation57_spill] sm:$0xff] %v4269_v48  ;;  %6271 = vst [vmem:[#allocation58_spill] sm:$0xff] %v4274_v49  ;;  %v4279_v50 = vld [vmem:[%s6184_s19 + $0x190] sm:$0xff]  ;;  %v4284_v51 = vld [vmem:[%s6184_s19 + $0x198] sm:$0xff] }
  0x25   :  { %6272 = vst [vmem:[#allocation59_spill] sm:$0xff] %v4279_v50  ;;  %6273 = vst [vmem:[#allocation60_spill] sm:$0xff] %v4284_v51  ;;  %v4289_v52 = vld [vmem:[%s6184_s19 + $0x1a0] sm:$0xff]  ;;  %v4294_v53 = vld [vmem:[%s6184_s19 + $0x1a8] sm:$0xff] }
  0x26   :  { %6274 = vst [vmem:[#allocation61_spill] sm:$0xff] %v4289_v52  ;;  %6275 = vst [vmem:[#allocation62_spill] sm:$0xff] %v4294_v53  ;;  %v4299_v54 = vld [vmem:[%s6184_s19 + $0x1b0] sm:$0xff]  ;;  %v4304_v55 = vld [vmem:[%s6184_s19 + $0x1b8] sm:$0xff] }
  0x27   :  { %6276 = vst [vmem:[#allocation63_spill] sm:$0xff] %v4299_v54  ;;  %6277 = vst [vmem:[#allocation64_spill] sm:$0xff] %v4304_v55  ;;  %v4309_v56 = vld [vmem:[%s6184_s19 + $0x1c0] sm:$0xff]  ;;  %v4314_v57 = vld [vmem:[%s6184_s19 + $0x1c8] sm:$0xff] }
  0x28   :  { %6278 = vst [vmem:[#allocation65_spill] sm:$0xff] %v4309_v56  ;;  %6279 = vst [vmem:[#allocation66_spill] sm:$0xff] %v4314_v57  ;;  %v4319_v58 = vld [vmem:[%s6184_s19 + $0x1d0] sm:$0xff]  ;;  %v4324_v59 = vld [vmem:[%s6184_s19 + $0x1d8] sm:$0xff] }
  0x29   :  { %6280 = vst [vmem:[#allocation67_spill] sm:$0xff] %v4319_v58  ;;  %6281 = vst [vmem:[#allocation68_spill] sm:$0xff] %v4324_v59  ;;  %v4329_v60 = vld [vmem:[%s6184_s19 + $0x1e0] sm:$0xff]  ;;  %v4334_v61 = vld [vmem:[%s6184_s19 + $0x1e8] sm:$0xff] }
  0x2a   :  { %6282 = vst [vmem:[#allocation69_spill] sm:$0xff] %v4329_v60  ;;  %6283 = vst [vmem:[#allocation70_spill] sm:$0xff] %v4334_v61  ;;  %v4339_v62 = vld [vmem:[%s6184_s19 + $0x1f0] sm:$0xff]  ;;  %v4344_v63 = vld [vmem:[%s6184_s19 + $0x1f8] sm:$0xff] }
  0x2b   :  { %6284 = vst [vmem:[#allocation71_spill] sm:$0xff] %v4339_v62  ;;  %6285 = vst [vmem:[#allocation72_spill] sm:$0xff] %v4344_v63  ;;  %v4349_v6 = vld [vmem:[%s6184_s19 + $0x200] sm:$0xff]  ;;  %v4354_v7 = vld [vmem:[%s6184_s19 + $0x208] sm:$0xff] }
  0x2c   :  { %6286 = vst [vmem:[#allocation73_spill] sm:$0xff] %v4349_v6  ;;  %6287 = vst [vmem:[#allocation74_spill] sm:$0xff] %v4354_v7  ;;  %v4359_v4 = vld [vmem:[%s6184_s19 + $0x210] sm:$0xff]  ;;  %v4364_v14 = vld [vmem:[%s6184_s19 + $0x218] sm:$0xff] }
  0x2d   :  { %6288 = vst [vmem:[#allocation75_spill] sm:$0xff] %v4359_v4  ;;  %6289 = vst [vmem:[#allocation76_spill] sm:$0xff] %v4364_v14  ;;  %v4369_v5 = vld [vmem:[%s6184_s19 + $0x220] sm:$0xff]  ;;  %v4374_v12 = vld [vmem:[%s6184_s19 + $0x228] sm:$0xff] }
  0x2e   :  { %6290 = vst [vmem:[#allocation77_spill] sm:$0xff] %v4369_v5  ;;  %6291 = vst [vmem:[#allocation78_spill] sm:$0xff] %v4374_v12  ;;  %v4379_v15 = vld [vmem:[%s6184_s19 + $0x230] sm:$0xff]  ;;  %v4384_v13 = vld [vmem:[%s6184_s19 + $0x238] sm:$0xff] }
  0x2f   :  { %6292 = vst [vmem:[#allocation79_spill] sm:$0xff] %v4379_v15  ;;  %6293 = vst [vmem:[#allocation80_spill] sm:$0xff] %v4384_v13  ;;  %v4389_v22 = vld [vmem:[%s6184_s19 + $0x240] sm:$0xff]  ;;  %v4394_v20 = vld [vmem:[%s6184_s19 + $0x248] sm:$0xff] }
  0x30   :  { %6294 = vst [vmem:[#allocation81_spill] sm:$0xff] %v4389_v22  ;;  %6295 = vst [vmem:[#allocation82_spill] sm:$0xff] %v4394_v20  ;;  %v4399_v23 = vld [vmem:[%s6184_s19 + $0x250] sm:$0xff]  ;;  %v4404_v21 = vld [vmem:[%s6184_s19 + $0x258] sm:$0xff] }
  0x31   :  { %6296 = vst [vmem:[#allocation83_spill] sm:$0xff] %v4399_v23  ;;  %6297 = vst [vmem:[#allocation84_spill] sm:$0xff] %v4404_v21  ;;  %v4409_v30 = vld [vmem:[%s6184_s19 + $0x260] sm:$0xff]  ;;  %v4414_v28 = vld [vmem:[%s6184_s19 + $0x268] sm:$0xff] }
  0x32   :  { %6298 = vst [vmem:[#allocation85_spill] sm:$0xff] %v4409_v30  ;;  %6299 = vst [vmem:[#allocation86_spill] sm:$0xff] %v4414_v28  ;;  %v4419_v31 = vld [vmem:[%s6184_s19 + $0x270] sm:$0xff]  ;;  %v4424_v29 = vld [vmem:[%s6184_s19 + $0x278] sm:$0xff] }
  0x33   :  { %6300 = vst [vmem:[#allocation87_spill] sm:$0xff] %v4419_v31  ;;  %6301 = vst [vmem:[#allocation88_spill] sm:$0xff] %v4424_v29 }
  0x34   :  { %279 = vsyncadd [#allocation3], 10240  ;;  %s6302_s9 = sld [smem:[#allocation98_spill]]  ;;  %v6196_v39 = vmov 0.0   ;;  %v6303_v47 = vmov 0.0   ;;  %vm428_vm0 = vcmask 1043456   ;;  %v400_v43 = vlaneseq }
  0x35   :  { %509 = vmatprep.subr.mxu1 %v6196_v39  ;;  %s6304_s30 = sld [smem:[#allocation97_spill]]  ;;  %vm425_vm1 = vcmask 424960   ;;  %vm3885_vm2 = vmmov 0   ;;  %vm579_vm3 = vcmask 1041408   ;;  %vm594_vm4 = vcmask 844800   ;;  %s3887_s4 = smov 16  }
  0x36   :  { %v4945_v41 = vshrl.u32 %v400_v43, 7  ;;  %s6311_s7 = sld [smem:[#allocation99_spill]]  ;;  %vm602_vm5 = vcmask 850944   ;;  %vm747_vm6 = vcmask 64512   ;;  %vm1417_vm7 = vcmask 130048   ;;  %s3891_s1 = smov 64  }
  0x37   :  { %s6315_s26 = sld [smem:[#allocation101_spill]]  ;;  %vm1497_vm8 = vcmask 982016   ;;  %vm1579_vm9 = vcmask 910336   ;;  %vm1587_vm10 = vcmask 916480   ;;  %vm2019_vm11 = vcmask 392192  }
  0x38   :  { %6309 = vst [vmem:[#allocation92_spill] sm:$0xff] %v4945_v41  ;;  %v4948_v50 = vsub.s32 0, %v4945_v41  ;;  %v6200_v48 = vsub.s32 2, %v4945_v41  ;;  %v4955_v49 = vsub.s32 1, %v4945_v41  ;;  %s6322_s5 = sld [smem:[#allocation102_spill]]  ;;  %vm2073_vm12 = vcmask 255104  }
  0x39   :  { %s6323_s2 = sld [smem:[#allocation103_spill]]  ;;  %vm2077_vm13 = vcmask 386304   ;;  %vm2027_vm14 = vcmask 123904   ;;  %vm2085_vm15 = vcmask 648704  }
  0x3a   :  { %v375_v38 = vld [vmem:[%s6302_s9 + $0x170] sm:$0xff]  ;;  %v374_v36 = vld [vmem:[%s6302_s9 + $0x168] sm:$0xff]  ;;  %v376_v37 = vld [vmem:[%s6302_s9 + $0x178] sm:$0xff]  ;;  %6310 = vst [vmem:[#allocation93_spill] sm:$0xff] %v4948_v50 }
  0x3b   :  { %438 = vmatprep.subr.mxu0 %v375_v38  ;;  %v372_v46 = vld [vmem:[%s6302_s9 + $0x158] sm:$0xff]  ;;  %v371_v44 = vld [vmem:[%s6302_s9 + $0x150] sm:$0xff]  ;;  %510 = vmatpush1.msra.mxu1 %v376_v37  ;;  %v373_v38 = vld [vmem:[%s6302_s9 + $0x160] sm:$0xff]  ;;  %6312 = vst [vmem:[#allocation94_spill] sm:$0xff] %v4955_v49 }
  0x3c   :  { %439 = vmatpush1.msra.mxu0 %v374_v36  ;;  %v369_v39 = vld [vmem:[%s6302_s9 + $0x140] sm:$0xff]  ;;  %511 = vmatprep.subr.mxu1 %v6303_v47  ;;  %v368_v45 = vld [vmem:[%s6302_s9 + $0x138] sm:$0xff]  ;;  %v370_v36 = vld [vmem:[%s6302_s9 + $0x148] sm:$0xff] }
  0x3d   :  { %440 = vmatprep.subr.mxu0 %v372_v46  ;;  %512 = vmatpush1.msra.mxu1 %v373_v38  ;;  %v366_v37 = vld [vmem:[%s6302_s9 + $0x128] sm:$0xff]  ;;  %v365_v46 = vld [vmem:[%s6302_s9 + $0x120] sm:$0xff]  ;;  %v367_v54 = vld [vmem:[%s6302_s9 + $0x130] sm:$0xff] }
  0x3e   :  { %441 = vmatpush1.msra.mxu0 %v371_v44  ;;  %513 = vmatprep.subr.mxu1 %v6303_v47  ;;  %v363_v44 = vld [vmem:[%s6302_s9 + $0x110] sm:$0xff]  ;;  %v364_v38 = vld [vmem:[%s6302_s9 + $0x118] sm:$0xff]  ;;  %v382_v52 = vld [vmem:[%s6302_s9 + $0x1a8] sm:$0xff] }
  0x3f   :  { %442 = vmatprep.subr.mxu0 %v369_v39  ;;  %514 = vmatpush1.msra.mxu1 %v370_v36  ;;  %v362_v39 = vld [vmem:[%s6302_s9 + $0x108] sm:$0xff]  ;;  %v359_v36 = vld [vmem:[%s6302_s9 + $0xf0] sm:$0xff]  ;;  %v398_v51 = vld [vmem:[%s6311_s7] sm:$0x7]  ;;  %s6324_s7 = sld [smem:[#allocation104_spill]] }
  0x40   :  { %443 = vmatpush1.msra.mxu0 %v368_v45  ;;  %515 = vmatprep.subr.mxu1 %v6303_v47  ;;  %v360_v45 = vld [vmem:[%s6302_s9 + $0xf8] sm:$0xff]  ;;  %v403_v58 = vrot.slane %v398_v51, %v4948_v50  ;;  %v407_v43 = vrot.slane %v398_v51, %v4955_v49 }
  0x41   :  { %444 = vmatprep.subr.mxu0 %v366_v37  ;;  %516 = vmatpush1.msra.mxu1 %v367_v54  ;;  %v361_v37 = vld [vmem:[%s6302_s9 + $0x100] sm:$0xff] }
  0x42   :  { %445 = vmatpush1.msra.mxu0 %v365_v46  ;;  %517 = vmatprep.subr.mxu1 %v6303_v47  ;;  %v357_v54 = vld [vmem:[%s6302_s9 + $0xe0] sm:$0xff]  ;;  %v356_v46 = vld [vmem:[%s6302_s9 + $0xd8] sm:$0xff] }
  0x43   :  { %446 = vmatprep.subr.mxu0 %v363_v44  ;;  %518 = vmatpush1.msra.mxu1 %v364_v38  ;;  %v358_v44 = vld [vmem:[%s6302_s9 + $0xe8] sm:$0xff]  ;;  %v353_v38 = vld [vmem:[%s6302_s9 + $0xc0] sm:$0xff] }
  0x44   :  { %447 = vmatpush1.msra.mxu0 %v362_v39  ;;  %519 = vmatprep.subr.mxu1 %v6303_v47  ;;  %v354_v39 = vld [vmem:[%s6302_s9 + $0xc8] sm:$0xff] }
  0x45   :  { %448 = vmatprep.subr.mxu0 %v360_v45  ;;  %520 = vmatpush1.msra.mxu1 %v361_v37  ;;  %v355_v45 = vld [vmem:[%s6302_s9 + $0xd0] sm:$0xff]  ;;  %v350_v37 = vld [vmem:[%s6302_s9 + $0xa8] sm:$0xff] }
  0x46   :  { %449 = vmatpush1.msra.mxu0 %v359_v36  ;;  %521 = vmatprep.subr.mxu1 %v6303_v47  ;;  %v351_v36 = vld [vmem:[%s6302_s9 + $0xb0] sm:$0xff] }
  0x47   :  { %450 = vmatprep.subr.mxu0 %v357_v54  ;;  %522 = vmatpush1.msra.mxu1 %v358_v44  ;;  %v352_v54 = vld [vmem:[%s6302_s9 + $0xb8] sm:$0xff]  ;;  %v347_v44 = vld [vmem:[%s6302_s9 + $0x90] sm:$0xff] }
  0x48   :  { %451 = vmatpush1.msra.mxu0 %v356_v46  ;;  %523 = vmatprep.subr.mxu1 %v6303_v47  ;;  %v348_v46 = vld [vmem:[%s6302_s9 + $0x98] sm:$0xff] }
  0x49   :  { %452 = vmatprep.subr.mxu0 %v354_v39  ;;  %524 = vmatpush1.msra.mxu1 %v355_v45  ;;  %v349_v39 = vld [vmem:[%s6302_s9 + $0xa0] sm:$0xff]  ;;  %v344_v45 = vld [vmem:[%s6302_s9 + $0x78] sm:$0xff] }
  0x4a   :  { %453 = vmatpush1.msra.mxu0 %v353_v38  ;;  %525 = vmatprep.subr.mxu1 %v6303_v47  ;;  %v345_v38 = vld [vmem:[%s6302_s9 + $0x80] sm:$0xff] }
  0x4b   :  { %454 = vmatprep.subr.mxu0 %v351_v36  ;;  %526 = vmatpush1.msra.mxu1 %v352_v54  ;;  %v346_v36 = vld [vmem:[%s6302_s9 + $0x88] sm:$0xff]  ;;  %v341_v54 = vld [vmem:[%s6302_s9 + $0x60] sm:$0xff] }
  0x4c   :  { %455 = vmatpush1.msra.mxu0 %v350_v37  ;;  %527 = vmatprep.subr.mxu1 %v6303_v47  ;;  %v342_v37 = vld [vmem:[%s6302_s9 + $0x68] sm:$0xff] }
  0x4d   :  { %456 = vmatprep.subr.mxu0 %v348_v46  ;;  %528 = vmatpush1.msra.mxu1 %v349_v39  ;;  %v343_v46 = vld [vmem:[%s6302_s9 + $0x70] sm:$0xff]  ;;  %v338_v39 = vld [vmem:[%s6302_s9 + $0x48] sm:$0xff] }
  0x4e   :  { %457 = vmatpush1.msra.mxu0 %v347_v44  ;;  %529 = vmatprep.subr.mxu1 %v6303_v47  ;;  %v339_v44 = vld [vmem:[%s6302_s9 + $0x50] sm:$0xff] }
  0x4f   :  { %458 = vmatprep.subr.mxu0 %v345_v38  ;;  %530 = vmatpush1.msra.mxu1 %v346_v36  ;;  %v340_v38 = vld [vmem:[%s6302_s9 + $0x58] sm:$0xff]  ;;  %v335_v36 = vld [vmem:[%s6302_s9 + $0x30] sm:$0xff] }
  0x50   :  { %459 = vmatpush1.msra.mxu0 %v344_v45  ;;  %531 = vmatprep.subr.mxu1 %v6303_v47  ;;  %v336_v45 = vld [vmem:[%s6302_s9 + $0x38] sm:$0xff] }
  0x51   :  { %460 = vmatprep.subr.mxu0 %v342_v37  ;;  %532 = vmatpush1.msra.mxu1 %v343_v46  ;;  %v337_v37 = vld [vmem:[%s6302_s9 + $0x40] sm:$0xff]  ;;  %v332_v46 = vld [vmem:[%s6302_s9 + $0x18] sm:$0xff] }
  0x52   :  { %461 = vmatpush1.msra.mxu0 %v341_v54  ;;  %533 = vmatprep.subr.mxu1 %v6303_v47  ;;  %v333_v54 = vld [vmem:[%s6302_s9 + $0x20] sm:$0xff] }
  0x53   :  { %462 = vmatprep.subr.mxu0 %v339_v44  ;;  %534 = vmatpush1.msra.mxu1 %v340_v38  ;;  %v334_v44 = vld [vmem:[%s6302_s9 + $0x28] sm:$0xff]  ;;  %v329_v38 = vld [vmem:[%s6302_s9] sm:$0xff] }
  0x54   :  { %463 = vmatpush1.msra.mxu0 %v338_v39  ;;  %535 = vmatprep.subr.mxu1 %v6303_v47  ;;  %v330_v39 = vld [vmem:[%s6302_s9 + $0x8] sm:$0xff] }
  0x55   :  { %464 = vmatprep.subr.mxu0 %v336_v45  ;;  %536 = vmatpush1.msra.mxu1 %v337_v37  ;;  %v331_v45 = vld [vmem:[%s6302_s9 + $0x10] sm:$0xff] }
  0x56   :  { %465 = vmatpush1.msra.mxu0 %v335_v36  ;;  %537 = vmatprep.subr.mxu1 %v6303_v47  ;;  %v396_v36 = vld [vmem:[%s6302_s9 + $0x218] sm:$0xf]  ;;  %v395_v37 = vld [vmem:[%s6302_s9 + $0x210] sm:$0xf] }
  0x57   :  { %466 = vmatprep.subr.mxu0 %v333_v54  ;;  %538 = vmatpush1.msra.mxu1 %v334_v44  ;;  %v397_v54 = vld [vmem:[%s6302_s9 + $0x220] sm:$0xf]  ;;  %v392_v44 = vld [vmem:[%s6302_s9 + $0x1f8] sm:$0xff] }
  0x58   :  { %467 = vmatpush1.msra.mxu0 %v332_v46  ;;  %539 = vmatprep.subr.mxu1 %v6303_v47  ;;  %v393_v46 = vld [vmem:[%s6302_s9 + $0x200] sm:$0xff] }
  0x59   :  { %468 = vmatprep.subr.mxu0 %v330_v39  ;;  %540 = vmatpush1.msra.mxu1 %v331_v45  ;;  %v394_v39 = vld [vmem:[%s6302_s9 + $0x208] sm:$0xff]  ;;  %v389_v45 = vld [vmem:[%s6302_s9 + $0x1e0] sm:$0xff] }
  0x5a   :  { %469 = vmatpush1.msra.mxu0 %v329_v38  ;;  %559 = vmatprep.subr.mxu1 %v6303_v47  ;;  %v390_v38 = vld [vmem:[%s6302_s9 + $0x1e8] sm:$0xff] }
  0x5b   :  { %3437 = vmatprep.subr.msk.mxu0 %vm428_vm0, %v396_v36  ;;  %3440 = vmatpush2.msk.msra.mxu1 %vm428_vm0, %v397_v54  ;;  %v391_v36 = vld [vmem:[%s6302_s9 + $0x1f0] sm:$0xff]  ;;  %v386_v54 = vld [vmem:[%s6302_s9 + $0x1c8] sm:$0xff] }
  0x5c   :  { %3438 = vmatpush2.msk.msra.mxu0 %vm428_vm0, %v395_v37  ;;  %561 = vmatprep.subr.mxu1 %v6303_v47  ;;  %v387_v37 = vld [vmem:[%s6302_s9 + $0x1d0] sm:$0xff]  ;;  %vm2081_vm0 = vcmask 517504  }
  0x5d   :  { %490 = vmatprep.subr.mxu0 %v393_v46  ;;  %562 = vmatpush2.msra.mxu1 %v394_v39  ;;  %v388_v46 = vld [vmem:[%s6302_s9 + $0x1d8] sm:$0xff]  ;;  %v383_v39 = vld [vmem:[%s6302_s9 + $0x1b0] sm:$0xff] }
  0x5e   :  { %491 = vmatpush2.msra.mxu0 %v392_v44  ;;  %563 = vmatprep.subr.mxu1 %v6303_v47  ;;  %v384_v44 = vld [vmem:[%s6302_s9 + $0x1b8] sm:$0xff] }
  0x5f   :  { %492 = vmatprep.subr.mxu0 %v390_v38  ;;  %564 = vmatpush2.msra.mxu1 %v391_v36  ;;  %v385_v38 = vld [vmem:[%s6302_s9 + $0x1c0] sm:$0xff] }
  0x60   :  { %493 = vmatpush2.msra.mxu0 %v389_v45  ;;  %565 = vmatprep.subr.mxu1 %v6303_v47  ;;  %v3436_v45 = vld.sshfl [vmem:[%s6304_s30] sm:$0x33 pattern:$0x76325410]  ;;  %s6305_s30 = sld [smem:[#allocation100_spill]] }
  0x61   :  { %494 = vmatprep.subr.mxu0 %v387_v37  ;;  %566 = vmatpush2.msra.mxu1 %v388_v46  ;;  %v381_v36 = vld [vmem:[%s6302_s9 + $0x1a0] sm:$0xff]  ;;  %v380_v37 = vld [vmem:[%s6302_s9 + $0x198] sm:$0xff]  ;;  %v423_v46 = vcombine.high %v3436_v45, %v3436_v45 }
  0x62   :  { %495 = vmatpush2.msra.mxu0 %v386_v54  ;;  %567 = vmatprep.subr.mxu1 %v6303_v47  ;;  %v378_v54 = vld [vmem:[%s6302_s9 + $0x188] sm:$0xff] }
  0x63   :  { %496 = vmatprep.subr.mxu0 %v384_v44  ;;  %568 = vmatpush2.msra.mxu1 %v385_v38  ;;  %v377_v44 = vld [vmem:[%s6302_s9 + $0x180] sm:$0xff] }
  0x64   :  { %497 = vmatpush2.msra.mxu0 %v383_v39  ;;  %569 = vmatprep.subr.mxu1 %v6303_v47  ;;  %v379_v39 = vld [vmem:[%s6302_s9 + $0x190] sm:$0xff]  ;;  %s3886_s9 = smov 8  }
  0x65   :  { %498 = vmatprep.subr.mxu0 %v381_v36  ;;  %570 = vmatpush2.msra.mxu1 %v382_v52 }
  0x66   :  { %499 = vmatpush2.msra.mxu0 %v380_v37  ;;  %571 = vmatprep.subr.mxu1 %v6303_v47  ;;  %v4662_v38 = vld [vmem:[%s6305_s30 + $0xf8] sm:$0xff]  ;;  %v4672_v36 = vld [vmem:[%s6305_s30 + $0x160] sm:$0xff]  ;;  %v4677_v37 = vld [vmem:[%s6305_s30 + $0xf0] sm:$0xff] }
  0x67   :  { %500 = vmatprep.subr.mxu0 %v378_v54  ;;  %3439 = vmatprep.mubr.msk.f32.mxu0 %vm425_vm1, %v423_v46  ;;  %v4667_v52 = vld [vmem:[%s6305_s30 + $0x78] sm:$0xff]  ;;  %v4683_v54 = vld [vmem:[%s6305_s30 + $0x70] sm:$0xff]  ;;  %v4714_v55 = vld [vmem:[%s6305_s30 + $0xe0] sm:$0xff] }
  0x68   :  { %501 = vmatpush2.msra.mxu0 %v377_v44  ;;  %572 = vmatpush2.msra.mxu1 %v379_v39  ;;  %v4702_v44 = vld [vmem:[%s6305_s30 + $0x68] sm:$0xff]  ;;  %v4708_v39 = vld [vmem:[%s6305_s30 + $0x150] sm:$0xff]  ;;  %v4721_v53 = vld [vmem:[%s6305_s30 + $0x60] sm:$0xff] }
  0x69   :  { %3441 = vmatprep.mubr.msk.f32.mxu1 %vm425_vm1, %v423_v46  ;;  %503 = vmatmul.mubr.f32.vlgmr.msra.gmra.mxu0 %v3436_v45  ;;  %v4689_v46 = vld [vmem:[%s6305_s30 + $0x158] sm:$0xff]  ;;  %v4727_v62 = vld [vmem:[%s6305_s30 + $0x148] sm:$0xff]  ;;  %v4746_v61 = vld [vmem:[%s6305_s30 + $0x140] sm:$0xff]  ;;  %vm2062_vm1 = vcmask 7168  }
  0x6a   :  { %574 = vmatmul.mubr.f32.vlgmr.msra.gmra.mxu1 %v3436_v45  ;;  %3475 = vmatprep.subr.mxu0 %v4662_v38  ;;  %v4695_v45 = vld [vmem:[%s6305_s30 + $0xe8] sm:$0xff]  ;;  %v4733_v60 = vld [vmem:[%s6305_s30 + $0xd8] sm:$0xff]  ;;  %v4752_v15 = vld [vmem:[%s6305_s30 + $0xd0] sm:$0xff] }
  0x6b   :  { %3732 = vmatprep.subr.mxu1 %v6303_v47  ;;  %3476 = vmatpush3.msra.mxu0 %v4667_v52  ;;  %v4740_v63 = vld [vmem:[%s6305_s30 + $0x58] sm:$0xff]  ;;  %v4759_v5 = vld [vmem:[%s6305_s30 + $0x50] sm:$0xff]  ;;  %v4766_v13 = vld [vmem:[%s6305_s30 + $0xc8] sm:$0xff] }
  0x6c   :  { %3733 = vmatpush3.msra.mxu1 %v4672_v36  ;;  %3477 = vmatprep.subr.mxu0 %v4677_v37  ;;  %v4776_v12 = vld [vmem:[%s6305_s30 + $0x48] sm:$0xff]  ;;  %v4782_v31 = vld [vmem:[%s6305_s30 + $0xc0] sm:$0xff]  ;;  %v4787_v30 = vld [vmem:[%s6305_s30 + $0x138] sm:$0xff] }
  0x6d   :  { %3734 = vmatprep.subr.mxu1 %v6303_v47  ;;  %3478 = vmatpush3.msra.mxu0 %v4683_v54  ;;  %v4794_v29 = vld [vmem:[%s6305_s30 + $0x40] sm:$0xff]  ;;  %v4801_v28 = vld [vmem:[%s6305_s30 + $0xb8] sm:$0xff]  ;;  %v4806_v2 = vld [vmem:[%s6305_s30 + $0x130] sm:$0xff] }
  0x6e   :  { %3735 = vmatpush3.msra.mxu1 %v4689_v46  ;;  %3479 = vmatprep.subr.mxu0 %v4695_v45  ;;  %v4813_v0 = vld [vmem:[%s6305_s30 + $0x38] sm:$0xff]  ;;  %v4820_v3 = vld [vmem:[%s6305_s30 + $0xb0] sm:$0xff]  ;;  %v4825_v1 = vld [vmem:[%s6305_s30 + $0x128] sm:$0xff] }
  0x6f   :  { %3736 = vmatprep.subr.mxu1 %v6303_v47  ;;  %3480 = vmatpush3.msra.mxu0 %v4702_v44  ;;  %v4832_v10 = vld [vmem:[%s6305_s30 + $0x30] sm:$0xff]  ;;  %v4839_v8 = vld [vmem:[%s6305_s30 + $0xa8] sm:$0xff]  ;;  %v4844_v11 = vld [vmem:[%s6305_s30 + $0x120] sm:$0xff] }
  0x70   :  { %3737 = vmatpush3.msra.mxu1 %v4708_v39  ;;  %3481 = vmatprep.subr.mxu0 %v4714_v55  ;;  %v4851_v9 = vld [vmem:[%s6305_s30 + $0x28] sm:$0xff]  ;;  %v4858_v18 = vld [vmem:[%s6305_s30 + $0xa0] sm:$0xff]  ;;  %v4863_v16 = vld [vmem:[%s6305_s30 + $0x118] sm:$0xff] }
  0x71   :  { %3738 = vmatprep.subr.mxu1 %v6303_v47  ;;  %3482 = vmatpush3.msra.mxu0 %v4721_v53  ;;  %v4870_v19 = vld [vmem:[%s6305_s30 + $0x20] sm:$0xff]  ;;  %v4877_v17 = vld [vmem:[%s6305_s30 + $0x98] sm:$0xff]  ;;  %v4882_v26 = vld [vmem:[%s6305_s30 + $0x110] sm:$0xff] }
  0x72   :  { %3739 = vmatpush3.msra.mxu1 %v4727_v62  ;;  %3483 = vmatprep.subr.mxu0 %v4733_v60  ;;  %6306 = vst [vmem:[#allocation89_spill] sm:$0xff] %v4882_v26  ;;  %v4889_v24 = vld [vmem:[%s6305_s30 + $0x18] sm:$0xff]  ;;  %v4896_v27 = vld [vmem:[%s6305_s30 + $0x90] sm:$0xff]  ;;  %v4901_v25 = vld [vmem:[%s6305_s30 + $0x108] sm:$0xff] }
  0x73   :  { %3740 = vmatprep.subr.mxu1 %v6303_v47  ;;  %3484 = vmatpush3.msra.mxu0 %v4740_v63  ;;  %6307 = vst [vmem:[#allocation90_spill] sm:$0xff] %v4901_v25  ;;  %v4908_v34 = vld [vmem:[%s6305_s30 + $0x10] sm:$0xff]  ;;  %v4915_v32 = vld [vmem:[%s6305_s30 + $0x88] sm:$0xff]  ;;  %v4920_v35 = vld [vmem:[%s6305_s30 + $0x100] sm:$0xff] }
  0x74   :  { %3741 = vmatpush3.msra.mxu1 %v4746_v61  ;;  %3485 = vmatprep.subr.mxu0 %v4752_v15  ;;  %6308 = vst [vmem:[#allocation91_spill] sm:$0xff] %v4920_v35  ;;  %v4925_v33 = vld [vmem:[%s6305_s30 + $0x8] sm:$0xff]  ;;  %v4935_v42 = vld [vmem:[%s6305_s30 + $0x80] sm:$0xff] }
  0x75   :  { %3742 = vmatprep.subr.mxu1 %v6303_v47  ;;  %3486 = vmatpush3.msra.mxu0 %v4759_v5  ;;  %v4940_v40 = vld [vmem:[%s6305_s30] sm:$0xff]  ;;  %s6325_s30 = sld [smem:[#allocation106_spill]] }
  0x76   :  { %3487 = vmatprep.subr.mxu0 %v4766_v13  ;;  %3743 = vmatpush3.msra.mxu1 %v4787_v30 }
  0x77   :  { %3488 = vmatpush3.msra.mxu0 %v4776_v12  ;;  %3744 = vmatprep.subr.mxu1 %v6303_v47 }
  0x78   :  { %3489 = vmatprep.subr.mxu0 %v4782_v31  ;;  %3745 = vmatpush3.msra.mxu1 %v4806_v2 }
  0x79   :  { %3490 = vmatpush3.msra.mxu0 %v4794_v29  ;;  %3746 = vmatprep.subr.mxu1 %v6303_v47 }
  0x7a   :  { %3491 = vmatprep.subr.mxu0 %v4801_v28  ;;  %3747 = vmatpush3.msra.mxu1 %v4825_v1 }
  0x7b   :  { %3492 = vmatpush3.msra.mxu0 %v4813_v0  ;;  %3748 = vmatprep.subr.mxu1 %v6303_v47 }
  0x7c   :  { %3493 = vmatprep.subr.mxu0 %v4820_v3  ;;  %3749 = vmatpush3.msra.mxu1 %v4844_v11 }
  0x7d   :  { %3494 = vmatpush3.msra.mxu0 %v4832_v10  ;;  %3750 = vmatprep.subr.mxu1 %v6303_v47 }
  0x7e   :  { %3495 = vmatprep.subr.mxu0 %v4839_v8  ;;  %3751 = vmatpush3.msra.mxu1 %v4863_v16 }
  0x7f   :  { %3496 = vmatpush3.msra.mxu0 %v4851_v9  ;;  %3752 = vmatprep.subr.mxu1 %v6303_v47 }
  0x80   :  { %3497 = vmatprep.subr.mxu0 %v4858_v18  ;;  %3753 = vmatpush3.msra.mxu1 %v4882_v26 }
  0x81   :  { %3498 = vmatpush3.msra.mxu0 %v4870_v19  ;;  %3754 = vmatprep.subr.mxu1 %v6303_v47 }
  0x82   :  { %3499 = vmatprep.subr.mxu0 %v4877_v17  ;;  %3755 = vmatpush3.msra.mxu1 %v4901_v25 }
  0x83   :  { %3500 = vmatpush3.msra.mxu0 %v4889_v24  ;;  %3756 = vmatprep.subr.mxu1 %v6303_v47 }
  0x84   :  { %3501 = vmatprep.subr.mxu0 %v4896_v27  ;;  %3757 = vmatpush3.msra.mxu1 %v4920_v35 }
  0x85   :  { %3502 = vmatpush3.msra.mxu0 %v4908_v34  ;;  %3758 = vmatprep.mubr.msk.f32.mxu1 %vm3885_vm2, %v6303_v47 }
  0x86   :  { %3503 = vmatprep.subr.mxu0 %v4915_v32 }
  0x87   :  { %3504 = vmatpush3.msra.mxu0 %v4925_v33 }
  0x88   :  { %3505 = vmatprep.subr.mxu0 %v4935_v42 }
  0x89   :  { %3506 = vmatpush3.msra.mxu0 %v4940_v40 }
  0x8a   :  { %3526 = vmatprep.subr.mxu0 %v4662_v38  ;;  %v411_v38 = vrot.slane %v398_v51, %v6200_v48 }
 0x129   :  { %v504_v56 = vpop.f32.mrf.mxu0 }
 0x12a   :  { %v575_v59 = vpop.f32.mrf.mxu1  ;;  %v4961_v57 = vadd.f32 %v504_v56, %v403_v58 }
 0x12b   :  { %v4963_v4 = vadd.f32 %v575_v59, %v411_v38  ;;  %v506_v6 = vpop.f32.mrf.mxu0 }
 0x12c   :  { %6313 = vst [vmem:[#allocation95_spill] sm:$0xff] %v4961_v57  ;;  %v577_v14 = vpop.f32.mrf.mxu1  ;;  %v580_v7 = vsel %vm579_vm3, %v4961_v57, 0.0  ;;  %v4969_v41 = vadd.f32 %v506_v6, %v407_v43 }
 0x12d   :  { %6314 = vst [vmem:[#allocation96_spill] sm:$0xff] %v4963_v4  ;;  %v595_v23 = vsel %vm594_vm4, %v4963_v4, 0.0  ;;  %v581_v48 = vrot.slane %v580_v7, 4 }
 0x12e   :  { %v596_v51 = vrot.slane %v595_v23, 4  ;;  %v587_v22 = vsel %vm579_vm3, %v4969_v41, 0.0 }
 0x12f   :  { %v582_v21 = vadd.f32 %v581_v48, %v580_v7  ;;  %v588_v58 = vrot.slane %v587_v22, 4 }
 0x130   :  { %v597_v56 = vadd.f32 %v596_v51, %v595_v23 }
 0x131   :  { %v583_v59 = vrot.slane %v582_v21, 2  ;;  %v589_v20 = vadd.f32 %v588_v58, %v587_v22 }
 0x132   :  { %v598_v38 = vrot.slane %v597_v56, 2 }
 0x133   :  { %v584_v14 = vadd.f32 %v583_v59, %v582_v21  ;;  %v590_v50 = vrot.slane %v589_v20, 2 }
 0x134   :  { %v599_v49 = vadd.f32 %v598_v38, %v597_v56  ;;  %v1075_v38 = vld [vmem:[%s6322_s5] sm:$0x1]  ;;  %s6326_s5 = sld [smem:[#allocation105_spill]] }
 0x135   :  { %v591_v35 = vadd.f32 %v590_v50, %v589_v20  ;;  %v585_v4 = vrot.slane %v584_v14, 1  ;;  %v6320_v20 = vld [vmem:[#allocation95_spill] sm:$0xff] }
 0x136   :  { %v600_v57 = vrot.slane %v599_v49, 1 }
 0x137   :  { %v592_v43 = vrot.slane %v591_v35, 1  ;;  %v586_v26 = vadd.f32 %v585_v4, %v584_v14 }
 0x138   :  { %v601_v6 = vadd.f32 %v600_v57, %v599_v49 }
 0x139   :  { %v593_v25 = vadd.f32 %v592_v43, %v591_v35  ;;  %v1079_v43 = vld [vmem:[%s6323_s2] sm:$0x1] }
 0x13a   :  { %3759 = vmatmul.mubr.msk.f32.vlgmr.msra.gmra.mxu1 %vm602_vm5, %v601_v6 }
 0x13b   :  { %815 = vmatprep.mubr.f32.mxu1 %v6303_v47  ;;  %670 = vmatprep.mubr.f32.mxu0 %v593_v25 }
 0x13c   :  { %671 = vmatmul.mubr.f32.vlgmr.msra.gmra.mxu0 %v586_v26 }
 0x13d   :  { %3527 = vmatpush3.msra.mxu0 %v4667_v52 }
 0x13e   :  { %3528 = vmatprep.subr.mxu0 %v4677_v37 }
 0x13f   :  { %3529 = vmatpush3.msra.mxu0 %v4683_v54 }
 0x140   :  { %3530 = vmatprep.subr.mxu0 %v4695_v45 }
 0x141   :  { %3531 = vmatpush3.msra.mxu0 %v4702_v44 }
 0x142   :  { %3532 = vmatprep.subr.mxu0 %v4714_v55 }
 0x143   :  { %3533 = vmatpush3.msra.mxu0 %v4721_v53 }
 0x144   :  { %3534 = vmatprep.subr.mxu0 %v4733_v60 }
 0x145   :  { %3535 = vmatpush3.msra.mxu0 %v4740_v63 }
 0x146   :  { %3536 = vmatprep.subr.mxu0 %v4752_v15  ;;  %v6316_v15 = vld [vmem:[#allocation89_spill] sm:$0xff] }
 0x147   :  { %3537 = vmatpush3.msra.mxu0 %v4759_v5 }
 0x148   :  { %3538 = vmatprep.subr.mxu0 %v4766_v13  ;;  %v5025_v13 = vld [vmem:[%s6315_s26 + $0x10] sm:$0xff] }
 0x149   :  { %3539 = vmatpush3.msra.mxu0 %v4776_v12 }
 0x14a   :  { %3540 = vmatprep.subr.mxu0 %v4782_v31 }
 0x14b   :  { %3541 = vmatpush3.msra.mxu0 %v4794_v29  ;;  %v6321_v29 = vld [vmem:[#allocation96_spill] sm:$0xff] }
 0x14c   :  { %3542 = vmatprep.subr.mxu0 %v4801_v28 }
 0x14d   :  { %3543 = vmatpush3.msra.mxu0 %v4813_v0  ;;  %v5010_v0 = vld [vmem:[%s6315_s26 + $0x8] sm:$0xff] }
 0x14e   :  { %3544 = vmatprep.subr.mxu0 %v4820_v3  ;;  %781 = vmatprep.subr.mxu1 %v5010_v0  ;;  %v5016_v3 = vld [vmem:[%s6315_s26] sm:$0xff] }
 0x14f   :  { %3545 = vmatpush3.msra.mxu0 %v4832_v10  ;;  %782 = vmatpush1.msra.mxu1 %v5016_v3 }
 0x150   :  { %3546 = vmatprep.subr.mxu0 %v4839_v8  ;;  %3761 = vmatprep.subr.mxu1 %v6303_v47 }
 0x151   :  { %3547 = vmatpush3.msra.mxu0 %v4851_v9 }
 0x152   :  { %3548 = vmatprep.subr.mxu0 %v4858_v18 }
 0x153   :  { %3549 = vmatpush3.msra.mxu0 %v4870_v19 }
 0x154   :  { %3550 = vmatprep.subr.mxu0 %v4877_v17  ;;  %v6317_v17 = vld [vmem:[#allocation90_spill] sm:$0xff] }
 0x155   :  { %3551 = vmatpush3.msra.mxu0 %v4889_v24 }
 0x156   :  { %3552 = vmatprep.subr.mxu0 %v4896_v27 }
 0x157   :  { %3553 = vmatpush3.msra.mxu0 %v4908_v34 }
 0x158   :  { %3554 = vmatprep.subr.mxu0 %v4915_v32 }
 0x159   :  { %3555 = vmatpush3.msra.mxu0 %v4925_v33 }
 0x15a   :  { %3556 = vmatprep.subr.mxu0 %v4935_v42 }
 0x15b   :  { %3557 = vmatpush3.msra.mxu0 %v4940_v40 }
 0x15c   :  { %3795 = vmatprep.subr.mxu0 %v6303_v47 }
 0x1fa   :  { %v742_v4 = vpop.f32.mrf.mxu1 }
 0x1fc   :  { %v3760_v5 = vpop.f32.mrf.mxu1  ;;  %v3507_v7 = vpop.f32.mrf.mxu0 }
 0x1fd   :  { %v1483_v5 = vld [vmem:[%s6324_s7 + $0xe0] sm:$0xff] }
 0x1fe   :  { %v3508_v8 = vpop.f32.mrf.mxu0 }
 0x1ff   :  { %v3509_v9 = vadd.f32 %v3508_v8, %v3507_v7  ;;  %v1482_v7 = vld [vmem:[%s6324_s7 + $0xd8] sm:$0xff]  ;;  %v1481_v8 = vld [vmem:[%s6324_s7 + $0xd0] sm:$0xff] }
 0x201   :  { %v743_v10 = vadd.f32 %v3509_v9, %v742_v4  ;;  %v1480_v9 = vld [vmem:[%s6324_s7 + $0xc8] sm:$0xff] }
 0x203   :  { %v5020_v12 = vmul.f32 0.011111111, %v743_v10  ;;  %v1479_v10 = vld [vmem:[%s6324_s7 + $0xc0] sm:$0xff] }
 0x205   :  { %3443 = vmatmul.mubr.msk.f32.vlgmr.msra.gmra.mxu1 %vm747_vm6, %v5020_v12 }
 0x206   :  { %3762 = vmatpush3.msra.mxu1 %v5025_v13  ;;  %3763 = vmatprep.mubr.msk.f32.mxu1 %vm3885_vm2, %v6303_v47 }
 0x207   :  { %3766 = vmatprep.subr.mxu1 %v6303_v47 }
 0x209   :  { %3764 = vmatmul.mubr.msk.f32.vlgmr.msra.gmra.mxu1 %vm747_vm6, %v5020_v12 }
 0x20a   :  { %3767 = vmatpush3.msra.mxu1 %v4672_v36  ;;  %3792 = vmatprep.mubr.msk.f32.mxu1 %vm3885_vm2, %v6303_v47 }
 0x20b   :  { %3768 = vmatprep.subr.mxu1 %v6303_v47 }
 0x20c   :  { %3769 = vmatpush3.msra.mxu1 %v4689_v46 }
 0x20d   :  { %3770 = vmatprep.subr.mxu1 %v6303_v47 }
 0x20e   :  { %3771 = vmatpush3.msra.mxu1 %v4708_v39 }
 0x20f   :  { %3772 = vmatprep.subr.mxu1 %v6303_v47 }
 0x210   :  { %3773 = vmatpush3.msra.mxu1 %v4727_v62 }
 0x211   :  { %3774 = vmatprep.subr.mxu1 %v6303_v47 }
 0x212   :  { %3775 = vmatpush3.msra.mxu1 %v4746_v61 }
 0x213   :  { %3776 = vmatprep.subr.mxu1 %v6303_v47 }
 0x214   :  { %3777 = vmatpush3.msra.mxu1 %v4787_v30 }
 0x215   :  { %3778 = vmatprep.subr.mxu1 %v6303_v47 }
 0x216   :  { %3779 = vmatpush3.msra.mxu1 %v4806_v2  ;;  %v6318_v2 = vld [vmem:[#allocation91_spill] sm:$0xff] }
 0x217   :  { %3780 = vmatprep.subr.mxu1 %v6303_v47 }
 0x218   :  { %3781 = vmatpush3.msra.mxu1 %v4825_v1 }
 0x219   :  { %3782 = vmatprep.subr.mxu1 %v6303_v47 }
 0x21a   :  { %3783 = vmatpush3.msra.mxu1 %v4844_v11  ;;  %v6319_v11 = vld [vmem:[#allocation93_spill] sm:$0xff] }
 0x21b   :  { %3784 = vmatprep.subr.mxu1 %v6303_v47 }
 0x21c   :  { %3785 = vmatpush3.msra.mxu1 %v4863_v16 }
 0x21d   :  { %3786 = vmatprep.subr.mxu1 %v6303_v47 }
 0x21e   :  { %3787 = vmatpush3.msra.mxu1 %v6316_v15  ;;  %v1476_v15 = vld [vmem:[%s6324_s7 + $0xa8] sm:$0xff] }
 0x21f   :  { %3788 = vmatprep.subr.mxu1 %v6303_v47 }
 0x220   :  { %3789 = vmatpush3.msra.mxu1 %v6317_v17  ;;  %v1475_v17 = vld [vmem:[%s6324_s7 + $0xa0] sm:$0xff] }
 0x221   :  { %3790 = vmatprep.subr.mxu1 %v6303_v47 }
 0x222   :  { %3791 = vmatpush3.msra.mxu1 %v6318_v2  ;;  %v1474_v2 = vld [vmem:[%s6324_s7 + $0x98] sm:$0xff] }
 0x223   :  { %1115 = vmatprep.subr.mxu1 %v5010_v0 }
 0x2c5   :  { %v817_v1 = vpop.f32.mrf.mxu1 }
 0x2c6   :  { %v895_v18 = vrot.slane %v817_v1, %v6319_v11  ;;  %v1473_v1 = vld [vmem:[%s6324_s7 + $0x90] sm:$0xff] }
 0x2c7   :  { %v819_v19 = vpop.f32.mrf.mxu1 }
 0x2c8   :  { %v904_v16 = vsub.f32 %v6320_v20, %v895_v18  ;;  %v899_v21 = vrot.slane %v819_v19, %v6319_v11  ;;  %v1472_v18 = vld [vmem:[%s6324_s7 + $0x88] sm:$0xff]  ;;  %v1471_v19 = vld [vmem:[%s6324_s7 + $0x80] sm:$0xff] }
 0x2c9   :  { %v888_v22 = vpop.f32.mrf.mxu1 }
 0x2ca   :  { %v907_v23 = vmul.f32 %v904_v16, %v904_v16  ;;  %v905_v24 = vsub.f32 %v4969_v41, %v899_v21  ;;  %v903_v25 = vrot.slane %v888_v22, %v6319_v11  ;;  %v1470_v16 = vld [vmem:[%s6324_s7 + $0x78] sm:$0xff]  ;;  %v1469_v21 = vld [vmem:[%s6324_s7 + $0x70] sm:$0xff]  ;;  %v1468_v22 = vld [vmem:[%s6324_s7 + $0x68] sm:$0xff] }
 0x2cb   :  { %v3765_v26 = vpop.f32.mrf.mxu1 }
 0x2cc   :  { %v910_v27 = vsel %vm579_vm3, %v907_v23, 0.0  ;;  %v908_v28 = vmul.f32 %v905_v24, %v905_v24  ;;  %v906_v30 = vsub.f32 %v6321_v29, %v903_v25  ;;  %v1467_v23 = vld [vmem:[%s6324_s7 + $0x60] sm:$0xff]  ;;  %v1466_v24 = vld [vmem:[%s6324_s7 + $0x58] sm:$0xff]  ;;  %v1465_v25 = vld [vmem:[%s6324_s7 + $0x50] sm:$0xff] }
 0x2cd   :  { %v911_v31 = vrot.slane %v910_v27, 4  ;;  %v1464_v26 = vld [vmem:[%s6324_s7 + $0x48] sm:$0xff] }
 0x2ce   :  { %v917_v32 = vsel %vm579_vm3, %v908_v28, 0.0  ;;  %v909_v33 = vmul.f32 %v906_v30, %v906_v30  ;;  %v1462_v28 = vld [vmem:[%s6324_s7 + $0x38] sm:$0xff]  ;;  %v1461_v30 = vld [vmem:[%s6324_s7 + $0x30] sm:$0xff] }
 0x2cf   :  { %v912_v34 = vadd.f32 %v911_v31, %v910_v27  ;;  %v918_v35 = vrot.slane %v917_v32, 4  ;;  %v1463_v27 = vld [vmem:[%s6324_s7 + $0x40] sm:$0xff]  ;;  %v1460_v31 = vld [vmem:[%s6324_s7 + $0x28] sm:$0xff] }
 0x2d0   :  { %v924_v40 = vsel %vm594_vm4, %v909_v33, 0.0  ;;  %vm2064_vm4 = vcmask 15360  }
 0x2d1   :  { %v913_v42 = vrot.slane %v912_v34, 2  ;;  %v919_v48 = vadd.f32 %v918_v35, %v917_v32  ;;  %v925_v49 = vrot.slane %v924_v40, 4  ;;  %v1459_v35 = vld [vmem:[%s6324_s7 + $0x20] sm:$0xff] }
 0x2d3   :  { %v914_v50 = vadd.f32 %v913_v42, %v912_v34  ;;  %v926_v53 = vadd.f32 %v925_v49, %v924_v40  ;;  %v920_v55 = vrot.slane %v919_v48, 2 }
 0x2d5   :  { %v927_v57 = vrot.slane %v926_v53, 2  ;;  %v921_v60 = vadd.f32 %v920_v55, %v919_v48  ;;  %v915_v61 = vrot.slane %v914_v50, 1  ;;  %v1458_v48 = vld [vmem:[%s6324_s7 + $0x18] sm:$0xff] }
 0x2d7   :  { %v928_v62 = vadd.f32 %v927_v57, %v926_v53  ;;  %v922_v63 = vrot.slane %v921_v60, 1  ;;  %v916_v37 = vadd.f32 %v915_v61, %v914_v50  ;;  %v1457_v50 = vld [vmem:[%s6324_s7 + $0x10] sm:$0xff]  ;;  %v1456_v57 = vld [vmem:[%s6324_s7 + $0x8] sm:$0xff] }
 0x2d9   :  { %v929_v52 = vrot.slane %v928_v62, 1  ;;  %v923_v36 = vadd.f32 %v922_v63, %v921_v60  ;;  %v1455_v63 = vld [vmem:[%s6324_s7] sm:$0xff] }
 0x2db   :  { %v930_v54 = vadd.f32 %v929_v52, %v928_v62  ;;  %998 = vmatprep.mubr.f32.mxu0 %v923_v36 }
 0x2dc   :  { %999 = vmatmul.mubr.f32.vlgmr.msra.gmra.mxu0 %v916_v37 }
 0x2dd   :  { %3793 = vmatmul.mubr.msk.f32.vlgmr.msra.gmra.mxu1 %vm602_vm5, %v930_v54  ;;  %3796 = vmatpush3.msra.mxu0 %v5025_v13  ;;  %vm2066_vm5 = vcmask 23552  }
 0x2de   :  { %1116 = vmatpush1.msra.mxu1 %v5016_v3  ;;  %1149 = vmatprep.mubr.f32.mxu1 %v6303_v47 }
 0x2df   :  { %3797 = vmatprep.mubr.msk.f32.mxu0 %vm3885_vm2, %v6303_v47  ;;  %1274 = vmatprep.subr.mxu1 %v5010_v0 }
 0x2e0   :  { %3800 = vmatprep.subr.mxu0 %v6303_v47 }
 0x39c   :  { %v3558_v46 = vpop.f32.mrf.mxu0 }
 0x39d   :  { %v1070_v45 = vpop.f32.mrf.mxu1 }
 0x39e   :  { %v3559_v44 = vpop.f32.mrf.mxu0 }
 0x39f   :  { %v3560_v39 = vadd.f32 %v3559_v44, %v3558_v46  ;;  %v3794_v51 = vpop.f32.mrf.mxu1  ;;  %v5206_v44 = vld [vmem:[%s6325_s30 + $0x70] sm:$0xff] }
 0x3a1   :  { %v1071_v56 = vadd.f32 %v3560_v39, %v1070_v45 }
 0x3a3   :  { %v1074_v58 = vmul.f32 0.011111111, %v1071_v56  ;;  %v5215_v56 = vld [vmem:[%s6325_s30 + $0x68] sm:$0xff] }
 0x3a5   :  { %v1076_v59 = vadd.f32 1e-05, %v1074_v58 }
 0x3a7   :  { %3848 = vrsqrt.f32 %v1076_v59 }
 0x3b4   :  { %v3849_v14 = vpop.eup %3848 }
 0x3b5   :  { %v1078_v6 = vmul.f32 %v3849_v14, %v1075_v38  ;;  %v5232_v38 = vld [vmem:[%s6325_s30 + $0x58] sm:$0xff] }
 0x3b7   :  { %3446 = vmatmul.mubr.msk.f32.vlgmr.msra.gmra.mxu1 %vm747_vm6, %v1078_v6  ;;  %3798 = vmatmul.mubr.msk.f32.vlgmr.msra.gmra.mxu0 %vm747_vm6, %v1078_v6  ;;  %v1080_v0 = vmul.f32 %v1078_v6, %v5020_v12  ;;  %v1478_v12 = vld [vmem:[%s6324_s7 + $0xb8] sm:$0xff]  ;;  %v5239_v6 = vld [vmem:[%s6325_s30 + $0x50] sm:$0xff] }
 0x3b8   :  { %1275 = vmatpush1.msra.mxu1 %v5016_v3  ;;  %1308 = vmatprep.mubr.f32.mxu1 %v6303_v47  ;;  %v1484_v3 = vld [vmem:[%s6324_s7 + $0xe8] sm:$0xff] }
 0x3b9   :  { %3801 = vmatpush3.msra.mxu0 %v5025_v13  ;;  %3802 = vmatprep.mubr.msk.f32.mxu0 %vm3885_vm2, %v6303_v47  ;;  %v1081_v4 = vsub.f32 %v1079_v43, %v1080_v0  ;;  %v1477_v13 = vld [vmem:[%s6324_s7 + $0xb0] sm:$0xff]  ;;  %v5247_v43 = vld [vmem:[%s6325_s30 + $0x48] sm:$0xff]  ;;  %v5254_v0 = vld [vmem:[%s6325_s30 + $0x40] sm:$0xff]  ;;  %s3890_s7 = smov 112  }
 0x3ba   :  { %1591 = vmatprep.subr.mxu0 %v6303_v47  ;;  %1503 = vmatprep.subr.mxu1 %v1484_v3  ;;  %v5268_v3 = vld [vmem:[%s6325_s30 + $0x30] sm:$0xff] }
 0x3bb   :  { %3448 = vmatmul.mubr.msk.f32.vlgmr.msra.gmra.mxu1 %vm747_vm6, %v1081_v4  ;;  %3803 = vmatmul.mubr.msk.f32.vlgmr.msra.gmra.mxu0 %vm747_vm6, %v1081_v4  ;;  %v5261_v4 = vld [vmem:[%s6325_s30 + $0x38] sm:$0xff] }
 0x3bc   :  { %1565 = vmatprep.mubr.f32.mxu1 %v6303_v47  ;;  %1504 = vmatpush1.msra.mxu1 %v1483_v5  ;;  %v5275_v5 = vld [vmem:[%s6325_s30 + $0x28] sm:$0xff] }
 0x3bd   :  { %1505 = vmatprep.subr.mxu1 %v1482_v7  ;;  %v5282_v7 = vld [vmem:[%s6325_s30 + $0x20] sm:$0xff] }
 0x3be   :  { %1506 = vmatpush1.msra.mxu1 %v1481_v8  ;;  %v5289_v8 = vld [vmem:[%s6325_s30 + $0x18] sm:$0xff] }
 0x3bf   :  { %1507 = vmatprep.subr.mxu1 %v1480_v9  ;;  %v5296_v9 = vld [vmem:[%s6325_s30 + $0x10] sm:$0xff] }
 0x3c0   :  { %1508 = vmatpush1.msra.mxu1 %v1479_v10  ;;  %v5303_v10 = vld [vmem:[%s6325_s30 + $0x8] sm:$0xff] }
 0x3c1   :  { %1509 = vmatprep.subr.mxu1 %v1478_v12  ;;  %v5310_v12 = vld [vmem:[%s6325_s30] sm:$0xff] }
 0x3c2   :  { %1510 = vmatpush1.msra.mxu1 %v1477_v13  ;;  %v5317_v13 = vld [vmem:[%s6325_s30 + $0xe8] sm:$0xff] }
 0x3c3   :  { %1511 = vmatprep.subr.mxu1 %v1476_v15  ;;  %v5324_v15 = vld [vmem:[%s6325_s30 + $0xe0] sm:$0xff] }
 0x3c4   :  { %1512 = vmatpush1.msra.mxu1 %v1475_v17  ;;  %v5331_v17 = vld [vmem:[%s6325_s30 + $0xd8] sm:$0xff] }
 0x3c5   :  { %1513 = vmatprep.subr.mxu1 %v1474_v2  ;;  %v5338_v2 = vld [vmem:[%s6325_s30 + $0xd0] sm:$0xff] }
 0x3c6   :  { %1514 = vmatpush1.msra.mxu1 %v1473_v1 }
 0x3c7   :  { %1515 = vmatprep.subr.mxu1 %v1472_v18 }
 0x3c8   :  { %1516 = vmatpush1.msra.mxu1 %v1471_v19 }
 0x3c9   :  { %1517 = vmatprep.subr.mxu1 %v1470_v16 }
 0x3ca   :  { %1518 = vmatpush1.msra.mxu1 %v1469_v21 }
 0x3cb   :  { %1519 = vmatprep.subr.mxu1 %v1468_v22 }
 0x3cc   :  { %1520 = vmatpush1.msra.mxu1 %v1467_v23 }
 0x3cd   :  { %1521 = vmatprep.subr.mxu1 %v1466_v24 }
 0x3ce   :  { %1522 = vmatpush1.msra.mxu1 %v1465_v25  ;;  %v5352_v25 = vld [vmem:[%s6325_s30 + $0xc8] sm:$0xff] }
 0x3cf   :  { %1523 = vmatprep.subr.mxu1 %v1464_v26  ;;  %v5359_v26 = vld [vmem:[%s6325_s30 + $0xc0] sm:$0xff] }
 0x3d0   :  { %1524 = vmatpush1.msra.mxu1 %v1463_v27  ;;  %v5366_v27 = vld [vmem:[%s6325_s30 + $0xb8] sm:$0xff] }
 0x3d1   :  { %1525 = vmatprep.subr.mxu1 %v1462_v28  ;;  %v5373_v28 = vld [vmem:[%s6325_s30 + $0xb0] sm:$0xff] }
 0x3d2   :  { %1526 = vmatpush1.msra.mxu1 %v1461_v30  ;;  %v5380_v30 = vld [vmem:[%s6325_s30 + $0xa8] sm:$0xff] }
 0x3d3   :  { %1527 = vmatprep.subr.mxu1 %v1460_v31  ;;  %v5387_v31 = vld [vmem:[%s6325_s30 + $0xa0] sm:$0xff] }
 0x3d4   :  { %1528 = vmatpush1.msra.mxu1 %v1459_v35  ;;  %v5413_v35 = vld [vmem:[%s6325_s30 + $0x80] sm:$0xff] }
 0x3d5   :  { %1529 = vmatprep.subr.mxu1 %v1458_v48  ;;  %v1485_v48 = vld [vmem:[%s6326_s5] sm:$0x3] }
 0x3d6   :  { %1530 = vmatpush1.msra.mxu1 %v1457_v50  ;;  %v6327_v50 = vld [vmem:[#allocation94_spill] sm:$0xff] }
 0x3d7   :  { %1531 = vmatprep.subr.mxu1 %v1456_v57 }
 0x3d8   :  { %1532 = vmatpush1.msra.mxu1 %v1455_v63 }
 0x477   :  { %v1151_v32 = vpop.f32.mrf.mxu1  ;;  %v1222_v33 = vpop.f32.mrf.mxu0 }
 0x478   :  { %v1229_v34 = vrot.slane %v1151_v32, %v6319_v11  ;;  %v1237_v61 = vrot.slane %v1222_v33, %v6319_v11  ;;  %v5394_v32 = vld [vmem:[%s6325_s30 + $0x98] sm:$0xff]  ;;  %v5400_v33 = vld [vmem:[%s6325_s30 + $0x90] sm:$0xff] }
 0x479   :  { %v1153_v40 = vpop.f32.mrf.mxu1  ;;  %v3799_v42 = vpop.f32.mrf.mxu0 }
 0x47a   :  { %v1233_v49 = vrot.slane %v1153_v40, %v6319_v11  ;;  %v1238_v60 = vmul.f32 %v1229_v34, %v6320_v20  ;;  %v5201_v20 = vld [vmem:[%s6325_s30 + $0x78] sm:$0xff]  ;;  %v5406_v34 = vld [vmem:[%s6325_s30 + $0x88] sm:$0xff]  ;;  %v5424_v42 = vld [vmem:[%s6175_s10 + $0x10] sm:$0xff] }
 0x47b   :  { %v1310_v53 = vpop.f32.mrf.mxu1  ;;  %v1381_v55 = vpop.f32.mrf.mxu0  ;;  %1592 = vmatpush1.msra.mxu0 %v5201_v20  ;;  %v1454_v40 = vld [vmem:[%s6175_s10 + $0x18] sm:$0xff] }
 0x47c   :  { %v1388_v62 = vrot.slane %v1310_v53, %v6319_v11  ;;  %v1239_v37 = vmul.f32 %v1233_v49, %v4969_v41  ;;  %v1396_v54 = vrot.slane %v1381_v55, %v6319_v11  ;;  %v1240_v41 = vmul.f32 %v1237_v61, %v6321_v29  ;;  %1593 = vmatprep.subr.mxu0 %v6303_v47  ;;  %v5224_v29 = vld [vmem:[%s6325_s30 + $0x60] sm:$0xff] }
 0x47d   :  { %v1312_v52 = vpop.f32.mrf.mxu1  ;;  %v3804_v36 = vpop.f32.mrf.mxu0  ;;  %1594 = vmatpush1.msra.mxu0 %v5206_v44  ;;  %1693 = vmatprep.subr.mxu1 %v1454_v40  ;;  %v1490_v49 = vrot.slane %v1485_v48, %v6319_v11  ;;  %v1494_v53 = vrot.slane %v1485_v48, %v6327_v50 }
 0x47e   :  { %v1392_v46 = vrot.slane %v1312_v52, %v6319_v11  ;;  %v5196_v45 = vadd.f32 %v1388_v62, %v1238_v60  ;;  %v1399_v58 = vadd.f32 %v1396_v54, %v1240_v41  ;;  %1595 = vmatprep.subr.mxu0 %v6303_v47 }
 0x47f   :  { %1596 = vmatpush1.msra.mxu0 %v5215_v56 }
 0x480   :  { %v1400_v39 = vmax.f32 %v5196_v45, 0.0  ;;  %v1398_v51 = vadd.f32 %v1392_v46, %v1239_v37  ;;  %1597 = vmatprep.subr.mxu0 %v6303_v47  ;;  %v1402_v14 = vmax.f32 %v1399_v58, 0.0 }
 0x481   :  { %1598 = vmatpush1.msra.mxu0 %v5224_v29 }
 0x482   :  { %1405 = vrot.lane.b32.xlu0 %v1400_v39, %s3886_s9  ;;  %v1401_v59 = vmax.f32 %v1398_v51, 0.0  ;;  %1599 = vmatprep.subr.mxu0 %v6303_v47 }
 0x483   :  { %1600 = vmatpush1.msra.mxu0 %v5232_v38 }
 0x484   :  { %1413 = vrot.lane.b32.xlu1 %v1401_v59, %s3887_s4  ;;  %1601 = vmatprep.subr.mxu0 %v6303_v47 }
 0x485   :  { %1602 = vmatpush1.msra.mxu0 %v5239_v6 }
 0x486   :  { %1407 = vrot.lane.b32.xlu0 %v1401_v59, %s3886_s9  ;;  %1603 = vmatprep.subr.mxu0 %v6303_v47  ;;  %s3892_s9 = smov 80  }
 0x487   :  { %1604 = vmatpush1.msra.mxu0 %v5247_v43 }
 0x488   :  { %1415 = vrot.lane.b32.xlu1 %v1402_v14, %s3887_s4  ;;  %1605 = vmatprep.subr.mxu0 %v6303_v47 }
 0x489   :  { %1606 = vmatpush1.msra.mxu0 %v5254_v0 }
 0x48a   :  { %1607 = vmatprep.subr.mxu0 %v6303_v47 }
 0x48b   :  { %1608 = vmatpush1.msra.mxu0 %v5261_v4 }
 0x48c   :  { %1609 = vmatprep.subr.mxu0 %v6303_v47 }
 0x48d   :  { %1610 = vmatpush1.msra.mxu0 %v5268_v3 }
 0x48e   :  { %1611 = vmatprep.subr.mxu0 %v6303_v47 }
 0x48f   :  { %1612 = vmatpush1.msra.mxu0 %v5275_v5 }
 0x490   :  { %1613 = vmatprep.subr.mxu0 %v6303_v47 }
 0x491   :  { %1614 = vmatpush1.msra.mxu0 %v5282_v7 }
 0x492   :  { %1615 = vmatprep.subr.mxu0 %v6303_v47 }
 0x493   :  { %1616 = vmatpush1.msra.mxu0 %v5289_v8 }
 0x494   :  { %1617 = vmatprep.subr.mxu0 %v6303_v47 }
 0x495   :  { %1618 = vmatpush1.msra.mxu0 %v5296_v9 }
 0x496   :  { %1619 = vmatprep.subr.mxu0 %v6303_v47 }
 0x497   :  { %1620 = vmatpush1.msra.mxu0 %v5303_v10 }
 0x498   :  { %1621 = vmatprep.subr.mxu0 %v6303_v47 }
 0x499   :  { %1622 = vmatpush1.msra.mxu0 %v5310_v12 }
 0x49a   :  { %1627 = vmatprep.subr.mxu0 %v6303_v47 }
 0x49b   :  { %1628 = vmatpush2.msra.mxu0 %v5317_v13 }
 0x49c   :  { %1629 = vmatprep.subr.mxu0 %v6303_v47 }
 0x49d   :  { %1630 = vmatpush2.msra.mxu0 %v5324_v15 }
 0x49e   :  { %1631 = vmatprep.subr.mxu0 %v6303_v47 }
 0x49f   :  { %1632 = vmatpush2.msra.mxu0 %v5331_v17 }
 0x4a0   :  { %1633 = vmatprep.subr.mxu0 %v6303_v47 }
 0x4a1   :  { %1634 = vmatpush2.msra.mxu0 %v5338_v2 }
 0x4a2   :  { %1635 = vmatprep.subr.mxu0 %v6303_v47 }
 0x4a3   :  { %1636 = vmatpush2.msra.mxu0 %v5352_v25 }
 0x4a4   :  { %1637 = vmatprep.subr.mxu0 %v6303_v47 }
 0x4a5   :  { %1638 = vmatpush2.msra.mxu0 %v5359_v26 }
 0x4a6   :  { %1639 = vmatprep.subr.mxu0 %v6303_v47 }
 0x4a7   :  { %1640 = vmatpush2.msra.mxu0 %v5366_v27 }
 0x4a8   :  { %1641 = vmatprep.subr.mxu0 %v6303_v47 }
 0x4a9   :  { %1642 = vmatpush2.msra.mxu0 %v5373_v28 }
 0x4aa   :  { %1643 = vmatprep.subr.mxu0 %v6303_v47 }
 0x4ab   :  { %1644 = vmatpush2.msra.mxu0 %v5380_v30 }
 0x4ac   :  { %1645 = vmatprep.subr.mxu0 %v6303_v47 }
 0x4ad   :  { %1646 = vmatpush2.msra.mxu0 %v5387_v31 }
 0x4ae   :  { %1647 = vmatprep.subr.mxu0 %v6303_v47 }
 0x4af   :  { %1648 = vmatpush2.msra.mxu0 %v5394_v32 }
 0x4b0   :  { %1649 = vmatprep.subr.mxu0 %v6303_v47 }
 0x4b1   :  { %1650 = vmatpush2.msra.mxu0 %v5400_v33 }
 0x4b2   :  { %1651 = vmatprep.subr.mxu0 %v6303_v47 }
 0x4b3   :  { %1652 = vmatpush2.msra.mxu0 %v5406_v34 }
 0x4b4   :  { %1653 = vmatprep.subr.mxu0 %v6303_v47 }
 0x4b5   :  { %1654 = vmatpush2.msra.mxu0 %v5413_v35 }
 0x4b6   :  { %1874 = vmatprep.subr.mxu0 %v1454_v40 }
 0x4f4   :  { %v1406_v1 = vpop.permute.xlu0 %1405 }
 0x4f6   :  { %v1414_v18 = vpop.permute.xlu1 %1413 }
 0x4f8   :  { %v1408_v19 = vpop.permute.xlu0 %1407 }
 0x4f9   :  { %v1409_v16 = vsel %vm747_vm6, %v1406_v1, %v1408_v19  ;;  %v5446_v1 = vld [vmem:[%s6175_s10 + $0x8] sm:$0xff]  ;;  %vm2068_vm6 = vcmask 31744  }
 0x4fa   :  { %v1411_v21 = vmax.f32 %v1400_v39, %v1409_v16  ;;  %v1416_v22 = vpop.permute.xlu1 %1415 }
 0x4fb   :  { %v1418_v23 = vsel %vm1417_vm7, %v1414_v18, %v1416_v22  ;;  %v5452_v18 = vld [vmem:[%s6175_s10] sm:$0xff] }
 0x4fc   :  { %v1420_v24 = vmax.f32 %v1411_v21, %v1418_v23 }
 0x4fe   :  { %3450 = vmatmul.mubr.msk.f32.vlgmr.msra.gmra.mxu1 %vm1497_vm8, %v1420_v24  ;;  %vm2097_vm8 = vcmask 39936  }
 0x4ff   :  { %1729 = vmatprep.mubr.f32.mxu1 %v6303_v47  ;;  %1694 = vmatpush1.msra.mxu1 %v5424_v42 }
 0x500   :  { %1695 = vmatprep.subr.mxu1 %v5446_v1 }
 0x501   :  { %1696 = vmatpush1.msra.mxu1 %v5452_v18 }
 0x502   :  { %1765 = vmatprep.subr.mxu1 %v6303_v47 }
 0x5be   :  { %v1567_v55 = vpop.f32.mrf.mxu1 }
 0x5bf   :  { %v5432_v57 = vadd.f32 %v1567_v55, %v1490_v49 }
 0x5c0   :  { %v1569_v60 = vpop.f32.mrf.mxu1 }
 0x5c1   :  { %v1572_v61 = vsel %vm579_vm3, %v5432_v57, 0.0  ;;  %v5436_v62 = vadd.f32 %v1569_v60, %v1494_v53 }
 0x5c2   :  { %v1573_v63 = vrot.slane %v1572_v61, 4 }
 0x5c3   :  { %v1580_v52 = vsel %vm1579_vm9, %v5436_v62, 0.0 }
 0x5c4   :  { %v1574_v36 = vadd.f32 %v1573_v63, %v1572_v61  ;;  %v1581_v37 = vrot.slane %v1580_v52, 4 }
 0x5c6   :  { %v1575_v54 = vrot.slane %v1574_v36, 2  ;;  %v1582_v46 = vadd.f32 %v1581_v37, %v1580_v52 }
 0x5c8   :  { %v1576_v45 = vadd.f32 %v1575_v54, %v1574_v36  ;;  %v1583_v41 = vrot.slane %v1582_v46, 2 }
 0x5ca   :  { %v1584_v39 = vadd.f32 %v1583_v41, %v1582_v46  ;;  %v1577_v51 = vrot.slane %v1576_v45, 1 }
 0x5cc   :  { %v1585_v58 = vrot.slane %v1584_v39, 1  ;;  %v1578_v14 = vadd.f32 %v1577_v51, %v1576_v45 }
 0x5ce   :  { %v1586_v59 = vadd.f32 %v1585_v58, %v1584_v39 }
 0x5d0   :  { %3451 = vmatprep.mubr.msk.f32.mxu0 %vm1587_vm10, %v1586_v59 }
 0x5d1   :  { %1656 = vmatmul.mubr.f32.vlgmr.msra.gmra.mxu0 %v1578_v14 }
 0x5d2   :  { %1875 = vmatpush1.msra.mxu0 %v5424_v42  ;;  %1910 = vmatprep.mubr.f32.mxu0 %v6303_v47 }
 0x5d3   :  { %1876 = vmatprep.subr.mxu0 %v5446_v1 }
 0x5d4   :  { %1877 = vmatpush1.msra.mxu0 %v5452_v18 }
 0x5d5   :  { %1958 = vmatprep.subr.mxu0 %v1454_v40 }
 0x691   :  { %v1657_v19 = vpop.f32.mrf.mxu0 }
 0x692   :  { %v5458_v16 = vmul.f32 0.033333335, %v1657_v19 }
 0x693   :  { %v1659_v21 = vpop.f32.mrf.mxu0 }
 0x694   :  { %3452 = vmatmul.mubr.msk.f32.vlgmr.msra.gmra.mxu1 %vm1417_vm7, %v5458_v16 }
 0x695   :  { %1766 = vmatpush1.msra.mxu1 %v5201_v20 }
 0x696   :  { %1767 = vmatprep.subr.mxu1 %v6303_v47 }
 0x697   :  { %1768 = vmatpush1.msra.mxu1 %v5206_v44 }
 0x698   :  { %1769 = vmatprep.subr.mxu1 %v6303_v47 }
 0x699   :  { %1770 = vmatpush1.msra.mxu1 %v5215_v56 }
 0x69a   :  { %1771 = vmatprep.subr.mxu1 %v6303_v47 }
 0x69b   :  { %1772 = vmatpush1.msra.mxu1 %v5224_v29 }
 0x69c   :  { %1773 = vmatprep.subr.mxu1 %v6303_v47 }
 0x69d   :  { %1774 = vmatpush1.msra.mxu1 %v5232_v38 }
 0x69e   :  { %1775 = vmatprep.subr.mxu1 %v6303_v47 }
 0x69f   :  { %1776 = vmatpush1.msra.mxu1 %v5239_v6 }
 0x6a0   :  { %1777 = vmatprep.subr.mxu1 %v6303_v47 }
 0x6a1   :  { %1778 = vmatpush1.msra.mxu1 %v5247_v43 }
 0x6a2   :  { %1779 = vmatprep.subr.mxu1 %v6303_v47 }
 0x6a3   :  { %1780 = vmatpush1.msra.mxu1 %v5254_v0 }
 0x6a4   :  { %1781 = vmatprep.subr.mxu1 %v6303_v47 }
 0x6a5   :  { %1782 = vmatpush1.msra.mxu1 %v5261_v4 }
 0x6a6   :  { %1783 = vmatprep.subr.mxu1 %v6303_v47 }
 0x6a7   :  { %1784 = vmatpush1.msra.mxu1 %v5268_v3 }
 0x6a8   :  { %1785 = vmatprep.subr.mxu1 %v6303_v47 }
 0x6a9   :  { %1786 = vmatpush1.msra.mxu1 %v5275_v5 }
 0x6aa   :  { %1787 = vmatprep.subr.mxu1 %v6303_v47 }
 0x6ab   :  { %1788 = vmatpush1.msra.mxu1 %v5282_v7 }
 0x6ac   :  { %1789 = vmatprep.subr.mxu1 %v6303_v47 }
 0x6ad   :  { %1790 = vmatpush1.msra.mxu1 %v5289_v8 }
 0x6ae   :  { %1791 = vmatprep.subr.mxu1 %v6303_v47 }
 0x6af   :  { %1792 = vmatpush1.msra.mxu1 %v5296_v9 }
 0x6b0   :  { %1793 = vmatprep.subr.mxu1 %v6303_v47 }
 0x6b1   :  { %1794 = vmatpush1.msra.mxu1 %v5303_v10 }
 0x6b2   :  { %1795 = vmatprep.subr.mxu1 %v6303_v47 }
 0x6b3   :  { %1796 = vmatpush1.msra.mxu1 %v5310_v12 }
 0x6b4   :  { %1801 = vmatprep.subr.mxu1 %v6303_v47 }
 0x6b5   :  { %1802 = vmatpush2.msra.mxu1 %v5317_v13 }
 0x6b6   :  { %1803 = vmatprep.subr.mxu1 %v6303_v47 }
 0x6b7   :  { %1804 = vmatpush2.msra.mxu1 %v5324_v15 }
 0x6b8   :  { %1805 = vmatprep.subr.mxu1 %v6303_v47 }
 0x6b9   :  { %1806 = vmatpush2.msra.mxu1 %v5331_v17 }
 0x6ba   :  { %1807 = vmatprep.subr.mxu1 %v6303_v47 }
 0x6bb   :  { %1808 = vmatpush2.msra.mxu1 %v5338_v2 }
 0x6bc   :  { %1809 = vmatprep.subr.mxu1 %v6303_v47 }
 0x6bd   :  { %1810 = vmatpush2.msra.mxu1 %v5352_v25 }
 0x6be   :  { %1811 = vmatprep.subr.mxu1 %v6303_v47 }
 0x6bf   :  { %1812 = vmatpush2.msra.mxu1 %v5359_v26 }
 0x6c0   :  { %1813 = vmatprep.subr.mxu1 %v6303_v47 }
 0x6c1   :  { %1814 = vmatpush2.msra.mxu1 %v5366_v27 }
 0x6c2   :  { %1815 = vmatprep.subr.mxu1 %v6303_v47 }
 0x6c3   :  { %1816 = vmatpush2.msra.mxu1 %v5373_v28  ;;  %v1836_v28 = vld [vmem:[%s6176_s11] sm:$0x1]  ;;  %s3888_s11 = smov 48  }
 0x6c4   :  { %1817 = vmatprep.subr.mxu1 %v6303_v47 }
 0x6c5   :  { %1818 = vmatpush2.msra.mxu1 %v5380_v30 }
 0x6c6   :  { %1819 = vmatprep.subr.mxu1 %v6303_v47 }
 0x6c7   :  { %1820 = vmatpush2.msra.mxu1 %v5387_v31 }
 0x6c8   :  { %1821 = vmatprep.subr.mxu1 %v6303_v47 }
 0x6c9   :  { %1822 = vmatpush2.msra.mxu1 %v5394_v32  ;;  %v1840_v32 = vld [vmem:[%s6177_s12] sm:$0x1]  ;;  %s3889_s12 = smov 96  }
 0x6ca   :  { %1823 = vmatprep.subr.mxu1 %v6303_v47 }
 0x6cb   :  { %1824 = vmatpush2.msra.mxu1 %v5400_v33 }
 0x6cc   :  { %1825 = vmatprep.subr.mxu1 %v6303_v47 }
 0x6cd   :  { %1826 = vmatpush2.msra.mxu1 %v5406_v34 }
 0x6ce   :  { %1827 = vmatprep.subr.mxu1 %v6303_v47 }
 0x6cf   :  { %1828 = vmatpush2.msra.mxu1 %v5413_v35 }
 0x754   :  { %v1731_v20 = vpop.f32.mrf.mxu1 }
 0x755   :  { %v1739_v44 = vrot.slane %v1731_v20, %v6319_v11 }
 0x756   :  { %v1733_v56 = vpop.f32.mrf.mxu1 }
 0x757   :  { %v1744_v29 = vsub.f32 %v5432_v57, %v1739_v44  ;;  %v1743_v38 = vrot.slane %v1733_v56, %v6319_v11 }
 0x759   :  { %v1746_v6 = vmul.f32 %v1744_v29, %v1744_v29  ;;  %v1745_v43 = vsub.f32 %v5436_v62, %v1743_v38 }
 0x75b   :  { %v1748_v0 = vsel %vm579_vm3, %v1746_v6, 0.0  ;;  %v1747_v4 = vmul.f32 %v1745_v43, %v1745_v43  ;;  %v2100_v6 = vld [vmem:[%s6178_s13 + $0x8] sm:$0x3]  ;;  %v2099_v43 = vld [vmem:[%s6178_s13] sm:$0xff]  ;;  %s3893_s13 = smov 5  }
 0x75c   :  { %v1749_v3 = vrot.slane %v1748_v0, 4 }
 0x75d   :  { %v1755_v5 = vsel %vm1579_vm9, %v1747_v4, 0.0  ;;  %vm2101_vm9 = vcmask 80896  }
 0x75e   :  { %v1750_v7 = vadd.f32 %v1749_v3, %v1748_v0  ;;  %v1756_v8 = vrot.slane %v1755_v5, 4 }
 0x760   :  { %v1751_v9 = vrot.slane %v1750_v7, 2  ;;  %v1757_v10 = vadd.f32 %v1756_v8, %v1755_v5 }
 0x762   :  { %v1752_v12 = vadd.f32 %v1751_v9, %v1750_v7  ;;  %v1758_v13 = vrot.slane %v1757_v10, 2 }
 0x764   :  { %v1759_v15 = vadd.f32 %v1758_v13, %v1757_v10  ;;  %v1753_v17 = vrot.slane %v1752_v12, 1 }
 0x766   :  { %v1760_v2 = vrot.slane %v1759_v15, 1  ;;  %v1754_v23 = vadd.f32 %v1753_v17, %v1752_v12 }
 0x768   :  { %v1761_v22 = vadd.f32 %v1760_v2, %v1759_v15 }
 0x76a   :  { %3453 = vmatprep.mubr.msk.f32.mxu1 %vm1587_vm10, %v1761_v22  ;;  %vm2188_vm10 = vcmask 1044480  }
 0x76b   :  { %1830 = vmatmul.mubr.f32.vlgmr.msra.gmra.mxu1 %v1754_v23 }
 0x82b   :  { %v1831_v24 = vpop.f32.mrf.mxu1 }
 0x82c   :  { %v1835_v25 = vmul.f32 0.033333335, %v1831_v24 }
 0x82d   :  { %v1833_v26 = vpop.f32.mrf.mxu1 }
 0x82e   :  { %v1837_v27 = vadd.f32 1e-05, %v1835_v25 }
 0x830   :  { %3850 = vrsqrt.f32 %v1837_v27 }
 0x83d   :  { %v3851_v30 = vpop.eup %3850 }
 0x83e   :  { %v1839_v31 = vmul.f32 %v3851_v30, %v1836_v28 }
 0x840   :  { %3454 = vmatmul.mubr.msk.f32.vlgmr.msra.gmra.mxu0 %vm1417_vm7, %v1839_v31  ;;  %v1841_v33 = vmul.f32 %v1839_v31, %v5458_v16 }
 0x841   :  { %1959 = vmatpush1.msra.mxu0 %v5424_v42  ;;  %1994 = vmatprep.mubr.f32.mxu0 %v6303_v47 }
 0x842   :  { %1960 = vmatprep.subr.mxu0 %v5446_v1  ;;  %v1842_v34 = vsub.f32 %v1840_v32, %v1841_v33 }
 0x843   :  { %1961 = vmatpush1.msra.mxu0 %v5452_v18 }
 0x844   :  { %3455 = vmatmul.mubr.msk.f32.vlgmr.msra.gmra.mxu0 %vm1417_vm7, %v1842_v34  ;;  %3805 = vmatprep.subr.mxu0 %v6303_v47 }
 0x845   :  { %3809 = vmatprep.mubr.msk.f32.mxu0 %vm3885_vm2, %v6303_v47  ;;  %3806 = vmatpush3.msk.msra.mxu0 %vm579_vm3, %v2100_v6 }
 0x846   :  { %3807 = vmatprep.subr.mxu0 %v6303_v47 }
 0x847   :  { %3808 = vmatpush3.msra.mxu0 %v2099_v43 }
 0x848   :  { %3812 = vmatprep.subr.mxu0 %v6303_v47 }
 0x900   :  { %v1912_v35 = vpop.f32.mrf.mxu0 }
 0x901   :  { %v1920_v40 = vrot.slane %v1912_v35, %v6319_v11  ;;  %v2184_v35 = vld [vmem:[%s6179_s14] sm:$0x1f] }
 0x902   :  { %v1914_v48 = vpop.f32.mrf.mxu0 }
 0x903   :  { %v1924_v42 = vrot.slane %v1914_v48, %v6319_v11  ;;  %v1925_v53 = vmul.f32 %v1920_v40, %v5432_v57 }
 0x904   :  { %v1996_v49 = vpop.f32.mrf.mxu0 }
 0x905   :  { %v2004_v55 = vrot.slane %v1996_v49, %v6319_v11  ;;  %v1926_v61 = vmul.f32 %v1924_v42, %v5436_v62 }
 0x906   :  { %v1998_v60 = vpop.f32.mrf.mxu0 }
 0x907   :  { %v2009_v63 = vadd.f32 %v2004_v55, %v1925_v53  ;;  %v2008_v52 = vrot.slane %v1998_v60, %v6319_v11 }
 0x909   :  { %v2011_v36 = vmax.f32 %v2009_v63, 0.0  ;;  %v2010_v37 = vadd.f32 %v2008_v52, %v1926_v61  ;;  %v2290_v52 = vld [vmem:[%s6180_s15 + $0x8] sm:$0xff] }
 0x90b   :  { %v2012_v54 = vmax.f32 %v2010_v37, 0.0  ;;  %2015 = vrot.lane.b32.xlu0 %v2011_v36, %s3888_s11 }
 0x90d   :  { %2017 = vrot.lane.b32.xlu1 %v2012_v54, %s3888_s11 }
 0x90f   :  { %2023 = vrot.lane.b32.xlu0 %v2012_v54, %s3889_s12 }
 0x97d   :  { %v2016_v57 = vpop.permute.xlu0 %2015 }
 0x97f   :  { %v2018_v46 = vpop.permute.xlu1 %2017 }
 0x980   :  { %v2020_v45 = vsel %vm2019_vm11, %v2016_v57, %v2018_v46 }
 0x981   :  { %v2024_v62 = vpop.permute.xlu0 %2023  ;;  %v2022_v41 = vmax.f32 %v2011_v36, %v2020_v45  ;;  %v2289_v36 = vld [vmem:[%s6180_s15] sm:$0xff] }
 0x983   :  { %v5554_v39 = vmax.f32 %v2022_v41, %v2024_v62 }
 0x985   :  { %2041 = vrot.lane.b32.xlu0 %v5554_v39, %s3889_s12  ;;  %2034 = vrot.lane.b32.xlu1 %v5554_v39, %s3890_s7  ;;  %v2074_v51 = vsel %vm2073_vm12, %v5554_v39, -inf  ;;  %v2078_v58 = vsel %vm2077_vm13, %v5554_v39, -inf  ;;  %v2070_v59 = vsel %vm2027_vm14, %v5554_v39, -inf  ;;  %v2086_v14 = vsel %vm2085_vm15, %v5554_v39, -inf }
 0x986   :  { %v2082_v1 = vsel %vm2081_vm0, %v5554_v39, -inf  ;;  %v2028_v18 = vsel %vm2027_vm14, %v5554_v39, 0.0  ;;  %vm2483_vm12 = vcmask 523264  }
 0x989   :  { %2055 = vrot.lane.b32.xlu0 %v5554_v39, %s3891_s1  ;;  %2048 = vrot.lane.b32.xlu1 %v5554_v39, %s3892_s9 }
 0x9a8   :  { %2075 = vmax.xlane.f32.xlu0 %v2074_v51 }
 0x9ac   :  { %2079 = vmax.xlane.f32.xlu0 %v2078_v58 }
 0x9ad   :  { %2071 = vmax.xlane.f32.xlu1 %v2070_v59 }
 0x9b0   :  { %2087 = vmax.xlane.f32.xlu0 %v2086_v14 }
 0x9b1   :  { %2083 = vmax.xlane.f32.xlu1 %v2082_v1 }
 0x9b5   :  { %2029 = vadd.xlane.f32.xlu1 %v2028_v18 }
 0x9f7   :  { %v2042_v19 = vpop.permute.xlu0 %2041  ;;  %v2035_v16 = vpop.permute.xlu1 %2034 }
 0x9f8   :  { %v2037_v21 = vsel %vm2027_vm14, %v2035_v16, 0.0  ;;  %v2044_v20 = vsel %vm2027_vm14, %v2042_v19, 0.0  ;;  %v2372_v16 = vld [vmem:[%s6182_s17] sm:$0x3] }
 0x9f9   :  { %2038 = vadd.xlane.f32.xlu0 %v2037_v21  ;;  %2045 = vadd.xlane.f32.xlu1 %v2044_v20  ;;  %v3461_v21 = vld [vmem:[%s6181_s16] ss:$0 sm:$0xff]  ;;  %s3894_s16 = smov 32  }
 0x9fb   :  { %v2056_v44 = vpop.permute.xlu0 %2055  ;;  %v2049_v56 = vpop.permute.xlu1 %2048 }
 0x9fc   :  { %v2051_v29 = vsel %vm2027_vm14, %v2049_v56, 0.0  ;;  %v2058_v38 = vsel %vm2027_vm14, %v2056_v44, 0.0 }
 0x9fd   :  { %2052 = vadd.xlane.f32.xlu0 %v2051_v29  ;;  %2059 = vadd.xlane.f32.xlu1 %v2058_v38  ;;  %v3463_v38 = vld [vmem:[%s6183_s18] ss:$0 sm:$0xff] }
 0xa31   :  { %v2076_v0 = vpop.xlane.xlu0 %2075 }
 0xa35   :  { %v2080_v4 = vpop.xlane.xlu0 %2079 }
 0xa36   :  { %v2072_v3 = vpop.xlane.xlu1 %2071 }
 0xa37   :  { %v2089_v5 = vsel %vm2062_vm1, %v2072_v3, %v2076_v0 }
 0xa38   :  { %v2090_v7 = vsel %vm2064_vm4, %v2089_v5, %v2080_v4 }
 0xa39   :  { %v2088_v9 = vpop.xlane.xlu0 %2087 }
 0xa3a   :  { %v2084_v8 = vpop.xlane.xlu1 %2083 }
 0xa3b   :  { %v2091_v10 = vsel %vm2066_vm5, %v2090_v7, %v2084_v8 }
 0xa3c   :  { %v2092_v12 = vsel %vm2068_vm6, %v2091_v10, %v2088_v9 }
 0xa3d   :  { %2094 = vrot.lane.b32.xlu0 %v2092_v12, %s3893_s13 }
 0xa3e   :  { %v2030_v13 = vpop.xlane.xlu1 %2029 }
 0xa3f   :  { %v2032_v23 = vmul.f32 0.0625, %v2030_v13 }
 0xa82   :  { %v2039_v15 = vpop.xlane.xlu0 %2038  ;;  %v2046_v17 = vpop.xlane.xlu1 %2045 }
 0xa83   :  { %v2040_v2 = vmul.f32 0.0625, %v2039_v15  ;;  %v2047_v24 = vmul.f32 0.0625, %v2046_v17 }
 0xa85   :  { %v2063_v25 = vsel %vm2062_vm1, %v2032_v23, %v2040_v2 }
 0xa86   :  { %v2053_v22 = vpop.xlane.xlu0 %2052  ;;  %v2060_v27 = vpop.xlane.xlu1 %2059  ;;  %v2065_v28 = vsel %vm2064_vm4, %v2063_v25, %v2047_v24  ;;  %v6328_v25 = vld [vmem:[#allocation82_spill] sm:$0xff] }
 0xa87   :  { %v2054_v26 = vmul.f32 0.0625, %v2053_v22  ;;  %v2061_v30 = vmul.f32 0.0625, %v2060_v27 }
 0xa89   :  { %v2067_v31 = vsel %vm2066_vm5, %v2065_v28, %v2054_v26  ;;  %v6329_v26 = vld [vmem:[#allocation84_spill] sm:$0xff] }
 0xa8a   :  { %v2069_v33 = vsel %vm2068_vm6, %v2067_v31, %v2061_v30  ;;  %2699 = vmatprep.subr.mxu1 %v6329_v26 }
 0xaaf   :  { %v2095_v32 = vpop.permute.xlu0 %2094 }
 0xab0   :  { %v2098_v34 = vsel %vm2097_vm8, %v2069_v33, %v2095_v32 }
 0xab1   :  { %3810 = vmatmul.mubr.msk.f32.vlgmr.msra.gmra.mxu0 %vm2101_vm9, %v2098_v34 }
 0xab2   :  { %3814 = vmatprep.mubr.msk.f32.mxu0 %vm3885_vm2, %v6303_v47  ;;  %3813 = vmatpush3.msk.msra.mxu0 %vm2188_vm10, %v2184_v35 }
 0xab3   :  { %3817 = vmatprep.subr.mxu0 %v6303_v47 }
 0xb71   :  { %v2174_v40 = vpop.f32.mrf.mxu0 }
 0xb72   :  { %v3458_v48 = vmul.f32 -1.442695, %v2174_v40 }
 0xb73   :  { %v3811_v42 = vpop.f32.mrf.mxu0 }
 0xb74   :  { %3852 = vpow2.f32 %v3458_v48 }
 0xb81   :  { %v3853_v49 = vpop.eup %3852 }
 0xb82   :  { %v2181_v53 = vadd.f32 1.0, %v3853_v49 }
 0xb84   :  { %3854 = vrcp.f32 %v2181_v53 }
 0xb91   :  { %v3855_v55 = vpop.eup %3854 }
 0xb92   :  { %3815 = vmatmul.mubr.msk.f32.vlgmr.msra.gmra.mxu0 %vm2097_vm8, %v3855_v55 }
 0xb93   :  { %3821 = vmatprep.mubr.msk.f32.mxu0 %vm3885_vm2, %v6303_v47  ;;  %3818 = vmatpush3.msra.mxu0 %v2290_v52 }
 0xb94   :  { %3819 = vmatprep.subr.mxu0 %v6303_v47 }
 0xb95   :  { %3820 = vmatpush3.msra.mxu0 %v2289_v36 }
 0xb96   :  { %3824 = vmatprep.subr.mxu0 %v6303_v47 }
 0xc52   :  { %v2258_v60 = vpop.f32.mrf.mxu0 }
 0xc53   :  { %v5604_v61 = vmul.f32 %v2258_v60, %v5554_v39 }
 0xc54   :  { %v3816_v63 = vpop.f32.mrf.mxu0 }
 0xc55   :  { %2274 = vrot.lane.b32.xlu0 %v5604_v61, %s3892_s9  ;;  %2264 = vrot.lane.b32.xlu1 %v5604_v61, %s3890_s7 }
 0xc59   :  { %2269 = vrot.lane.b32.xlu1 %v5604_v61, %s3889_s12 }
 0xc5d   :  { %2279 = vrot.lane.b32.xlu1 %v5604_v61, %s3891_s1 }
 0xcc7   :  { %v2265_v37 = vpop.permute.xlu1 %2264  ;;  %v2275_v41 = vpop.permute.xlu0 %2274 }
 0xcc8   :  { %v2267_v54 = vmax.f32 %v5604_v61, %v2265_v37  ;;  %v2268_v57 = vadd.f32 %v2265_v37, %v5604_v61 }
 0xccb   :  { %v2270_v46 = vpop.permute.xlu1 %2269 }
 0xccc   :  { %v2272_v45 = vmax.f32 %v2267_v54, %v2270_v46  ;;  %v2273_v62 = vadd.f32 %v2270_v46, %v2268_v57 }
 0xcce   :  { %v2278_v39 = vadd.f32 %v2275_v41, %v2273_v62  ;;  %v2277_v58 = vmax.f32 %v2272_v45, %v2275_v41 }
 0xccf   :  { %v2280_v51 = vpop.permute.xlu1 %2279 }
 0xcd0   :  { %v2283_v59 = vadd.f32 %v2280_v51, %v2278_v39  ;;  %v2282_v1 = vmax.f32 %v2277_v58, %v2280_v51 }
 0xcd2   :  { %v2284_v14 = vmul.f32 0.2, %v2283_v59 }
 0xcd4   :  { %v2286_v18 = vrot.slane %v2284_v14, 6 }
 0xcd6   :  { %v2288_v19 = vsel %vm579_vm3, %v2282_v1, %v2286_v18 }
 0xcd7   :  { %3822 = vmatmul.mubr.msk.f32.vlgmr.msra.gmra.mxu0 %vm1417_vm7, %v2288_v19 }
 0xcd8   :  { %3826 = vmatprep.mubr.msk.f32.mxu0 %vm3885_vm2, %v6303_v47  ;;  %3825 = vmatpush3.msk.msra.mxu0 %vm579_vm3, %v2372_v16  ;;  %vm2480_vm3 = vcmask 261120  }
 0xcd9   :  { %2628 = vmatprep.subr.mxu0 %v6328_v25 }
 0xd97   :  { %v2367_v20 = vpop.f32.mrf.mxu0 }
 0xd98   :  { %v2368_v44 = vadd.f32 %v3461_v21, %v2367_v20 }
 0xd99   :  { %v3823_v56 = vpop.f32.mrf.mxu0 }
 0xd9a   :  { %v2371_v29 = vmax.f32 %v2368_v44, 0.0 }
 0xd9c   :  { %3827 = vmatmul.mubr.msk.f32.vlgmr.msra.gmra.mxu0 %vm2064_vm4, %v2371_v29 }
 0xe5c   :  { %v2452_v6 = vpop.f32.mrf.mxu0 }
 0xe5d   :  { %v2453_v43 = vadd.f32 %v3463_v38, %v2452_v6 }
 0xe5e   :  { %v3828_v0 = vpop.f32.mrf.mxu0 }
 0xe5f   :  { %v2457_v4 = vrot.slane %v2453_v43, 2 }
 0xe61   :  { %v2459_v3 = vadd.f32 %v2457_v4, %v2453_v43 }
 0xe63   :  { %v3466_v5 = vmul.f32 -1.442695, %v2459_v3 }
 0xe65   :  { %3856 = vpow2.f32 %v3466_v5 }
 0xe72   :  { %v3857_v7 = vpop.eup %3856 }
 0xe73   :  { %v2463_v8 = vadd.f32 1.0, %v3857_v7 }
 0xe75   :  { %3858 = vrcp.f32 %v2463_v8 }
 0xe82   :  { %v3859_v9 = vpop.eup %3858 }
 0xe83   :  { %2470 = vrot.lane.b32.xlu1 %v3859_v9, %s3894_s16  ;;  %2467 = vrot.lane.b32.xlu0 %v3859_v9, %s3887_s4 }
 0xe87   :  { %2476 = vrot.lane.b32.xlu1 %v3859_v9, %s3891_s1  ;;  %2473 = vrot.lane.b32.xlu0 %v3859_v9, %s3888_s11 }
 0xef5   :  { %v2471_v10 = vpop.permute.xlu1 %2470  ;;  %v2468_v12 = vpop.permute.xlu0 %2467 }
 0xef6   :  { %v2479_v13 = vsel %vm1417_vm7, %v3859_v9, %v2468_v12 }
 0xef7   :  { %v2481_v17 = vsel %vm2480_vm3, %v2479_v13, %v2471_v10 }
 0xef9   :  { %v2477_v15 = vpop.permute.xlu1 %2476  ;;  %v2474_v2 = vpop.permute.xlu0 %2473 }
 0xefa   :  { %v2482_v22 = vsel %vm2019_vm11, %v2481_v17, %v2474_v2 }
 0xefb   :  { %v2484_v23 = vsel %vm2483_vm12, %v2482_v22, %v2477_v15 }
 0xefc   :  { %v5645_v24 = vmul.f32 %v2484_v23, %v5604_v61 }
 0xefd   :  { %3880 = dma.done.wait [#allocation3], 10240 }
 0xefe   :  { %3881 = vsyncadd [#allocation3], 4294957056  ;;  %v6330_v27 = vld [vmem:[#allocation81_spill] sm:$0xff]  ;;  %v6331_v28 = vld [vmem:[#allocation83_spill] sm:$0xff]  ;;  %vm2612_vm11 = vcmask 654336   ;;  %2680 = vmatprep.mubr.f32.mxu0 %v6303_v47  ;;  %2751 = vmatprep.mubr.f32.mxu1 %v6303_v47 }
 0xeff   :  { %2629 = vmatpush1.msra.mxu0 %v6330_v27  ;;  %2700 = vmatpush1.msra.mxu1 %v6331_v28  ;;  %v6332_v30 = vld [vmem:[#allocation74_spill] sm:$0xff]  ;;  %v6333_v31 = vld [vmem:[#allocation76_spill] sm:$0xff]  ;;  %v6334_v32 = vld [vmem:[#allocation73_spill] sm:$0xff] }
 0xf00   :  { %2630 = vmatprep.subr.mxu0 %v6332_v30  ;;  %2701 = vmatprep.subr.mxu1 %v6333_v31  ;;  %v6335_v33 = vld [vmem:[#allocation75_spill] sm:$0xff]  ;;  %v6336_v34 = vld [vmem:[#allocation66_spill] sm:$0xff]  ;;  %v6337_v35 = vld [vmem:[#allocation68_spill] sm:$0xff] }
 0xf01   :  { %2631 = vmatpush1.msra.mxu0 %v6334_v32  ;;  %2702 = vmatpush1.msra.mxu1 %v6335_v33  ;;  %v6338_v40 = vld [vmem:[#allocation65_spill] sm:$0xff]  ;;  %v6339_v48 = vld [vmem:[#allocation67_spill] sm:$0xff]  ;;  %v6340_v42 = vld [vmem:[#allocation58_spill] sm:$0xff] }
 0xf02   :  { %2632 = vmatprep.subr.mxu0 %v6336_v34  ;;  %2703 = vmatprep.subr.mxu1 %v6337_v35  ;;  %v6341_v49 = vld [vmem:[#allocation60_spill] sm:$0xff]  ;;  %v6342_v53 = vld [vmem:[#allocation57_spill] sm:$0xff]  ;;  %v6343_v55 = vld [vmem:[#allocation59_spill] sm:$0xff] }
 0xf03   :  { %2633 = vmatpush1.msra.mxu0 %v6338_v40  ;;  %2704 = vmatpush1.msra.mxu1 %v6339_v48  ;;  %v6344_v60 = vld [vmem:[#allocation50_spill] sm:$0xff]  ;;  %v6345_v61 = vld [vmem:[#allocation52_spill] sm:$0xff]  ;;  %v6346_v63 = vld [vmem:[#allocation49_spill] sm:$0xff] }
 0xf04   :  { %2634 = vmatprep.subr.mxu0 %v6340_v42  ;;  %2705 = vmatprep.subr.mxu1 %v6341_v49  ;;  %v6347_v52 = vld [vmem:[#allocation51_spill] sm:$0xff]  ;;  %v6348_v36 = vld [vmem:[#allocation42_spill] sm:$0xff]  ;;  %v6349_v37 = vld [vmem:[#allocation44_spill] sm:$0xff] }
 0xf05   :  { %2635 = vmatpush1.msra.mxu0 %v6342_v53  ;;  %2706 = vmatpush1.msra.mxu1 %v6343_v55  ;;  %v6350_v54 = vld [vmem:[#allocation41_spill] sm:$0xff]  ;;  %v6351_v57 = vld [vmem:[#allocation43_spill] sm:$0xff]  ;;  %v6352_v46 = vld [vmem:[#allocation34_spill] sm:$0xff] }
 0xf06   :  { %2636 = vmatprep.subr.mxu0 %v6344_v60  ;;  %2707 = vmatprep.subr.mxu1 %v6345_v61  ;;  %v6353_v45 = vld [vmem:[#allocation36_spill] sm:$0xff]  ;;  %v6354_v62 = vld [vmem:[#allocation33_spill] sm:$0xff]  ;;  %v6355_v41 = vld [vmem:[#allocation35_spill] sm:$0xff] }
 0xf07   :  { %2637 = vmatpush1.msra.mxu0 %v6346_v63  ;;  %2708 = vmatpush1.msra.mxu1 %v6347_v52  ;;  %v6356_v39 = vld [vmem:[#allocation26_spill] sm:$0xff]  ;;  %v6357_v51 = vld [vmem:[#allocation28_spill] sm:$0xff]  ;;  %v6358_v58 = vld [vmem:[#allocation25_spill] sm:$0xff] }
 0xf08   :  { %2638 = vmatprep.subr.mxu0 %v6348_v36  ;;  %2709 = vmatprep.subr.mxu1 %v6349_v37  ;;  %v6359_v59 = vld [vmem:[#allocation27_spill] sm:$0xff]  ;;  %v6360_v14 = vld [vmem:[#allocation18_spill] sm:$0xff]  ;;  %v6361_v1 = vld [vmem:[#allocation20_spill] sm:$0xff] }
 0xf09   :  { %2639 = vmatpush1.msra.mxu0 %v6350_v54  ;;  %2710 = vmatpush1.msra.mxu1 %v6351_v57  ;;  %v6362_v18 = vld [vmem:[#allocation17_spill] sm:$0xff]  ;;  %v6363_v19 = vld [vmem:[#allocation19_spill] sm:$0xff]  ;;  %v6364_v16 = vld [vmem:[#allocation10_spill] sm:$0xff] }
 0xf0a   :  { %2640 = vmatprep.subr.mxu0 %v6352_v46  ;;  %2711 = vmatprep.subr.mxu1 %v6353_v45  ;;  %v6365_v21 = vld [vmem:[#allocation12_spill] sm:$0xff]  ;;  %v6366_v20 = vld [vmem:[#allocation9_spill] sm:$0xff]  ;;  %v6367_v44 = vld [vmem:[#allocation11_spill] sm:$0xff] }
 0xf0b   :  { %2641 = vmatpush1.msra.mxu0 %v6354_v62  ;;  %2712 = vmatpush1.msra.mxu1 %v6355_v41  ;;  %v6368_v56 = vld [vmem:[#allocation86_spill] sm:$0xff]  ;;  %v6369_v29 = vld [vmem:[#allocation88_spill] sm:$0xff]  ;;  %v6370_v38 = vld [vmem:[#allocation85_spill] sm:$0xff] }
 0xf0c   :  { %2642 = vmatprep.subr.mxu0 %v6356_v39  ;;  %2713 = vmatprep.subr.mxu1 %v6357_v51  ;;  %v6371_v6 = vld [vmem:[#allocation87_spill] sm:$0xff]  ;;  %v6372_v43 = vld [vmem:[#allocation78_spill] sm:$0xff]  ;;  %v6373_v0 = vld [vmem:[#allocation80_spill] sm:$0xff] }
 0xf0d   :  { %2643 = vmatpush1.msra.mxu0 %v6358_v58  ;;  %2714 = vmatpush1.msra.mxu1 %v6359_v59  ;;  %v6374_v4 = vld [vmem:[#allocation77_spill] sm:$0xff]  ;;  %v6375_v3 = vld [vmem:[#allocation79_spill] sm:$0xff]  ;;  %v6376_v5 = vld [vmem:[#allocation70_spill] sm:$0xff] }
 0xf0e   :  { %2644 = vmatprep.subr.mxu0 %v6360_v14  ;;  %2715 = vmatprep.subr.mxu1 %v6361_v1  ;;  %v6377_v7 = vld [vmem:[#allocation72_spill] sm:$0xff]  ;;  %v6378_v8 = vld [vmem:[#allocation69_spill] sm:$0xff]  ;;  %v6379_v9 = vld [vmem:[#allocation71_spill] sm:$0xff] }
 0xf0f   :  { %2645 = vmatpush1.msra.mxu0 %v6362_v18  ;;  %2716 = vmatpush1.msra.mxu1 %v6363_v19  ;;  %v6380_v10 = vld [vmem:[#allocation62_spill] sm:$0xff]  ;;  %v6381_v12 = vld [vmem:[#allocation64_spill] sm:$0xff]  ;;  %v6382_v13 = vld [vmem:[#allocation61_spill] sm:$0xff] }
 0xf10   :  { %2646 = vmatprep.subr.mxu0 %v6364_v16  ;;  %2717 = vmatprep.subr.mxu1 %v6365_v21  ;;  %v6383_v15 = vld [vmem:[#allocation63_spill] sm:$0xff]  ;;  %v6384_v17 = vld [vmem:[#allocation54_spill] sm:$0xff]  ;;  %v6385_v2 = vld [vmem:[#allocation56_spill] sm:$0xff] }
 0xf11   :  { %2647 = vmatpush1.msra.mxu0 %v6366_v20  ;;  %2718 = vmatpush1.msra.mxu1 %v6367_v44  ;;  %v6386_v22 = vld [vmem:[#allocation53_spill] sm:$0xff]  ;;  %v6387_v23 = vld [vmem:[#allocation55_spill] sm:$0xff]  ;;  %v6388_v25 = vld [vmem:[#allocation46_spill] sm:$0xff] }
 0xf12   :  { %3467 = vmatmul.mubr.msk.f32.vlgmr.msra.gmra.mxu0 %vm2612_vm11, %v5645_v24  ;;  %3468 = vmatmul.mubr.msk.f32.vlgmr.msra.gmra.mxu1 %vm2612_vm11, %v5645_v24  ;;  %v6389_v26 = vld [vmem:[#allocation48_spill] sm:$0xff]  ;;  %v6390_v27 = vld [vmem:[#allocation45_spill] sm:$0xff]  ;;  %v6391_v28 = vld [vmem:[#allocation47_spill] sm:$0xff] }
 0xf13   :  { %2770 = vmatprep.subr.mxu0 %v6368_v56  ;;  %2841 = vmatprep.subr.mxu1 %v6369_v29  ;;  %v6392_v30 = vld [vmem:[#allocation38_spill] sm:$0xff]  ;;  %v6393_v31 = vld [vmem:[#allocation40_spill] sm:$0xff]  ;;  %v6394_v32 = vld [vmem:[#allocation37_spill] sm:$0xff] }
 0xf14   :  { %2771 = vmatpush1.msra.mxu0 %v6370_v38  ;;  %2842 = vmatpush1.msra.mxu1 %v6371_v6  ;;  %v6395_v33 = vld [vmem:[#allocation39_spill] sm:$0xff]  ;;  %v6396_v34 = vld [vmem:[#allocation30_spill] sm:$0xff]  ;;  %v6397_v35 = vld [vmem:[#allocation32_spill] sm:$0xff] }
 0xf15   :  { %2772 = vmatprep.subr.mxu0 %v6372_v43  ;;  %2843 = vmatprep.subr.mxu1 %v6373_v0  ;;  %v6398_v40 = vld [vmem:[#allocation29_spill] sm:$0xff]  ;;  %v6399_v48 = vld [vmem:[#allocation31_spill] sm:$0xff]  ;;  %v6400_v42 = vld [vmem:[#allocation22_spill] sm:$0xff] }
 0xf16   :  { %2773 = vmatpush1.msra.mxu0 %v6374_v4  ;;  %2844 = vmatpush1.msra.mxu1 %v6375_v3  ;;  %v6401_v49 = vld [vmem:[#allocation24_spill] sm:$0xff]  ;;  %v6402_v53 = vld [vmem:[#allocation21_spill] sm:$0xff]  ;;  %v6403_v55 = vld [vmem:[#allocation14_spill] sm:$0xff] }
 0xf17   :  { %2774 = vmatprep.subr.mxu0 %v6376_v5  ;;  %2845 = vmatprep.subr.mxu1 %v6377_v7  ;;  %v6404_v60 = vld [vmem:[#allocation23_spill] sm:$0xff]  ;;  %v6405_v63 = vld [vmem:[#allocation13_spill] sm:$0xff]  ;;  %v6406_v52 = vld [vmem:[#allocation16_spill] sm:$0xff] }
 0xf18   :  { %2775 = vmatpush1.msra.mxu0 %v6378_v8  ;;  %2846 = vmatpush1.msra.mxu1 %v6379_v9  ;;  %v2939_v61 = vld [vmem:[%s6186_s21 + $0xf8] sm:$0xff]  ;;  %v2938_v46 = vld [vmem:[%s6186_s21 + $0xf0] sm:$0xff]  ;;  %v2937_v39 = vld [vmem:[%s6186_s21 + $0xe8] sm:$0xff] }
 0xf19   :  { %2776 = vmatprep.subr.mxu0 %v6380_v10  ;;  %2847 = vmatprep.subr.mxu1 %v6381_v12  ;;  %v2971_v36 = vld [vmem:[%s6186_s21 + $0x1f8] sm:$0xff]  ;;  %v2970_v45 = vld [vmem:[%s6186_s21 + $0x1f0] sm:$0xff]  ;;  %v2969_v51 = vld [vmem:[%s6186_s21 + $0x1e8] sm:$0xff] }
 0xf1a   :  { %2777 = vmatpush1.msra.mxu0 %v6382_v13  ;;  %2848 = vmatpush1.msra.mxu1 %v6383_v15  ;;  %v6407_v37 = vld [vmem:[#allocation15_spill] sm:$0xff]  ;;  %v2953_v58 = vld [vmem:[%s6186_s21 + $0x168] sm:$0xff]  ;;  %v2936_v59 = vld [vmem:[%s6186_s21 + $0xe0] sm:$0xff] }
 0xf1b   :  { %2778 = vmatprep.subr.mxu0 %v6384_v17  ;;  %2849 = vmatprep.subr.mxu1 %v6385_v2  ;;  %v2923_v54 = vld [vmem:[%s6186_s21 + $0x78] sm:$0xff]  ;;  %v2922_v62 = vld [vmem:[%s6186_s21 + $0x70] sm:$0xff]  ;;  %v2968_v14 = vld [vmem:[%s6186_s21 + $0x1e0] sm:$0xff] }
 0xf1c   :  { %2779 = vmatpush1.msra.mxu0 %v6386_v22  ;;  %2850 = vmatpush1.msra.mxu1 %v6387_v23  ;;  %v2955_v57 = vld [vmem:[%s6186_s21 + $0x178] sm:$0xff]  ;;  %v2954_v41 = vld [vmem:[%s6186_s21 + $0x170] sm:$0xff]  ;;  %v2920_v1 = vld [vmem:[%s6186_s21 + $0x60] sm:$0xff] }
 0xf1d   :  { %2780 = vmatprep.subr.mxu0 %v6388_v25  ;;  %2851 = vmatprep.subr.mxu1 %v6389_v26  ;;  %v2952_v18 = vld [vmem:[%s6186_s21 + $0x160] sm:$0xff]  ;;  %v2935_v19 = vld [vmem:[%s6186_s21 + $0xd8] sm:$0xff]  ;;  %v2934_v44 = vld [vmem:[%s6186_s21 + $0xd0] sm:$0xff] }
 0xf1e   :  { %2781 = vmatpush1.msra.mxu0 %v6390_v27  ;;  %2852 = vmatpush1.msra.mxu1 %v6391_v28  ;;  %v2967_v16 = vld [vmem:[%s6186_s21 + $0x1d8] sm:$0xff]  ;;  %v2966_v56 = vld [vmem:[%s6186_s21 + $0x1d0] sm:$0xff]  ;;  %v2933_v6 = vld [vmem:[%s6186_s21 + $0xc8] sm:$0xff] }
 0xf1f   :  { %2782 = vmatprep.subr.mxu0 %v6392_v30  ;;  %2853 = vmatprep.subr.mxu1 %v6393_v31  ;;  %v2919_v21 = vld [vmem:[%s6186_s21 + $0x58] sm:$0xff]  ;;  %v2918_v29 = vld [vmem:[%s6186_s21 + $0x50] sm:$0xff]  ;;  %v2965_v43 = vld [vmem:[%s6186_s21 + $0x1c8] sm:$0xff] }
 0xf20   :  { %2783 = vmatpush1.msra.mxu0 %v6394_v32  ;;  %2854 = vmatpush1.msra.mxu1 %v6395_v33  ;;  %v2951_v20 = vld [vmem:[%s6186_s21 + $0x158] sm:$0xff]  ;;  %v2950_v38 = vld [vmem:[%s6186_s21 + $0x150] sm:$0xff]  ;;  %v2917_v0 = vld [vmem:[%s6186_s21 + $0x48] sm:$0xff] }
 0xf21   :  { %2784 = vmatprep.subr.mxu0 %v6396_v34  ;;  %2855 = vmatprep.subr.mxu1 %v6397_v35  ;;  %v2949_v4 = vld [vmem:[%s6186_s21 + $0x148] sm:$0xff]  ;;  %v2932_v3 = vld [vmem:[%s6186_s21 + $0xc0] sm:$0xff]  ;;  %v2931_v9 = vld [vmem:[%s6186_s21 + $0xb8] sm:$0xff] }
 0xf22   :  { %2785 = vmatpush1.msra.mxu0 %v6398_v40  ;;  %2856 = vmatpush1.msra.mxu1 %v6399_v48  ;;  %v2964_v5 = vld [vmem:[%s6186_s21 + $0x1c0] sm:$0xff]  ;;  %v2963_v10 = vld [vmem:[%s6186_s21 + $0x1b8] sm:$0xff]  ;;  %v2930_v15 = vld [vmem:[%s6186_s21 + $0xb0] sm:$0xff] }
 0xf23   :  { %2786 = vmatprep.subr.mxu0 %v6400_v42  ;;  %2857 = vmatprep.subr.mxu1 %v6401_v49  ;;  %v2916_v7 = vld [vmem:[%s6186_s21 + $0x40] sm:$0xff]  ;;  %v2915_v12 = vld [vmem:[%s6186_s21 + $0x38] sm:$0xff]  ;;  %v2962_v17 = vld [vmem:[%s6186_s21 + $0x1b0] sm:$0xff] }
 0xf24   :  { %2787 = vmatpush1.msra.mxu0 %v6402_v53  ;;  %2822 = vmatprep.mubr.f32.mxu0 %v6303_v47  ;;  %v2948_v8 = vld [vmem:[%s6186_s21 + $0x140] sm:$0xff]  ;;  %v2947_v13 = vld [vmem:[%s6186_s21 + $0x138] sm:$0xff]  ;;  %v2914_v2 = vld [vmem:[%s6186_s21 + $0x30] sm:$0xff] }
 0xf25   :  { %2788 = vmatprep.subr.mxu0 %v6403_v55  ;;  %2858 = vmatpush1.msra.mxu1 %v6404_v60  ;;  %v2946_v22 = vld [vmem:[%s6186_s21 + $0x130] sm:$0xff]  ;;  %v2929_v23 = vld [vmem:[%s6186_s21 + $0xa8] sm:$0xff]  ;;  %v2928_v28 = vld [vmem:[%s6186_s21 + $0xa0] sm:$0xff] }
 0xf26   :  { %2789 = vmatpush1.msra.mxu0 %v6405_v63  ;;  %2859 = vmatprep.subr.mxu1 %v6406_v52  ;;  %v2961_v25 = vld [vmem:[%s6186_s21 + $0x1a8] sm:$0xff]  ;;  %v2960_v30 = vld [vmem:[%s6186_s21 + $0x1a0] sm:$0xff]  ;;  %v2927_v33 = vld [vmem:[%s6186_s21 + $0x98] sm:$0xff] }
 0xf27   :  { %3469 = vmatmul.mubr.msk.f32.vlgmr.msra.gmra.mxu0 %vm2612_vm11, %v5645_v24  ;;  %2860 = vmatpush1.msra.mxu1 %v6407_v37  ;;  %v2913_v26 = vld [vmem:[%s6186_s21 + $0x28] sm:$0xff]  ;;  %v2912_v31 = vld [vmem:[%s6186_s21 + $0x20] sm:$0xff]  ;;  %v2959_v34 = vld [vmem:[%s6186_s21 + $0x198] sm:$0xff] }
 0xf28   :  { %2893 = vmatprep.mubr.f32.mxu1 %v6303_v47  ;;  %3589 = vmatprep.subr.mxu0 %v2939_v61  ;;  %v2945_v27 = vld [vmem:[%s6186_s21 + $0x128] sm:$0xff]  ;;  %v2944_v32 = vld [vmem:[%s6186_s21 + $0x120] sm:$0xff]  ;;  %v2911_v35 = vld [vmem:[%s6186_s21 + $0x18] sm:$0xff] }
 0xf29   :  { %3470 = vmatmul.mubr.msk.f32.vlgmr.msra.gmra.mxu1 %vm2612_vm11, %v5645_v24  ;;  %3624 = vmatprep.subr.mxu1 %v2971_v36  ;;  %v2921_v24 = vld [vmem:[%s6186_s21 + $0x68] sm:$0xff]  ;;  %v2943_v40 = vld [vmem:[%s6186_s21 + $0x118] sm:$0xff]  ;;  %v2926_v48 = vld [vmem:[%s6186_s21 + $0x90] sm:$0xff] }
 0xf2a   :  { %3590 = vmatpush3.msra.mxu0 %v2923_v54  ;;  %3625 = vmatpush3.msra.mxu1 %v2955_v57  ;;  %v2958_v42 = vld [vmem:[%s6186_s21 + $0x190] sm:$0xff]  ;;  %v2925_v55 = vld [vmem:[%s6186_s21 + $0x88] sm:$0xff]  ;;  %v2924_v52 = vld [vmem:[%s6186_s21 + $0x80] sm:$0xff] }
 0xf2b   :  { %3591 = vmatprep.subr.mxu0 %v2938_v46  ;;  %3626 = vmatprep.subr.mxu1 %v2970_v45  ;;  %v2910_v49 = vld [vmem:[%s6186_s21 + $0x10] sm:$0xff]  ;;  %v2957_v60 = vld [vmem:[%s6186_s21 + $0x188] sm:$0xff]  ;;  %v2956_v36 = vld [vmem:[%s6186_s21 + $0x180] sm:$0xff] }
 0xf2c   :  { %3592 = vmatpush3.msra.mxu0 %v2922_v62  ;;  %3627 = vmatpush3.msra.mxu1 %v2954_v41  ;;  %v2942_v53 = vld [vmem:[%s6186_s21 + $0x110] sm:$0xff]  ;;  %v2909_v61 = vld [vmem:[%s6186_s21 + $0x8] sm:$0xff]  ;;  %v2908_v37 = vld [vmem:[%s6186_s21] sm:$0xff] }
 0xf2d   :  { %3593 = vmatprep.subr.mxu0 %v2937_v39  ;;  %3628 = vmatprep.subr.mxu1 %v2969_v51  ;;  %v2941_v63 = vld [vmem:[%s6186_s21 + $0x108] sm:$0xff]  ;;  %v2940_v54 = vld [vmem:[%s6186_s21 + $0x100] sm:$0xff]  ;;  %v3003_v57 = vld [vmem:[%s6186_s21 + $0x2f8] sm:$0xff] }
 0xf2e   :  { %3594 = vmatpush3.msra.mxu0 %v2921_v24  ;;  %3629 = vmatpush3.msra.mxu1 %v2953_v58  ;;  %v3035_v46 = vld [vmem:[%s6186_s21 + $0x3f8] sm:$0xff]  ;;  %v5940_v45 = vld [vmem:[%s6185_s20] sm:$0xff] }
 0xf2f   :  { %3595 = vmatprep.subr.mxu0 %v2936_v59  ;;  %3630 = vmatprep.subr.mxu1 %v2968_v14  ;;  %v6408_v62 = vld [vmem:[#allocation92_spill] sm:$0xff]  ;;  %v2575_v24 = vrot.slane %v5940_v45, %v6319_v11  ;;  %v2579_v58 = vrot.slane %v5940_v45, %v6327_v50 }
 0xf30   :  { %3596 = vmatpush3.msra.mxu0 %v2920_v1  ;;  %3631 = vmatpush3.msra.mxu1 %v2952_v18  ;;  %v2586_v41 = vsub.s32 3, %v6408_v62  ;;  %v6409_v39 = vsub.s32 2, %v6408_v62  ;;  %v2987_v11 = vld [vmem:[%s6186_s21 + $0x278] sm:$0xff] }
 0xf31   :  { %3597 = vmatprep.subr.mxu0 %v2935_v19  ;;  %3632 = vmatprep.subr.mxu1 %v2967_v16  ;;  %v3019_v50 = vld [vmem:[%s6186_s21 + $0x378] sm:$0xff] }
 0xf32   :  { %3598 = vmatpush3.msra.mxu0 %v2919_v21  ;;  %3633 = vmatpush3.msra.mxu1 %v2951_v20  ;;  %v2583_v51 = vrot.slane %v5940_v45, %v6409_v39  ;;  %v2587_v59 = vrot.slane %v5940_v45, %v2586_v41  ;;  %v2598_v39 = vsub.s32 6, %v6408_v62 }
 0xf33   :  { %3599 = vmatprep.subr.mxu0 %v2934_v44  ;;  %3634 = vmatprep.subr.mxu1 %v2966_v56 }
 0xf34   :  { %3600 = vmatpush3.msra.mxu0 %v2918_v29  ;;  %3635 = vmatpush3.msra.mxu1 %v2950_v38 }
 0xf35   :  { %3601 = vmatprep.subr.mxu0 %v2933_v6  ;;  %3636 = vmatprep.subr.mxu1 %v2965_v43  ;;  %v3002_v43 = vld [vmem:[%s6186_s21 + $0x2f0] sm:$0xff] }
 0xf36   :  { %3602 = vmatpush3.msra.mxu0 %v2917_v0  ;;  %3637 = vmatpush3.msra.mxu1 %v2949_v4  ;;  %v3034_v0 = vld [vmem:[%s6186_s21 + $0x3f0] sm:$0xff] }
 0xf37   :  { %3603 = vmatprep.subr.mxu0 %v2932_v3  ;;  %3638 = vmatprep.subr.mxu1 %v2964_v5  ;;  %v2986_v4 = vld [vmem:[%s6186_s21 + $0x270] sm:$0xff]  ;;  %v3001_v5 = vld [vmem:[%s6186_s21 + $0x2e8] sm:$0xff] }
 0xf38   :  { %3604 = vmatpush3.msra.mxu0 %v2916_v7  ;;  %3639 = vmatpush3.msra.mxu1 %v2948_v8  ;;  %v3018_v3 = vld [vmem:[%s6186_s21 + $0x370] sm:$0xff]  ;;  %v3033_v7 = vld [vmem:[%s6186_s21 + $0x3e8] sm:$0xff] }
 0xf39   :  { %3605 = vmatprep.subr.mxu0 %v2931_v9  ;;  %3640 = vmatprep.subr.mxu1 %v2963_v10  ;;  %v2985_v8 = vld [vmem:[%s6186_s21 + $0x268] sm:$0xff]  ;;  %v3000_v10 = vld [vmem:[%s6186_s21 + $0x2e0] sm:$0xff] }
 0xf3a   :  { %3606 = vmatpush3.msra.mxu0 %v2915_v12  ;;  %3641 = vmatpush3.msra.mxu1 %v2947_v13  ;;  %v3017_v9 = vld [vmem:[%s6186_s21 + $0x368] sm:$0xff]  ;;  %v3032_v12 = vld [vmem:[%s6186_s21 + $0x3e0] sm:$0xff] }
 0xf3b   :  { %3607 = vmatprep.subr.mxu0 %v2930_v15  ;;  %3642 = vmatprep.subr.mxu1 %v2962_v17  ;;  %v2984_v13 = vld [vmem:[%s6186_s21 + $0x260] sm:$0xff]  ;;  %v2999_v17 = vld [vmem:[%s6186_s21 + $0x2d8] sm:$0xff] }
 0xf3c   :  { %3608 = vmatpush3.msra.mxu0 %v2914_v2  ;;  %3643 = vmatpush3.msra.mxu1 %v2946_v22  ;;  %v3016_v15 = vld [vmem:[%s6186_s21 + $0x360] sm:$0xff]  ;;  %v3031_v2 = vld [vmem:[%s6186_s21 + $0x3d8] sm:$0xff] }
 0xf3d   :  { %3609 = vmatprep.subr.mxu0 %v2929_v23  ;;  %3644 = vmatprep.subr.mxu1 %v2961_v25  ;;  %v2983_v22 = vld [vmem:[%s6186_s21 + $0x258] sm:$0xff]  ;;  %v2998_v25 = vld [vmem:[%s6186_s21 + $0x2d0] sm:$0xff] }
 0xf3e   :  { %3610 = vmatpush3.msra.mxu0 %v2913_v26  ;;  %3645 = vmatpush3.msra.mxu1 %v2945_v27  ;;  %v3015_v23 = vld [vmem:[%s6186_s21 + $0x358] sm:$0xff]  ;;  %v3030_v26 = vld [vmem:[%s6186_s21 + $0x3d0] sm:$0xff] }
 0xf3f   :  { %3611 = vmatprep.subr.mxu0 %v2928_v28  ;;  %3646 = vmatprep.subr.mxu1 %v2960_v30  ;;  %v2982_v27 = vld [vmem:[%s6186_s21 + $0x250] sm:$0xff]  ;;  %v2997_v30 = vld [vmem:[%s6186_s21 + $0x2c8] sm:$0xff] }
 0xf40   :  { %3612 = vmatpush3.msra.mxu0 %v2912_v31  ;;  %3647 = vmatpush3.msra.mxu1 %v2944_v32  ;;  %v3014_v28 = vld [vmem:[%s6186_s21 + $0x350] sm:$0xff]  ;;  %v3029_v31 = vld [vmem:[%s6186_s21 + $0x3c8] sm:$0xff] }
 0xf41   :  { %3613 = vmatprep.subr.mxu0 %v2927_v33  ;;  %3648 = vmatprep.subr.mxu1 %v2959_v34  ;;  %v2981_v32 = vld [vmem:[%s6186_s21 + $0x248] sm:$0xff]  ;;  %v2996_v34 = vld [vmem:[%s6186_s21 + $0x2c0] sm:$0xff] }
 0xf42   :  { %3614 = vmatpush3.msra.mxu0 %v2911_v35  ;;  %3649 = vmatpush3.msra.mxu1 %v2943_v40  ;;  %v3013_v33 = vld [vmem:[%s6186_s21 + $0x348] sm:$0xff]  ;;  %v3028_v35 = vld [vmem:[%s6186_s21 + $0x3c0] sm:$0xff] }
 0xf43   :  { %3615 = vmatprep.subr.mxu0 %v2926_v48  ;;  %3650 = vmatprep.subr.mxu1 %v2958_v42  ;;  %v2980_v40 = vld [vmem:[%s6186_s21 + $0x240] sm:$0xff]  ;;  %v2995_v42 = vld [vmem:[%s6186_s21 + $0x2b8] sm:$0xff] }
 0xf44   :  { %3616 = vmatpush3.msra.mxu0 %v2910_v49  ;;  %3651 = vmatpush3.msra.mxu1 %v2942_v53  ;;  %v3012_v48 = vld [vmem:[%s6186_s21 + $0x340] sm:$0xff]  ;;  %v3027_v49 = vld [vmem:[%s6186_s21 + $0x3b8] sm:$0xff]  ;;  %v2594_v53 = vsub.s32 5, %v6408_v62 }
 0xf45   :  { %3617 = vmatprep.subr.mxu0 %v2925_v55  ;;  %3652 = vmatprep.subr.mxu1 %v2957_v60  ;;  %v2979_v55 = vld [vmem:[%s6186_s21 + $0x238] sm:$0xff] }
 0xf46   :  { %3618 = vmatpush3.msra.mxu0 %v2909_v61  ;;  %3653 = vmatpush3.msra.mxu1 %v2941_v63  ;;  %v3011_v60 = vld [vmem:[%s6186_s21 + $0x338] sm:$0xff]  ;;  %v2994_v63 = vld [vmem:[%s6186_s21 + $0x2b0] sm:$0xff]  ;;  %v2595_v41 = vrot.slane %v5940_v45, %v2594_v53 }
 0xf47   :  { %3619 = vmatprep.subr.mxu0 %v2924_v52  ;;  %3654 = vmatprep.subr.mxu1 %v2956_v36  ;;  %v3026_v52 = vld [vmem:[%s6186_s21 + $0x3b0] sm:$0xff] }
 0xf48   :  { %3620 = vmatpush3.msra.mxu0 %v2908_v37  ;;  %3655 = vmatpush3.msra.mxu1 %v2940_v54  ;;  %v2978_v36 = vld [vmem:[%s6186_s21 + $0x230] sm:$0xff]  ;;  %v2602_v54 = vsub.s32 7, %v6408_v62 }
 0xf49   :  { %3659 = vmatprep.subr.mxu0 %v3003_v57  ;;  %3694 = vmatprep.subr.mxu1 %v3035_v46  ;;  %v3010_v37 = vld [vmem:[%s6186_s21 + $0x330] sm:$0xff]  ;;  %v2993_v57 = vld [vmem:[%s6186_s21 + $0x2a8] sm:$0xff] }
 0xf4a   :  { %v3025_v46 = vld [vmem:[%s6186_s21 + $0x3a8] sm:$0xff] }
 0xfd2   :  { %v2682_v14 = vpop.f32.mrf.mxu0  ;;  %v2753_v1 = vpop.f32.mrf.mxu1 }
 0xfd3   :  { %v2754_v18 = vadd.f32 %v2753_v1, %v2583_v51  ;;  %v2683_v19 = vadd.f32 %v2682_v14, %v2575_v24  ;;  %v2977_v24 = vld [vmem:[%s6186_s21 + $0x228] sm:$0xff]  ;;  %v2590_v14 = vsub.s32 4, %v6408_v62  ;;  %v2992_v1 = vld [vmem:[%s6186_s21 + $0x2a0] sm:$0xff]  ;;  %v2603_v62 = vrot.slane %v5940_v45, %v2602_v54 }
 0xfd4   :  { %v2684_v16 = vpop.f32.mrf.mxu0  ;;  %v2755_v21 = vpop.f32.mrf.mxu1 }
 0xfd5   :  { %v2685_v20 = vadd.f32 %v2684_v16, %v2579_v58  ;;  %v2756_v44 = vadd.f32 %v2755_v21, %v2587_v59  ;;  %v2902_v56 = vmax.f32 %v2754_v18, 0.0  ;;  %v2900_v6 = vmax.f32 %v2683_v19, 0.0  ;;  %v3009_v58 = vld [vmem:[%s6186_s21 + $0x328] sm:$0xff]  ;;  %v3024_v18 = vld [vmem:[%s6186_s21 + $0x3a0] sm:$0xff] }
 0xfd6   :  { %v2976_v19 = vld [vmem:[%s6186_s21 + $0x220] sm:$0xff] }
 0xfd7   :  { %v2901_v29 = vmax.f32 %v2685_v20, 0.0  ;;  %v2903_v38 = vmax.f32 %v2756_v44, 0.0  ;;  %v3008_v16 = vld [vmem:[%s6186_s21 + $0x320] sm:$0xff]  ;;  %v2599_v20 = vrot.slane %v5940_v45, %v2598_v39  ;;  %v2991_v44 = vld [vmem:[%s6186_s21 + $0x298] sm:$0xff] }
 0xfd9   :  { %3107 = vmatprep.mubr.f32.mxu0 %v2901_v29  ;;  %3177 = vmatprep.mubr.f32.mxu1 %v2903_v38  ;;  %v2975_v38 = vld [vmem:[%s6186_s21 + $0x218] sm:$0xff] }
 0xfda   :  { %3108 = vmatmul.mubr.f32.vlgmr.msra.gmra.mxu0 %v2900_v6  ;;  %3178 = vmatmul.mubr.f32.vlgmr.msra.gmra.mxu1 %v2902_v56  ;;  %v3023_v56 = vld [vmem:[%s6186_s21 + $0x398] sm:$0xff] }
 0xfdb   :  { %3660 = vmatpush3.msra.mxu0 %v2987_v11  ;;  %3695 = vmatpush3.msra.mxu1 %v3019_v50  ;;  %v3007_v6 = vld [vmem:[%s6186_s21 + $0x318] sm:$0xff]  ;;  %v2591_v11 = vrot.slane %v5940_v45, %v2590_v14  ;;  %v2990_v50 = vld [vmem:[%s6186_s21 + $0x290] sm:$0xff] }
 0xfdc   :  { %3661 = vmatprep.subr.mxu0 %v3002_v43  ;;  %3696 = vmatprep.subr.mxu1 %v3034_v0  ;;  %v3022_v43 = vld [vmem:[%s6186_s21 + $0x390] sm:$0xff] }
 0xfdd   :  { %3662 = vmatpush3.msra.mxu0 %v2986_v4  ;;  %3697 = vmatpush3.msra.mxu1 %v3018_v3  ;;  %v2974_v4 = vld [vmem:[%s6186_s21 + $0x210] sm:$0xff] }
 0xfde   :  { %3663 = vmatprep.subr.mxu0 %v3001_v5  ;;  %3698 = vmatprep.subr.mxu1 %v3033_v7  ;;  %v3006_v45 = vld [vmem:[%s6186_s21 + $0x310] sm:$0xff]  ;;  %v2989_v7 = vld [vmem:[%s6186_s21 + $0x288] sm:$0xff] }
 0xfdf   :  { %3664 = vmatpush3.msra.mxu0 %v2985_v8  ;;  %3699 = vmatpush3.msra.mxu1 %v3017_v9  ;;  %v3021_v8 = vld [vmem:[%s6186_s21 + $0x388] sm:$0xff] }
 0xfe0   :  { %3665 = vmatprep.subr.mxu0 %v3000_v10  ;;  %3700 = vmatprep.subr.mxu1 %v3032_v12  ;;  %v2973_v9 = vld [vmem:[%s6186_s21 + $0x208] sm:$0xff] }
 0xfe1   :  { %3666 = vmatpush3.msra.mxu0 %v2984_v13  ;;  %3701 = vmatpush3.msra.mxu1 %v3016_v15  ;;  %v3005_v12 = vld [vmem:[%s6186_s21 + $0x308] sm:$0xff]  ;;  %v2988_v13 = vld [vmem:[%s6186_s21 + $0x280] sm:$0xff] }
 0xfe2   :  { %3667 = vmatprep.subr.mxu0 %v2999_v17  ;;  %3702 = vmatprep.subr.mxu1 %v3031_v2  ;;  %v3020_v17 = vld [vmem:[%s6186_s21 + $0x380] sm:$0xff] }
 0xfe3   :  { %3668 = vmatpush3.msra.mxu0 %v2983_v22  ;;  %3703 = vmatpush3.msra.mxu1 %v3015_v23  ;;  %v2972_v2 = vld [vmem:[%s6186_s21 + $0x200] sm:$0xff] }
 0xfe4   :  { %3669 = vmatprep.subr.mxu0 %v2998_v25  ;;  %3704 = vmatprep.subr.mxu1 %v3030_v26  ;;  %v3004_v23 = vld [vmem:[%s6186_s21 + $0x300] sm:$0xff]  ;;  %v3325_v26 = vld [vmem:[%s6188_s23 + $0x8] sm:$0xff] }
 0xfe5   :  { %3670 = vmatpush3.msra.mxu0 %v2982_v27  ;;  %3705 = vmatpush3.msra.mxu1 %v3014_v28  ;;  %v3324_v27 = vld [vmem:[%s6188_s23] sm:$0xff] }
 0xfe6   :  { %3671 = vmatprep.subr.mxu0 %v2997_v30  ;;  %3706 = vmatprep.subr.mxu1 %v3029_v31 }
 0xfe7   :  { %3672 = vmatpush3.msra.mxu0 %v2981_v32  ;;  %3707 = vmatpush3.msra.mxu1 %v3013_v33  ;;  %v2824_v61 = vpop.f32.mrf.mxu0  ;;  %v3471_v33 = vld [vmem:[%s6187_s22] ss:$0 sm:$0xff]  ;;  %s3895_s22 = smov [#allocation4]  }
 0xfe8   :  { %3673 = vmatprep.subr.mxu0 %v2996_v34  ;;  %3708 = vmatprep.subr.mxu1 %v3028_v35  ;;  %v2825_v10 = vadd.f32 %v2824_v61, %v2591_v11  ;;  %s3414_s20 = sshll.u32 %s3895_s22, 4  ;;  %s3415_s20 = int_to_ptr.vmem [resolvable:$true] %s3414_s20 }
 0xfe9   :  { %3674 = vmatpush3.msra.mxu0 %v2980_v40  ;;  %3709 = vmatpush3.msra.mxu1 %v3012_v48  ;;  %v2895_v51 = vpop.f32.mrf.mxu1  ;;  %v2826_v59 = vpop.f32.mrf.mxu0  ;;  %s3860_s30 = scalar_lea.vmem %s3415_s20, 32  ;;  %p3865_p1 = scmp.lt.s32.totalorder %s3415_s20, %s3415_s20 }
 0xfea   :  { %3675 = vmatprep.subr.mxu0 %v2995_v42  ;;  %3710 = vmatprep.subr.mxu1 %v3027_v49  ;;  %v2827_v21 = vadd.f32 %v2826_v59, %v2595_v41  ;;  %v2896_v5 = vadd.f32 %v2895_v51, %v2599_v20  ;;  %v2904_v25 = vmax.f32 %v2825_v10, 0.0  ;;  %p3861_p0 = scmp.ne.s32.totalorder %s3415_s20, %s3860_s30  ;;  %p3866_p2 = scmp.lt.s32.totalorder %s3860_s30, %s3860_s30 }
 0xfeb   :  { %3676 = vmatpush3.msra.mxu0 %v2979_v55  ;;  %3711 = vmatpush3.msra.mxu1 %v3011_v60  ;;  %v2897_v29 = vpop.f32.mrf.mxu1 }
 0xfec   :  { %3677 = vmatprep.subr.mxu0 %v2994_v63  ;;  %3712 = vmatprep.subr.mxu1 %v3026_v52  ;;  %v2898_v0 = vadd.f32 %v2897_v29, %v2603_v62  ;;  %v2905_v3 = vmax.f32 %v2827_v21, 0.0  ;;  %v2906_v22 = vmax.f32 %v2896_v5, 0.0  ;;  %p3867_p3 = por %p3866_p2, %p3865_p1 }
 0xfed   :  { %3678 = vmatpush3.msra.mxu0 %v2978_v36  ;;  %3713 = vmatpush3.msra.mxu1 %v3010_v37  ;;  %v3472_v36 = vld [vmem:[%s6189_s24] ss:$0 sm:$0xff] }
 0xfee   :  { %3679 = vmatprep.subr.mxu0 %v2993_v57  ;;  %3714 = vmatprep.subr.mxu1 %v3025_v46  ;;  %v2907_v15 = vmax.f32 %v2898_v0, 0.0  ;;  %p3868_p4 = pnand %p3867_p3, %p3861_p0 }
 0xfef   :  { %3680 = vmatpush3.msra.mxu0 %v2977_v24  ;;  %3715 = vmatpush3.msra.mxu1 %v3009_v58 }
 0xff0   :  { %3681 = vmatprep.subr.mxu0 %v2992_v1  ;;  %3716 = vmatprep.subr.mxu1 %v3024_v18 }
 0xff1   :  { %3682 = vmatpush3.msra.mxu0 %v2976_v19  ;;  %3717 = vmatpush3.msra.mxu1 %v3008_v16 }
 0xff2   :  { %3683 = vmatprep.subr.mxu0 %v2991_v44  ;;  %3718 = vmatprep.subr.mxu1 %v3023_v56 }
 0xff3   :  { %3684 = vmatpush3.msra.mxu0 %v2975_v38  ;;  %3719 = vmatpush3.msra.mxu1 %v3007_v6 }
 0xff4   :  { %3685 = vmatprep.subr.mxu0 %v2990_v50  ;;  %3720 = vmatprep.subr.mxu1 %v3022_v43 }
 0xff5   :  { %3686 = vmatpush3.msra.mxu0 %v2974_v4  ;;  %3721 = vmatpush3.msra.mxu1 %v3006_v45 }
 0xff6   :  { %3687 = vmatprep.subr.mxu0 %v2989_v7  ;;  %3722 = vmatprep.subr.mxu1 %v3021_v8 }
 0xff7   :  { %3688 = vmatpush3.msra.mxu0 %v2973_v9  ;;  %3247 = vmatprep.mubr.f32.mxu0 %v2905_v3 }
 0xff8   :  { %3723 = vmatpush3.msra.mxu1 %v3005_v12  ;;  %3689 = vmatprep.subr.mxu0 %v2988_v13 }
 0xff9   :  { %3724 = vmatprep.subr.mxu1 %v3020_v17  ;;  %3690 = vmatpush3.msra.mxu0 %v2972_v2 }
 0xffa   :  { %3725 = vmatpush3.msra.mxu1 %v3004_v23  ;;  %3317 = vmatprep.mubr.f32.mxu1 %v2907_v15 }
 0xffb   :  { %3248 = vmatmul.mubr.f32.vlgmr.msra.gmra.mxu0 %v2904_v25  ;;  %3318 = vmatmul.mubr.f32.vlgmr.msra.gmra.mxu1 %v2906_v22 }
 0xffc   :  { %3829 = vmatprep.subr.mxu0 %v6303_v47  ;;  %3833 = vmatprep.mubr.msk.f32.mxu0 %vm3885_vm2, %v6303_v47  ;;  %vm3406_vm2 = vcmask 25600  }
 0xffd   :  { %3830 = vmatpush3.msra.mxu0 %v3325_v26 }
 0xffe   :  { %3831 = vmatprep.subr.mxu0 %v6303_v47 }
 0xfff   :  { %3832 = vmatpush3.msra.mxu0 %v3324_v27 }
0x109a   :  { %v3621_v28 = vpop.f32.mrf.mxu0  ;;  %v3656_v31 = vpop.f32.mrf.mxu1 }
0x109c   :  { %v3622_v30 = vpop.f32.mrf.mxu0  ;;  %v3657_v34 = vpop.f32.mrf.mxu1 }
0x109d   :  { %v3623_v32 = vadd.f32 %v3622_v30, %v3621_v28  ;;  %v3658_v42 = vadd.f32 %v3657_v34, %v3656_v31 }
0x109f   :  { %v3110_v35 = vadd.f32 %v3623_v32, %v3471_v33 }
0x10a1   :  { %v3180_v53 = vadd.f32 %v3658_v42, %v3110_v35 }
0x10bb   :  { %v3691_v40 = vpop.f32.mrf.mxu0  ;;  %v3726_v48 = vpop.f32.mrf.mxu1 }
0x10bd   :  { %v3692_v49 = vpop.f32.mrf.mxu0  ;;  %v3727_v47 = vpop.f32.mrf.mxu1 }
0x10be   :  { %v3693_v55 = vadd.f32 %v3692_v49, %v3691_v40  ;;  %v3728_v61 = vadd.f32 %v3727_v47, %v3726_v48 }
0x10c0   :  { %v3250_v60 = vadd.f32 %v3693_v55, %v3180_v53 }
0x10c2   :  { %v3320_v63 = vadd.f32 %v3728_v61, %v3250_v60 }
0x10c4   :  { %v3323_v52 = vmax.f32 %v3320_v63, 0.0 }
0x10c6   :  { %3834 = vmatmul.mubr.msk.f32.vlgmr.msra.gmra.mxu0 %vm1417_vm7, %v3323_v52 }
0x1186   :  { %v3402_v37 = vpop.f32.mrf.mxu0 }
0x1187   :  { %v3403_v54 = vadd.f32 %v3472_v36, %v3402_v37 }
0x1188   :  { %v3835_v57 = vpop.f32.mrf.mxu0 }
0x1189   :  { %3407 = vst.msk [vmem:[#allocation4] sm:$0x3] %vm3406_vm2, %v3403_v54 }
0x118a   :  { %3871 = shalt.err (!%p3868_p4)
}
0x118b   :  { %3417 = dma.vmem_to_hbm [thread:$0]  %s3415_s20, 32, %s6190_s25, [#allocation5]  }
0x118c   :  { %3882 = dma.done.wait [#allocation5], 32  }
0x118d   :  { %3883 = vsyncadd [#allocation5], 4294967264 }
0x118e   :  { %3421 = vsyncpa [#allocation5], 1 }
0x118f   :  { %3422 = vsyncmov [#allocation3] }
0x1192   :  { %s3423_s24 = vpop.sfrf %3422 }
0x1193   :  { %p3474_p5 = scmp.ne.s32.totalorder %s3423_s24, 0 }
0x1195   :  { %3427 = shalt.err (%p3474_p5)  }

</bundles_post_ra>
